<compile_context>
chip_gen: v5e
topology: v5e:2x2
jax: 0.10.0
libtpu: 0.0.40
codegen_flags: <defaults>
</compile_context>

<pallas_src>
import functools

import numpy as np
import jax
import jax.numpy as jnp
from jax import lax
from jax.experimental import pallas as pl
from jax.experimental.pallas import tpu as pltpu


def _binary_kernel(s_ref, out_ref, *, unroll):
    # s_ref / out_ref: (G, N1, N2) block holding G batch elements.
    G, N1, N2 = s_ref.shape

    # Small broadcast iotas ((1,1,N2) lane iota, (1,N1,1) sublane iota) instead of
    # full-slab iotas: saves 2x block_bytes of VMEM-resident constants and keeps
    # every slab-wide compare/select down to one large operand.
    col_iota = lax.broadcasted_iota(jnp.int32, (1, 1, N2), 2)
    row_iota = lax.broadcasted_iota(jnp.int32, (1, N1, 1), 1)

    # TODO(synk): on v6e/v7x a bf16 input could be processed directly in bf16
    # (2x cheaper slab passes, half the VMEM); kept f32 for exactness everywhere.
    s0 = s_ref[...].astype(jnp.float32)

    KILLED = jnp.float32(-1.0)     # sentinel for killed columns (input assumed >= 0)
    DONE = jnp.float32(-jnp.inf)   # sentinel excluding already-assigned rows

    chosen0 = jnp.full((G, N1, 1), N2, dtype=jnp.int32)   # N2 == "row not assigned yet"
    col_dead0 = jnp.zeros((G, 1, N2), dtype=jnp.bool_)

    def body(_, carry):
        chosen, col_dead = carry
        # Mask killed columns with a negative sentinel instead of mutating the slab:
        # tiny loop carry, fewer VPU passes, and killed entries can never win again.
        s_eff = jnp.where(col_dead, KILLED, s0)                               # (G,N1,N2)
        # Fused per-row max + first-occurrence argmax (row-major tie-break).
        row_max = jnp.max(s_eff, axis=2, keepdims=True)                       # (G,N1,1)
        row_arg = jnp.min(jnp.where(s_eff == row_max, col_iota, N2),
                          axis=2, keepdims=True)                              # (G,N1,1)
        # Winning row = first not-yet-assigned row achieving the global max;
        # column = that row's first-occurrence argmax (== flat row-major argmax).
        row_done = chosen < N2                                                # (G,N1,1)
        row_best = jnp.where(row_done, DONE, row_max)                         # (G,N1,1)
        gmax = jnp.max(row_best, axis=1, keepdims=True)                       # (G,1,1)
        r = jnp.min(jnp.where(row_best == gmax, row_iota, N1),
                    axis=1, keepdims=True)                                    # (G,1,1)
        c = jnp.min(jnp.where(row_iota == r, row_arg, N2),
                    axis=1, keepdims=True)                                    # (G,1,1)
        chosen = jnp.where(row_iota == r, c, chosen)
        col_dead = jnp.logical_or(col_dead, col_iota == c)
        return chosen, col_dead

    chosen, _ = lax.fori_loop(0, N1, body, (chosen0, col_dead0), unroll=unroll)

    # Single store of the permutation matrix.
    out_ref[...] = (col_iota == chosen).astype(out_ref.dtype)


def _vmem_capacity_bytes():
    """Per-TensorCore VMEM capacity; conservative 64 MiB (v7x) if unknown."""
    try:
        return int(pltpu.get_tpu_info().vmem_capacity_bytes)
    except Exception:
        return 64 << 20


def _plan_blocks(B, N1, N2, max_block_bytes):
    """Pick (G = batch elems per grid step, grid = number of steps).

    Blocks are sized toward `max_block_bytes` (big blocks amortize the ~0.35us
    per-step overhead and small-DMA cost), while keeping >= 2 grid steps whenever
    B >= 2 so the BlockSpec double-buffer overlaps DMA with compute and both v7x
    TensorCores get work.  The caller pads B up to G * grid (no G=1 collapse for
    awkward batch sizes).
    """
    per_elem = max(1, N1 * N2 * 4)                     # f32 compute copy per element
    g_cap = max(1, max_block_bytes // per_elem)
    min_grid = 2 if B >= 2 else 1
    grid = max(min_grid, pl.cdiv(B, min(B, g_cap)))
    g = pl.cdiv(B, grid)
    grid = max(min_grid, pl.cdiv(B, g))
    return g, grid


def binary(s: jax.Array) -> jax.Array:
    """Pallas implementation of Binary.forward(s) with n1=None, n2=None.

    Assumes non-negative entries (bi-stochastic / softmax outputs), like the
    reference's kill-by-zero scheme.
    """
    B, N1, N2 = s.shape
    # TODO(synk): the reference decodes the flat argmax with // n1b and % n1b, which
    # is only consistent for square matrices; rectangular inputs are not supported.
    assert N1 == N2, "Binary Pallas kernel only supports square (N1 == N2) inputs"

    cap = _vmem_capacity_bytes()
    # ~5 MiB blocks on v7x (64 MiB VMEM/TC), ~10 MiB on v5e/v6e (128 MiB).
    max_block_bytes = max(1 << 20, cap // 12)
    G, grid = _plan_blocks(B, N1, N2, max_block_bytes)
    padded_B = G * grid
    block_bytes = G * N1 * N2 * 4
    # in + out double-buffered + f32 compute copy + loop carry / temps ~= 7-8x block.
    vmem_limit = int(min(cap * 3 // 4, max(32 << 20, 8 * block_bytes)))

    # The loop is throughput-bound (slab-wide passes), not latency-bound: full
    # unroll only for tiny N, otherwise keep the loop visible (1-2x).
    unroll = True if N1 <= 32 else (2 if N1 < 128 else 1)

    kernel = functools.partial(_binary_kernel, unroll=unroll)

    s_in = s if padded_B == B else jnp.pad(s, ((0, padded_B - B), (0, 0), (0, 0)))

    out = pl.pallas_call(
        kernel,
        out_shape=jax.ShapeDtypeStruct((padded_B, N1, N2), s.dtype),
        grid_spec=pltpu.PrefetchScalarGridSpec(
            num_scalar_prefetch=0,
            grid=(grid,),
            in_specs=[pl.BlockSpec((G, N1, N2), lambda b: (b, 0, 0))],
            out_specs=pl.BlockSpec((G, N1, N2), lambda b: (b, 0, 0)),
        ),
        compiler_params=pltpu.CompilerParams(
            # Batch elements are fully independent -> shard steps across TensorCores.
            dimension_semantics=("parallel",),
            vmem_limit_bytes=vmem_limit,
        ),
        cost_estimate=pl.CostEstimate(
            flops=int(5 * padded_B * N1 * N1 * N2),
            transcendentals=0,
            bytes_accessed=int(2 * padded_B * N1 * N2 * s.dtype.itemsize),
        ),
    )(s_in)

    return out if padded_B == B else out[:B]


def _binary_ref_numpy(s: np.ndarray) -> np.ndarray:
    """Pure-numpy port of the PyTorch reference (n1=None, n2=None)."""
    s_tmp = s.copy()
    perm = np.zeros_like(s)
    B, N1, N2 = s.shape
    for b in range(B):
        for _ in range(N1):
            idx = int(np.argmax(s_tmp[b, :N1, :N2]))
            r = idx // N1
            c = idx % N1
            s_tmp[b, r, :N2] = 0
            s_tmp[b, :N1, c] = 0
            perm[b, r, c] = 1
    return perm


if __name__ == "__main__":
    # Test 1: approximately doubly-stochastic input (row-softmax of random logits).
    key = jax.random.PRNGKey(0)
    B, N = 2, 16
    logits = jax.random.normal(key, (B, N, N), dtype=jnp.float32)
    s = jax.nn.softmax(logits, axis=-1)
    out = jax.block_until_ready(binary(s))
    ref = _binary_ref_numpy(np.asarray(s))
    np.testing.assert_allclose(np.asarray(out), ref, rtol=0, atol=0)

    # Test 2: heavily tied, strictly-positive input (exercises row-major
    # first-occurrence tie-breaking of the fused per-row argmax).
    B2, M = 4, 8
    logits2 = jax.random.normal(jax.random.PRNGKey(1), (B2, M, M), dtype=jnp.float32)
    s2 = (jnp.floor(jax.nn.softmax(logits2, axis=-1) * 8.0) + 1.0) / 16.0
    out2 = jax.block_until_ready(binary(s2))
    ref2 = _binary_ref_numpy(np.asarray(s2))
    np.testing.assert_allclose(np.asarray(out2), ref2, rtol=0, atol=0)

    # Test 3: odd batch size -> exercises the pad-to-(G*grid) path.
    B3, K = 3, 8
    logits3 = jax.random.normal(jax.random.PRNGKey(2), (B3, K, K), dtype=jnp.float32)
    s3 = jax.nn.softmax(logits3, axis=-1)
    out3 = jax.block_until_ready(binary(s3))
    ref3 = _binary_ref_numpy(np.asarray(s3))
    np.testing.assert_allclose(np.asarray(out3), ref3, rtol=0, atol=0)

    print("KERNEL_OK")
</pallas_src>

<mosaic_0001>
module attributes {stable_mosaic.version = 11 : i64} {
  func.func @_binary_kernel(%arg0: i32, %arg1: memref<1x16x16xf32, #tpu.memory_space<vmem>>, %arg2: memref<1x16x16xf32, #tpu.memory_space<vmem>>) attributes {dimension_semantics = [#tpu.dimension_semantics<parallel>], iteration_bounds = array<i64: 2>, scalar_prefetch = 0 : i64, scratch_operands = 0 : i64, tpu.core_type = #tpu.core_type<tc>, window_params = [{transform_indices = @transform_0, window_bounds = array<i64: 1, 16, 16>}, {transform_indices = @transform_1, window_bounds = array<i64: 1, 16, 16>}]} {
    %0 = tpu.iota {dimensions = array<i32: 2>} : vector<1x1x16xi32>
    %1 = tpu.iota {dimensions = array<i32: 1>} : vector<1x16x1xi32>
    %c0 = arith.constant 0 : index
    %c0_0 = arith.constant 0 : index
    %c0_1 = arith.constant 0 : index
    %2 = vector.load %arg1[%c0, %c0_0, %c0_1] : memref<1x16x16xf32, #tpu.memory_space<vmem>>, vector<1x16x16xf32>
    %c16_i32 = arith.constant 16 : i32
    %3 = vector.broadcast %c16_i32 : i32 to vector<1x16x1xi32>
    %false = arith.constant false
    %4 = vector.broadcast %false : i1 to vector<1x1x16xi1>
    %cst = arith.constant -1.000000e+00 : f32
    %cst_2 = arith.constant 0xFF800000 : f32
    %c0_i32 = arith.constant 0 : i32
    %5 = vector.shape_cast %4 : vector<1x1x16xi1> to vector<1x1x16xi1>
    %6 = vector.broadcast %5 : vector<1x1x16xi1> to vector<1x16x16xi1>
    %7 = vector.broadcast %cst : f32 to vector<1x16x16xf32>
    %8 = arith.select %6, %7, %2 : vector<1x16x16xi1>, vector<1x16x16xf32>
    %cst_3 = arith.constant dense<0xFF800000> : vector<1x16xf32>
    %9 = vector.multi_reduction <maximumf>, %8, %cst_3 [2] : vector<1x16x16xf32> to vector<1x16xf32>
    %10 = vector.shape_cast %9 : vector<1x16xf32> to vector<1x16x1xf32>
    %11 = vector.broadcast %10 : vector<1x16x1xf32> to vector<1x16x16xf32>
    %12 = arith.cmpf oeq, %8, %11 : vector<1x16x16xf32>
    %c16_i32_4 = arith.constant 16 : i32
    %13 = vector.shape_cast %0 : vector<1x1x16xi32> to vector<1x1x16xi32>
    %14 = vector.broadcast %13 : vector<1x1x16xi32> to vector<1x16x16xi32>
    %15 = vector.broadcast %c16_i32_4 : i32 to vector<1x16x16xi32>
    %16 = arith.select %12, %14, %15 : vector<1x16x16xi1>, vector<1x16x16xi32>
    %cst_5 = arith.constant dense<2147483647> : vector<1x16xi32>
    %17 = vector.multi_reduction <minsi>, %16, %cst_5 [2] : vector<1x16x16xi32> to vector<1x16xi32>
    %18 = vector.shape_cast %17 : vector<1x16xi32> to vector<1x16x1xi32>
    %c16_i32_6 = arith.constant 16 : i32
    %19 = vector.broadcast %c16_i32_6 : i32 to vector<1x16x1xi32>
    %20 = arith.cmpi slt, %3, %19 : vector<1x16x1xi32>
    %21 = vector.broadcast %cst_2 : f32 to vector<1x16x1xf32>
    %22 = arith.select %20, %21, %10 : vector<1x16x1xi1>, vector<1x16x1xf32>
    %cst_7 = arith.constant dense<0xFF800000> : vector<1x1xf32>
    %23 = vector.multi_reduction <maximumf>, %22, %cst_7 [1] : vector<1x16x1xf32> to vector<1x1xf32>
    %24 = vector.shape_cast %23 : vector<1x1xf32> to vector<1x1x1xf32>
    %25 = vector.broadcast %24 : vector<1x1x1xf32> to vector<1x16x1xf32>
    %26 = arith.cmpf oeq, %22, %25 : vector<1x16x1xf32>
    %c16_i32_8 = arith.constant 16 : i32
    %27 = vector.broadcast %c16_i32_8 : i32 to vector<1x16x1xi32>
    %28 = arith.select %26, %1, %27 : vector<1x16x1xi1>, vector<1x16x1xi32>
    %cst_9 = arith.constant dense<2147483647> : vector<1x1xi32>
    %29 = vector.multi_reduction <minsi>, %28, %cst_9 [1] : vector<1x16x1xi32> to vector<1x1xi32>
    %30 = vector.shape_cast %29 : vector<1x1xi32> to vector<1x1x1xi32>
    %31 = vector.broadcast %30 : vector<1x1x1xi32> to vector<1x16x1xi32>
    %32 = arith.cmpi eq, %1, %31 : vector<1x16x1xi32>
    %c16_i32_10 = arith.constant 16 : i32
    %33 = vector.broadcast %c16_i32_10 : i32 to vector<1x16x1xi32>
    %34 = arith.select %32, %18, %33 : vector<1x16x1xi1>, vector<1x16x1xi32>
    %cst_11 = arith.constant dense<2147483647> : vector<1x1xi32>
    %35 = vector.multi_reduction <minsi>, %34, %cst_11 [1] : vector<1x16x1xi32> to vector<1x1xi32>
    %36 = vector.shape_cast %35 : vector<1x1xi32> to vector<1x1x1xi32>
    %37 = vector.broadcast %30 : vector<1x1x1xi32> to vector<1x16x1xi32>
    %38 = arith.cmpi eq, %1, %37 : vector<1x16x1xi32>
    %39 = vector.shape_cast %36 : vector<1x1x1xi32> to vector<1x1x1xi32>
    %40 = vector.broadcast %39 : vector<1x1x1xi32> to vector<1x16x1xi32>
    %41 = arith.select %38, %40, %3 : vector<1x16x1xi1>, vector<1x16x1xi32>
    %42 = vector.broadcast %36 : vector<1x1x1xi32> to vector<1x1x16xi32>
    %43 = arith.cmpi eq, %0, %42 : vector<1x1x16xi32>
    %44 = arith.ori %4, %43 : vector<1x1x16xi1>
    %c1_i32 = arith.constant 1 : i32
    %45 = vector.shape_cast %44 : vector<1x1x16xi1> to vector<1x1x16xi1>
    %46 = vector.broadcast %45 : vector<1x1x16xi1> to vector<1x16x16xi1>
    %47 = vector.broadcast %cst : f32 to vector<1x16x16xf32>
    %48 = arith.select %46, %47, %2 : vector<1x16x16xi1>, vector<1x16x16xf32>
    %cst_12 = arith.constant dense<0xFF800000> : vector<1x16xf32>
    %49 = vector.multi_reduction <maximumf>, %48, %cst_12 [2] : vector<1x16x16xf32> to vector<1x16xf32>
    %50 = vector.shape_cast %49 : vector<1x16xf32> to vector<1x16x1xf32>
    %51 = vector.broadcast %50 : vector<1x16x1xf32> to vector<1x16x16xf32>
    %52 = arith.cmpf oeq, %48, %51 : vector<1x16x16xf32>
    %c16_i32_13 = arith.constant 16 : i32
    %53 = vector.shape_cast %0 : vector<1x1x16xi32> to vector<1x1x16xi32>
    %54 = vector.broadcast %53 : vector<1x1x16xi32> to vector<1x16x16xi32>
    %55 = vector.broadcast %c16_i32_13 : i32 to vector<1x16x16xi32>
    %56 = arith.select %52, %54, %55 : vector<1x16x16xi1>, vector<1x16x16xi32>
    %cst_14 = arith.constant dense<2147483647> : vector<1x16xi32>
    %57 = vector.multi_reduction <minsi>, %56, %cst_14 [2] : vector<1x16x16xi32> to vector<1x16xi32>
    %58 = vector.shape_cast %57 : vector<1x16xi32> to vector<1x16x1xi32>
    %c16_i32_15 = arith.constant 16 : i32
    %59 = vector.broadcast %c16_i32_15 : i32 to vector<1x16x1xi32>
    %60 = arith.cmpi slt, %41, %59 : vector<1x16x1xi32>
    %61 = vector.broadcast %cst_2 : f32 to vector<1x16x1xf32>
    %62 = arith.select %60, %61, %50 : vector<1x16x1xi1>, vector<1x16x1xf32>
    %cst_16 = arith.constant dense<0xFF800000> : vector<1x1xf32>
    %63 = vector.multi_reduction <maximumf>, %62, %cst_16 [1] : vector<1x16x1xf32> to vector<1x1xf32>
    %64 = vector.shape_cast %63 : vector<1x1xf32> to vector<1x1x1xf32>
    %65 = vector.broadcast %64 : vector<1x1x1xf32> to vector<1x16x1xf32>
    %66 = arith.cmpf oeq, %62, %65 : vector<1x16x1xf32>
    %c16_i32_17 = arith.constant 16 : i32
    %67 = vector.broadcast %c16_i32_17 : i32 to vector<1x16x1xi32>
    %68 = arith.select %66, %1, %67 : vector<1x16x1xi1>, vector<1x16x1xi32>
    %cst_18 = arith.constant dense<2147483647> : vector<1x1xi32>
    %69 = vector.multi_reduction <minsi>, %68, %cst_18 [1] : vector<1x16x1xi32> to vector<1x1xi32>
    %70 = vector.shape_cast %69 : vector<1x1xi32> to vector<1x1x1xi32>
    %71 = vector.broadcast %70 : vector<1x1x1xi32> to vector<1x16x1xi32>
    %72 = arith.cmpi eq, %1, %71 : vector<1x16x1xi32>
    %c16_i32_19 = arith.constant 16 : i32
    %73 = vector.broadcast %c16_i32_19 : i32 to vector<1x16x1xi32>
    %74 = arith.select %72, %58, %73 : vector<1x16x1xi1>, vector<1x16x1xi32>
    %cst_20 = arith.constant dense<2147483647> : vector<1x1xi32>
    %75 = vector.multi_reduction <minsi>, %74, %cst_20 [1] : vector<1x16x1xi32> to vector<1x1xi32>
    %76 = vector.shape_cast %75 : vector<1x1xi32> to vector<1x1x1xi32>
    %77 = vector.broadcast %70 : vector<1x1x1xi32> to vector<1x16x1xi32>
    %78 = arith.cmpi eq, %1, %77 : vector<1x16x1xi32>
    %79 = vector.shape_cast %76 : vector<1x1x1xi32> to vector<1x1x1xi32>
    %80 = vector.broadcast %79 : vector<1x1x1xi32> to vector<1x16x1xi32>
    %81 = arith.select %78, %80, %41 : vector<1x16x1xi1>, vector<1x16x1xi32>
    %82 = vector.broadcast %76 : vector<1x1x1xi32> to vector<1x1x16xi32>
    %83 = arith.cmpi eq, %0, %82 : vector<1x1x16xi32>
    %84 = arith.ori %44, %83 : vector<1x1x16xi1>
    %c2_i32 = arith.constant 2 : i32
    %85 = vector.shape_cast %84 : vector<1x1x16xi1> to vector<1x1x16xi1>
    %86 = vector.broadcast %85 : vector<1x1x16xi1> to vector<1x16x16xi1>
    %87 = vector.broadcast %cst : f32 to vector<1x16x16xf32>
    %88 = arith.select %86, %87, %2 : vector<1x16x16xi1>, vector<1x16x16xf32>
    %cst_21 = arith.constant dense<0xFF800000> : vector<1x16xf32>
    %89 = vector.multi_reduction <maximumf>, %88, %cst_21 [2] : vector<1x16x16xf32> to vector<1x16xf32>
    %90 = vector.shape_cast %89 : vector<1x16xf32> to vector<1x16x1xf32>
    %91 = vector.broadcast %90 : vector<1x16x1xf32> to vector<1x16x16xf32>
    %92 = arith.cmpf oeq, %88, %91 : vector<1x16x16xf32>
    %c16_i32_22 = arith.constant 16 : i32
    %93 = vector.shape_cast %0 : vector<1x1x16xi32> to vector<1x1x16xi32>
    %94 = vector.broadcast %93 : vector<1x1x16xi32> to vector<1x16x16xi32>
    %95 = vector.broadcast %c16_i32_22 : i32 to vector<1x16x16xi32>
    %96 = arith.select %92, %94, %95 : vector<1x16x16xi1>, vector<1x16x16xi32>
    %cst_23 = arith.constant dense<2147483647> : vector<1x16xi32>
    %97 = vector.multi_reduction <minsi>, %96, %cst_23 [2] : vector<1x16x16xi32> to vector<1x16xi32>
    %98 = vector.shape_cast %97 : vector<1x16xi32> to vector<1x16x1xi32>
    %c16_i32_24 = arith.constant 16 : i32
    %99 = vector.broadcast %c16_i32_24 : i32 to vector<1x16x1xi32>
    %100 = arith.cmpi slt, %81, %99 : vector<1x16x1xi32>
    %101 = vector.broadcast %cst_2 : f32 to vector<1x16x1xf32>
    %102 = arith.select %100, %101, %90 : vector<1x16x1xi1>, vector<1x16x1xf32>
    %cst_25 = arith.constant dense<0xFF800000> : vector<1x1xf32>
    %103 = vector.multi_reduction <maximumf>, %102, %cst_25 [1] : vector<1x16x1xf32> to vector<1x1xf32>
    %104 = vector.shape_cast %103 : vector<1x1xf32> to vector<1x1x1xf32>
    %105 = vector.broadcast %104 : vector<1x1x1xf32> to vector<1x16x1xf32>
    %106 = arith.cmpf oeq, %102, %105 : vector<1x16x1xf32>
    %c16_i32_26 = arith.constant 16 : i32
    %107 = vector.broadcast %c16_i32_26 : i32 to vector<1x16x1xi32>
    %108 = arith.select %106, %1, %107 : vector<1x16x1xi1>, vector<1x16x1xi32>
    %cst_27 = arith.constant dense<2147483647> : vector<1x1xi32>
    %109 = vector.multi_reduction <minsi>, %108, %cst_27 [1] : vector<1x16x1xi32> to vector<1x1xi32>
    %110 = vector.shape_cast %109 : vector<1x1xi32> to vector<1x1x1xi32>
    %111 = vector.broadcast %110 : vector<1x1x1xi32> to vector<1x16x1xi32>
    %112 = arith.cmpi eq, %1, %111 : vector<1x16x1xi32>
    %c16_i32_28 = arith.constant 16 : i32
    %113 = vector.broadcast %c16_i32_28 : i32 to vector<1x16x1xi32>
    %114 = arith.select %112, %98, %113 : vector<1x16x1xi1>, vector<1x16x1xi32>
    %cst_29 = arith.constant dense<2147483647> : vector<1x1xi32>
    %115 = vector.multi_reduction <minsi>, %114, %cst_29 [1] : vector<1x16x1xi32> to vector<1x1xi32>
    %116 = vector.shape_cast %115 : vector<1x1xi32> to vector<1x1x1xi32>
    %117 = vector.broadcast %110 : vector<1x1x1xi32> to vector<1x16x1xi32>
    %118 = arith.cmpi eq, %1, %117 : vector<1x16x1xi32>
    %119 = vector.shape_cast %116 : vector<1x1x1xi32> to vector<1x1x1xi32>
    %120 = vector.broadcast %119 : vector<1x1x1xi32> to vector<1x16x1xi32>
    %121 = arith.select %118, %120, %81 : vector<1x16x1xi1>, vector<1x16x1xi32>
    %122 = vector.broadcast %116 : vector<1x1x1xi32> to vector<1x1x16xi32>
    %123 = arith.cmpi eq, %0, %122 : vector<1x1x16xi32>
    %124 = arith.ori %84, %123 : vector<1x1x16xi1>
    %c3_i32 = arith.constant 3 : i32
    %125 = vector.shape_cast %124 : vector<1x1x16xi1> to vector<1x1x16xi1>
    %126 = vector.broadcast %125 : vector<1x1x16xi1> to vector<1x16x16xi1>
    %127 = vector.broadcast %cst : f32 to vector<1x16x16xf32>
    %128 = arith.select %126, %127, %2 : vector<1x16x16xi1>, vector<1x16x16xf32>
    %cst_30 = arith.constant dense<0xFF800000> : vector<1x16xf32>
    %129 = vector.multi_reduction <maximumf>, %128, %cst_30 [2] : vector<1x16x16xf32> to vector<1x16xf32>
    %130 = vector.shape_cast %129 : vector<1x16xf32> to vector<1x16x1xf32>
    %131 = vector.broadcast %130 : vector<1x16x1xf32> to vector<1x16x16xf32>
    %132 = arith.cmpf oeq, %128, %131 : vector<1x16x16xf32>
    %c16_i32_31 = arith.constant 16 : i32
    %133 = vector.shape_cast %0 : vector<1x1x16xi32> to vector<1x1x16xi32>
    %134 = vector.broadcast %133 : vector<1x1x16xi32> to vector<1x16x16xi32>
    %135 = vector.broadcast %c16_i32_31 : i32 to vector<1x16x16xi32>
    %136 = arith.select %132, %134, %135 : vector<1x16x16xi1>, vector<1x16x16xi32>
    %cst_32 = arith.constant dense<2147483647> : vector<1x16xi32>
    %137 = vector.multi_reduction <minsi>, %136, %cst_32 [2] : vector<1x16x16xi32> to vector<1x16xi32>
    %138 = vector.shape_cast %137 : vector<1x16xi32> to vector<1x16x1xi32>
    %c16_i32_33 = arith.constant 16 : i32
    %139 = vector.broadcast %c16_i32_33 : i32 to vector<1x16x1xi32>
    %140 = arith.cmpi slt, %121, %139 : vector<1x16x1xi32>
    %141 = vector.broadcast %cst_2 : f32 to vector<1x16x1xf32>
    %142 = arith.select %140, %141, %130 : vector<1x16x1xi1>, vector<1x16x1xf32>
    %cst_34 = arith.constant dense<0xFF800000> : vector<1x1xf32>
    %143 = vector.multi_reduction <maximumf>, %142, %cst_34 [1] : vector<1x16x1xf32> to vector<1x1xf32>
    %144 = vector.shape_cast %143 : vector<1x1xf32> to vector<1x1x1xf32>
    %145 = vector.broadcast %144 : vector<1x1x1xf32> to vector<1x16x1xf32>
    %146 = arith.cmpf oeq, %142, %145 : vector<1x16x1xf32>
    %c16_i32_35 = arith.constant 16 : i32
    %147 = vector.broadcast %c16_i32_35 : i32 to vector<1x16x1xi32>
    %148 = arith.select %146, %1, %147 : vector<1x16x1xi1>, vector<1x16x1xi32>
    %cst_36 = arith.constant dense<2147483647> : vector<1x1xi32>
    %149 = vector.multi_reduction <minsi>, %148, %cst_36 [1] : vector<1x16x1xi32> to vector<1x1xi32>
    %150 = vector.shape_cast %149 : vector<1x1xi32> to vector<1x1x1xi32>
    %151 = vector.broadcast %150 : vector<1x1x1xi32> to vector<1x16x1xi32>
    %152 = arith.cmpi eq, %1, %151 : vector<1x16x1xi32>
    %c16_i32_37 = arith.constant 16 : i32
    %153 = vector.broadcast %c16_i32_37 : i32 to vector<1x16x1xi32>
    %154 = arith.select %152, %138, %153 : vector<1x16x1xi1>, vector<1x16x1xi32>
    %cst_38 = arith.constant dense<2147483647> : vector<1x1xi32>
    %155 = vector.multi_reduction <minsi>, %154, %cst_38 [1] : vector<1x16x1xi32> to vector<1x1xi32>
    %156 = vector.shape_cast %155 : vector<1x1xi32> to vector<1x1x1xi32>
    %157 = vector.broadcast %150 : vector<1x1x1xi32> to vector<1x16x1xi32>
    %158 = arith.cmpi eq, %1, %157 : vector<1x16x1xi32>
    %159 = vector.shape_cast %156 : vector<1x1x1xi32> to vector<1x1x1xi32>
    %160 = vector.broadcast %159 : vector<1x1x1xi32> to vector<1x16x1xi32>
    %161 = arith.select %158, %160, %121 : vector<1x16x1xi1>, vector<1x16x1xi32>
    %162 = vector.broadcast %156 : vector<1x1x1xi32> to vector<1x1x16xi32>
    %163 = arith.cmpi eq, %0, %162 : vector<1x1x16xi32>
    %164 = arith.ori %124, %163 : vector<1x1x16xi1>
    %c4_i32 = arith.constant 4 : i32
    %165 = vector.shape_cast %164 : vector<1x1x16xi1> to vector<1x1x16xi1>
    %166 = vector.broadcast %165 : vector<1x1x16xi1> to vector<1x16x16xi1>
    %167 = vector.broadcast %cst : f32 to vector<1x16x16xf32>
    %168 = arith.select %166, %167, %2 : vector<1x16x16xi1>, vector<1x16x16xf32>
    %cst_39 = arith.constant dense<0xFF800000> : vector<1x16xf32>
    %169 = vector.multi_reduction <maximumf>, %168, %cst_39 [2] : vector<1x16x16xf32> to vector<1x16xf32>
    %170 = vector.shape_cast %169 : vector<1x16xf32> to vector<1x16x1xf32>
    %171 = vector.broadcast %170 : vector<1x16x1xf32> to vector<1x16x16xf32>
    %172 = arith.cmpf oeq, %168, %171 : vector<1x16x16xf32>
    %c16_i32_40 = arith.constant 16 : i32
    %173 = vector.shape_cast %0 : vector<1x1x16xi32> to vector<1x1x16xi32>
    %174 = vector.broadcast %173 : vector<1x1x16xi32> to vector<1x16x16xi32>
    %175 = vector.broadcast %c16_i32_40 : i32 to vector<1x16x16xi32>
    %176 = arith.select %172, %174, %175 : vector<1x16x16xi1>, vector<1x16x16xi32>
    %cst_41 = arith.constant dense<2147483647> : vector<1x16xi32>
    %177 = vector.multi_reduction <minsi>, %176, %cst_41 [2] : vector<1x16x16xi32> to vector<1x16xi32>
    %178 = vector.shape_cast %177 : vector<1x16xi32> to vector<1x16x1xi32>
    %c16_i32_42 = arith.constant 16 : i32
    %179 = vector.broadcast %c16_i32_42 : i32 to vector<1x16x1xi32>
    %180 = arith.cmpi slt, %161, %179 : vector<1x16x1xi32>
    %181 = vector.broadcast %cst_2 : f32 to vector<1x16x1xf32>
    %182 = arith.select %180, %181, %170 : vector<1x16x1xi1>, vector<1x16x1xf32>
    %cst_43 = arith.constant dense<0xFF800000> : vector<1x1xf32>
    %183 = vector.multi_reduction <maximumf>, %182, %cst_43 [1] : vector<1x16x1xf32> to vector<1x1xf32>
    %184 = vector.shape_cast %183 : vector<1x1xf32> to vector<1x1x1xf32>
    %185 = vector.broadcast %184 : vector<1x1x1xf32> to vector<1x16x1xf32>
    %186 = arith.cmpf oeq, %182, %185 : vector<1x16x1xf32>
    %c16_i32_44 = arith.constant 16 : i32
    %187 = vector.broadcast %c16_i32_44 : i32 to vector<1x16x1xi32>
    %188 = arith.select %186, %1, %187 : vector<1x16x1xi1>, vector<1x16x1xi32>
    %cst_45 = arith.constant dense<2147483647> : vector<1x1xi32>
    %189 = vector.multi_reduction <minsi>, %188, %cst_45 [1] : vector<1x16x1xi32> to vector<1x1xi32>
    %190 = vector.shape_cast %189 : vector<1x1xi32> to vector<1x1x1xi32>
    %191 = vector.broadcast %190 : vector<1x1x1xi32> to vector<1x16x1xi32>
    %192 = arith.cmpi eq, %1, %191 : vector<1x16x1xi32>
    %c16_i32_46 = arith.constant 16 : i32
    %193 = vector.broadcast %c16_i32_46 : i32 to vector<1x16x1xi32>
    %194 = arith.select %192, %178, %193 : vector<1x16x1xi1>, vector<1x16x1xi32>
    %cst_47 = arith.constant dense<2147483647> : vector<1x1xi32>
    %195 = vector.multi_reduction <minsi>, %194, %cst_47 [1] : vector<1x16x1xi32> to vector<1x1xi32>
    %196 = vector.shape_cast %195 : vector<1x1xi32> to vector<1x1x1xi32>
    %197 = vector.broadcast %190 : vector<1x1x1xi32> to vector<1x16x1xi32>
    %198 = arith.cmpi eq, %1, %197 : vector<1x16x1xi32>
    %199 = vector.shape_cast %196 : vector<1x1x1xi32> to vector<1x1x1xi32>
    %200 = vector.broadcast %199 : vector<1x1x1xi32> to vector<1x16x1xi32>
    %201 = arith.select %198, %200, %161 : vector<1x16x1xi1>, vector<1x16x1xi32>
    %202 = vector.broadcast %196 : vector<1x1x1xi32> to vector<1x1x16xi32>
    %203 = arith.cmpi eq, %0, %202 : vector<1x1x16xi32>
    %204 = arith.ori %164, %203 : vector<1x1x16xi1>
    %c5_i32 = arith.constant 5 : i32
    %205 = vector.shape_cast %204 : vector<1x1x16xi1> to vector<1x1x16xi1>
    %206 = vector.broadcast %205 : vector<1x1x16xi1> to vector<1x16x16xi1>
    %207 = vector.broadcast %cst : f32 to vector<1x16x16xf32>
    %208 = arith.select %206, %207, %2 : vector<1x16x16xi1>, vector<1x16x16xf32>
    %cst_48 = arith.constant dense<0xFF800000> : vector<1x16xf32>
    %209 = vector.multi_reduction <maximumf>, %208, %cst_48 [2] : vector<1x16x16xf32> to vector<1x16xf32>
    %210 = vector.shape_cast %209 : vector<1x16xf32> to vector<1x16x1xf32>
    %211 = vector.broadcast %210 : vector<1x16x1xf32> to vector<1x16x16xf32>
    %212 = arith.cmpf oeq, %208, %211 : vector<1x16x16xf32>
    %c16_i32_49 = arith.constant 16 : i32
    %213 = vector.shape_cast %0 : vector<1x1x16xi32> to vector<1x1x16xi32>
    %214 = vector.broadcast %213 : vector<1x1x16xi32> to vector<1x16x16xi32>
    %215 = vector.broadcast %c16_i32_49 : i32 to vector<1x16x16xi32>
    %216 = arith.select %212, %214, %215 : vector<1x16x16xi1>, vector<1x16x16xi32>
    %cst_50 = arith.constant dense<2147483647> : vector<1x16xi32>
    %217 = vector.multi_reduction <minsi>, %216, %cst_50 [2] : vector<1x16x16xi32> to vector<1x16xi32>
    %218 = vector.shape_cast %217 : vector<1x16xi32> to vector<1x16x1xi32>
    %c16_i32_51 = arith.constant 16 : i32
    %219 = vector.broadcast %c16_i32_51 : i32 to vector<1x16x1xi32>
    %220 = arith.cmpi slt, %201, %219 : vector<1x16x1xi32>
    %221 = vector.broadcast %cst_2 : f32 to vector<1x16x1xf32>
    %222 = arith.select %220, %221, %210 : vector<1x16x1xi1>, vector<1x16x1xf32>
    %cst_52 = arith.constant dense<0xFF800000> : vector<1x1xf32>
    %223 = vector.multi_reduction <maximumf>, %222, %cst_52 [1] : vector<1x16x1xf32> to vector<1x1xf32>
    %224 = vector.shape_cast %223 : vector<1x1xf32> to vector<1x1x1xf32>
    %225 = vector.broadcast %224 : vector<1x1x1xf32> to vector<1x16x1xf32>
    %226 = arith.cmpf oeq, %222, %225 : vector<1x16x1xf32>
    %c16_i32_53 = arith.constant 16 : i32
    %227 = vector.broadcast %c16_i32_53 : i32 to vector<1x16x1xi32>
    %228 = arith.select %226, %1, %227 : vector<1x16x1xi1>, vector<1x16x1xi32>
    %cst_54 = arith.constant dense<2147483647> : vector<1x1xi32>
    %229 = vector.multi_reduction <minsi>, %228, %cst_54 [1] : vector<1x16x1xi32> to vector<1x1xi32>
    %230 = vector.shape_cast %229 : vector<1x1xi32> to vector<1x1x1xi32>
    %231 = vector.broadcast %230 : vector<1x1x1xi32> to vector<1x16x1xi32>
    %232 = arith.cmpi eq, %1, %231 : vector<1x16x1xi32>
    %c16_i32_55 = arith.constant 16 : i32
    %233 = vector.broadcast %c16_i32_55 : i32 to vector<1x16x1xi32>
    %234 = arith.select %232, %218, %233 : vector<1x16x1xi1>, vector<1x16x1xi32>
    %cst_56 = arith.constant dense<2147483647> : vector<1x1xi32>
    %235 = vector.multi_reduction <minsi>, %234, %cst_56 [1] : vector<1x16x1xi32> to vector<1x1xi32>
    %236 = vector.shape_cast %235 : vector<1x1xi32> to vector<1x1x1xi32>
    %237 = vector.broadcast %230 : vector<1x1x1xi32> to vector<1x16x1xi32>
    %238 = arith.cmpi eq, %1, %237 : vector<1x16x1xi32>
    %239 = vector.shape_cast %236 : vector<1x1x1xi32> to vector<1x1x1xi32>
    %240 = vector.broadcast %239 : vector<1x1x1xi32> to vector<1x16x1xi32>
    %241 = arith.select %238, %240, %201 : vector<1x16x1xi1>, vector<1x16x1xi32>
    %242 = vector.broadcast %236 : vector<1x1x1xi32> to vector<1x1x16xi32>
    %243 = arith.cmpi eq, %0, %242 : vector<1x1x16xi32>
    %244 = arith.ori %204, %243 : vector<1x1x16xi1>
    %c6_i32 = arith.constant 6 : i32
    %245 = vector.shape_cast %244 : vector<1x1x16xi1> to vector<1x1x16xi1>
    %246 = vector.broadcast %245 : vector<1x1x16xi1> to vector<1x16x16xi1>
    %247 = vector.broadcast %cst : f32 to vector<1x16x16xf32>
    %248 = arith.select %246, %247, %2 : vector<1x16x16xi1>, vector<1x16x16xf32>
    %cst_57 = arith.constant dense<0xFF800000> : vector<1x16xf32>
    %249 = vector.multi_reduction <maximumf>, %248, %cst_57 [2] : vector<1x16x16xf32> to vector<1x16xf32>
    %250 = vector.shape_cast %249 : vector<1x16xf32> to vector<1x16x1xf32>
    %251 = vector.broadcast %250 : vector<1x16x1xf32> to vector<1x16x16xf32>
    %252 = arith.cmpf oeq, %248, %251 : vector<1x16x16xf32>
    %c16_i32_58 = arith.constant 16 : i32
    %253 = vector.shape_cast %0 : vector<1x1x16xi32> to vector<1x1x16xi32>
    %254 = vector.broadcast %253 : vector<1x1x16xi32> to vector<1x16x16xi32>
    %255 = vector.broadcast %c16_i32_58 : i32 to vector<1x16x16xi32>
    %256 = arith.select %252, %254, %255 : vector<1x16x16xi1>, vector<1x16x16xi32>
    %cst_59 = arith.constant dense<2147483647> : vector<1x16xi32>
    %257 = vector.multi_reduction <minsi>, %256, %cst_59 [2] : vector<1x16x16xi32> to vector<1x16xi32>
    %258 = vector.shape_cast %257 : vector<1x16xi32> to vector<1x16x1xi32>
    %c16_i32_60 = arith.constant 16 : i32
    %259 = vector.broadcast %c16_i32_60 : i32 to vector<1x16x1xi32>
    %260 = arith.cmpi slt, %241, %259 : vector<1x16x1xi32>
    %261 = vector.broadcast %cst_2 : f32 to vector<1x16x1xf32>
    %262 = arith.select %260, %261, %250 : vector<1x16x1xi1>, vector<1x16x1xf32>
    %cst_61 = arith.constant dense<0xFF800000> : vector<1x1xf32>
    %263 = vector.multi_reduction <maximumf>, %262, %cst_61 [1] : vector<1x16x1xf32> to vector<1x1xf32>
    %264 = vector.shape_cast %263 : vector<1x1xf32> to vector<1x1x1xf32>
    %265 = vector.broadcast %264 : vector<1x1x1xf32> to vector<1x16x1xf32>
    %266 = arith.cmpf oeq, %262, %265 : vector<1x16x1xf32>
    %c16_i32_62 = arith.constant 16 : i32
    %267 = vector.broadcast %c16_i32_62 : i32 to vector<1x16x1xi32>
    %268 = arith.select %266, %1, %267 : vector<1x16x1xi1>, vector<1x16x1xi32>
    %cst_63 = arith.constant dense<2147483647> : vector<1x1xi32>
    %269 = vector.multi_reduction <minsi>, %268, %cst_63 [1] : vector<1x16x1xi32> to vector<1x1xi32>
    %270 = vector.shape_cast %269 : vector<1x1xi32> to vector<1x1x1xi32>
    %271 = vector.broadcast %270 : vector<1x1x1xi32> to vector<1x16x1xi32>
    %272 = arith.cmpi eq, %1, %271 : vector<1x16x1xi32>
    %c16_i32_64 = arith.constant 16 : i32
    %273 = vector.broadcast %c16_i32_64 : i32 to vector<1x16x1xi32>
    %274 = arith.select %272, %258, %273 : vector<1x16x1xi1>, vector<1x16x1xi32>
    %cst_65 = arith.constant dense<2147483647> : vector<1x1xi32>
    %275 = vector.multi_reduction <minsi>, %274, %cst_65 [1] : vector<1x16x1xi32> to vector<1x1xi32>
    %276 = vector.shape_cast %275 : vector<1x1xi32> to vector<1x1x1xi32>
    %277 = vector.broadcast %270 : vector<1x1x1xi32> to vector<1x16x1xi32>
    %278 = arith.cmpi eq, %1, %277 : vector<1x16x1xi32>
    %279 = vector.shape_cast %276 : vector<1x1x1xi32> to vector<1x1x1xi32>
    %280 = vector.broadcast %279 : vector<1x1x1xi32> to vector<1x16x1xi32>
    %281 = arith.select %278, %280, %241 : vector<1x16x1xi1>, vector<1x16x1xi32>
    %282 = vector.broadcast %276 : vector<1x1x1xi32> to vector<1x1x16xi32>
    %283 = arith.cmpi eq, %0, %282 : vector<1x1x16xi32>
    %284 = arith.ori %244, %283 : vector<1x1x16xi1>
    %c7_i32 = arith.constant 7 : i32
    %285 = vector.shape_cast %284 : vector<1x1x16xi1> to vector<1x1x16xi1>
    %286 = vector.broadcast %285 : vector<1x1x16xi1> to vector<1x16x16xi1>
    %287 = vector.broadcast %cst : f32 to vector<1x16x16xf32>
    %288 = arith.select %286, %287, %2 : vector<1x16x16xi1>, vector<1x16x16xf32>
    %cst_66 = arith.constant dense<0xFF800000> : vector<1x16xf32>
    %289 = vector.multi_reduction <maximumf>, %288, %cst_66 [2] : vector<1x16x16xf32> to vector<1x16xf32>
    %290 = vector.shape_cast %289 : vector<1x16xf32> to vector<1x16x1xf32>
    %291 = vector.broadcast %290 : vector<1x16x1xf32> to vector<1x16x16xf32>
    %292 = arith.cmpf oeq, %288, %291 : vector<1x16x16xf32>
    %c16_i32_67 = arith.constant 16 : i32
    %293 = vector.shape_cast %0 : vector<1x1x16xi32> to vector<1x1x16xi32>
    %294 = vector.broadcast %293 : vector<1x1x16xi32> to vector<1x16x16xi32>
    %295 = vector.broadcast %c16_i32_67 : i32 to vector<1x16x16xi32>
    %296 = arith.select %292, %294, %295 : vector<1x16x16xi1>, vector<1x16x16xi32>
    %cst_68 = arith.constant dense<2147483647> : vector<1x16xi32>
    %297 = vector.multi_reduction <minsi>, %296, %cst_68 [2] : vector<1x16x16xi32> to vector<1x16xi32>
    %298 = vector.shape_cast %297 : vector<1x16xi32> to vector<1x16x1xi32>
    %c16_i32_69 = arith.constant 16 : i32
    %299 = vector.broadcast %c16_i32_69 : i32 to vector<1x16x1xi32>
    %300 = arith.cmpi slt, %281, %299 : vector<1x16x1xi32>
    %301 = vector.broadcast %cst_2 : f32 to vector<1x16x1xf32>
    %302 = arith.select %300, %301, %290 : vector<1x16x1xi1>, vector<1x16x1xf32>
    %cst_70 = arith.constant dense<0xFF800000> : vector<1x1xf32>
    %303 = vector.multi_reduction <maximumf>, %302, %cst_70 [1] : vector<1x16x1xf32> to vector<1x1xf32>
    %304 = vector.shape_cast %303 : vector<1x1xf32> to vector<1x1x1xf32>
    %305 = vector.broadcast %304 : vector<1x1x1xf32> to vector<1x16x1xf32>
    %306 = arith.cmpf oeq, %302, %305 : vector<1x16x1xf32>
    %c16_i32_71 = arith.constant 16 : i32
    %307 = vector.broadcast %c16_i32_71 : i32 to vector<1x16x1xi32>
    %308 = arith.select %306, %1, %307 : vector<1x16x1xi1>, vector<1x16x1xi32>
    %cst_72 = arith.constant dense<2147483647> : vector<1x1xi32>
    %309 = vector.multi_reduction <minsi>, %308, %cst_72 [1] : vector<1x16x1xi32> to vector<1x1xi32>
    %310 = vector.shape_cast %309 : vector<1x1xi32> to vector<1x1x1xi32>
    %311 = vector.broadcast %310 : vector<1x1x1xi32> to vector<1x16x1xi32>
    %312 = arith.cmpi eq, %1, %311 : vector<1x16x1xi32>
    %c16_i32_73 = arith.constant 16 : i32
    %313 = vector.broadcast %c16_i32_73 : i32 to vector<1x16x1xi32>
    %314 = arith.select %312, %298, %313 : vector<1x16x1xi1>, vector<1x16x1xi32>
    %cst_74 = arith.constant dense<2147483647> : vector<1x1xi32>
    %315 = vector.multi_reduction <minsi>, %314, %cst_74 [1] : vector<1x16x1xi32> to vector<1x1xi32>
    %316 = vector.shape_cast %315 : vector<1x1xi32> to vector<1x1x1xi32>
    %317 = vector.broadcast %310 : vector<1x1x1xi32> to vector<1x16x1xi32>
    %318 = arith.cmpi eq, %1, %317 : vector<1x16x1xi32>
    %319 = vector.shape_cast %316 : vector<1x1x1xi32> to vector<1x1x1xi32>
    %320 = vector.broadcast %319 : vector<1x1x1xi32> to vector<1x16x1xi32>
    %321 = arith.select %318, %320, %281 : vector<1x16x1xi1>, vector<1x16x1xi32>
    %322 = vector.broadcast %316 : vector<1x1x1xi32> to vector<1x1x16xi32>
    %323 = arith.cmpi eq, %0, %322 : vector<1x1x16xi32>
    %324 = arith.ori %284, %323 : vector<1x1x16xi1>
    %c8_i32 = arith.constant 8 : i32
    %325 = vector.shape_cast %324 : vector<1x1x16xi1> to vector<1x1x16xi1>
    %326 = vector.broadcast %325 : vector<1x1x16xi1> to vector<1x16x16xi1>
    %327 = vector.broadcast %cst : f32 to vector<1x16x16xf32>
    %328 = arith.select %326, %327, %2 : vector<1x16x16xi1>, vector<1x16x16xf32>
    %cst_75 = arith.constant dense<0xFF800000> : vector<1x16xf32>
    %329 = vector.multi_reduction <maximumf>, %328, %cst_75 [2] : vector<1x16x16xf32> to vector<1x16xf32>
    %330 = vector.shape_cast %329 : vector<1x16xf32> to vector<1x16x1xf32>
    %331 = vector.broadcast %330 : vector<1x16x1xf32> to vector<1x16x16xf32>
    %332 = arith.cmpf oeq, %328, %331 : vector<1x16x16xf32>
    %c16_i32_76 = arith.constant 16 : i32
    %333 = vector.shape_cast %0 : vector<1x1x16xi32> to vector<1x1x16xi32>
    %334 = vector.broadcast %333 : vector<1x1x16xi32> to vector<1x16x16xi32>
    %335 = vector.broadcast %c16_i32_76 : i32 to vector<1x16x16xi32>
    %336 = arith.select %332, %334, %335 : vector<1x16x16xi1>, vector<1x16x16xi32>
    %cst_77 = arith.constant dense<2147483647> : vector<1x16xi32>
    %337 = vector.multi_reduction <minsi>, %336, %cst_77 [2] : vector<1x16x16xi32> to vector<1x16xi32>
    %338 = vector.shape_cast %337 : vector<1x16xi32> to vector<1x16x1xi32>
    %c16_i32_78 = arith.constant 16 : i32
    %339 = vector.broadcast %c16_i32_78 : i32 to vector<1x16x1xi32>
    %340 = arith.cmpi slt, %321, %339 : vector<1x16x1xi32>
    %341 = vector.broadcast %cst_2 : f32 to vector<1x16x1xf32>
    %342 = arith.select %340, %341, %330 : vector<1x16x1xi1>, vector<1x16x1xf32>
    %cst_79 = arith.constant dense<0xFF800000> : vector<1x1xf32>
    %343 = vector.multi_reduction <maximumf>, %342, %cst_79 [1] : vector<1x16x1xf32> to vector<1x1xf32>
    %344 = vector.shape_cast %343 : vector<1x1xf32> to vector<1x1x1xf32>
    %345 = vector.broadcast %344 : vector<1x1x1xf32> to vector<1x16x1xf32>
    %346 = arith.cmpf oeq, %342, %345 : vector<1x16x1xf32>
    %c16_i32_80 = arith.constant 16 : i32
    %347 = vector.broadcast %c16_i32_80 : i32 to vector<1x16x1xi32>
    %348 = arith.select %346, %1, %347 : vector<1x16x1xi1>, vector<1x16x1xi32>
    %cst_81 = arith.constant dense<2147483647> : vector<1x1xi32>
    %349 = vector.multi_reduction <minsi>, %348, %cst_81 [1] : vector<1x16x1xi32> to vector<1x1xi32>
    %350 = vector.shape_cast %349 : vector<1x1xi32> to vector<1x1x1xi32>
    %351 = vector.broadcast %350 : vector<1x1x1xi32> to vector<1x16x1xi32>
    %352 = arith.cmpi eq, %1, %351 : vector<1x16x1xi32>
    %c16_i32_82 = arith.constant 16 : i32
    %353 = vector.broadcast %c16_i32_82 : i32 to vector<1x16x1xi32>
    %354 = arith.select %352, %338, %353 : vector<1x16x1xi1>, vector<1x16x1xi32>
    %cst_83 = arith.constant dense<2147483647> : vector<1x1xi32>
    %355 = vector.multi_reduction <minsi>, %354, %cst_83 [1] : vector<1x16x1xi32> to vector<1x1xi32>
    %356 = vector.shape_cast %355 : vector<1x1xi32> to vector<1x1x1xi32>
    %357 = vector.broadcast %350 : vector<1x1x1xi32> to vector<1x16x1xi32>
    %358 = arith.cmpi eq, %1, %357 : vector<1x16x1xi32>
    %359 = vector.shape_cast %356 : vector<1x1x1xi32> to vector<1x1x1xi32>
    %360 = vector.broadcast %359 : vector<1x1x1xi32> to vector<1x16x1xi32>
    %361 = arith.select %358, %360, %321 : vector<1x16x1xi1>, vector<1x16x1xi32>
    %362 = vector.broadcast %356 : vector<1x1x1xi32> to vector<1x1x16xi32>
    %363 = arith.cmpi eq, %0, %362 : vector<1x1x16xi32>
    %364 = arith.ori %324, %363 : vector<1x1x16xi1>
    %c9_i32 = arith.constant 9 : i32
    %365 = vector.shape_cast %364 : vector<1x1x16xi1> to vector<1x1x16xi1>
    %366 = vector.broadcast %365 : vector<1x1x16xi1> to vector<1x16x16xi1>
    %367 = vector.broadcast %cst : f32 to vector<1x16x16xf32>
    %368 = arith.select %366, %367, %2 : vector<1x16x16xi1>, vector<1x16x16xf32>
    %cst_84 = arith.constant dense<0xFF800000> : vector<1x16xf32>
    %369 = vector.multi_reduction <maximumf>, %368, %cst_84 [2] : vector<1x16x16xf32> to vector<1x16xf32>
    %370 = vector.shape_cast %369 : vector<1x16xf32> to vector<1x16x1xf32>
    %371 = vector.broadcast %370 : vector<1x16x1xf32> to vector<1x16x16xf32>
    %372 = arith.cmpf oeq, %368, %371 : vector<1x16x16xf32>
    %c16_i32_85 = arith.constant 16 : i32
    %373 = vector.shape_cast %0 : vector<1x1x16xi32> to vector<1x1x16xi32>
    %374 = vector.broadcast %373 : vector<1x1x16xi32> to vector<1x16x16xi32>
    %375 = vector.broadcast %c16_i32_85 : i32 to vector<1x16x16xi32>
    %376 = arith.select %372, %374, %375 : vector<1x16x16xi1>, vector<1x16x16xi32>
    %cst_86 = arith.constant dense<2147483647> : vector<1x16xi32>
    %377 = vector.multi_reduction <minsi>, %376, %cst_86 [2] : vector<1x16x16xi32> to vector<1x16xi32>
    %378 = vector.shape_cast %377 : vector<1x16xi32> to vector<1x16x1xi32>
    %c16_i32_87 = arith.constant 16 : i32
    %379 = vector.broadcast %c16_i32_87 : i32 to vector<1x16x1xi32>
    %380 = arith.cmpi slt, %361, %379 : vector<1x16x1xi32>
    %381 = vector.broadcast %cst_2 : f32 to vector<1x16x1xf32>
    %382 = arith.select %380, %381, %370 : vector<1x16x1xi1>, vector<1x16x1xf32>
    %cst_88 = arith.constant dense<0xFF800000> : vector<1x1xf32>
    %383 = vector.multi_reduction <maximumf>, %382, %cst_88 [1] : vector<1x16x1xf32> to vector<1x1xf32>
    %384 = vector.shape_cast %383 : vector<1x1xf32> to vector<1x1x1xf32>
    %385 = vector.broadcast %384 : vector<1x1x1xf32> to vector<1x16x1xf32>
    %386 = arith.cmpf oeq, %382, %385 : vector<1x16x1xf32>
    %c16_i32_89 = arith.constant 16 : i32
    %387 = vector.broadcast %c16_i32_89 : i32 to vector<1x16x1xi32>
    %388 = arith.select %386, %1, %387 : vector<1x16x1xi1>, vector<1x16x1xi32>
    %cst_90 = arith.constant dense<2147483647> : vector<1x1xi32>
    %389 = vector.multi_reduction <minsi>, %388, %cst_90 [1] : vector<1x16x1xi32> to vector<1x1xi32>
    %390 = vector.shape_cast %389 : vector<1x1xi32> to vector<1x1x1xi32>
    %391 = vector.broadcast %390 : vector<1x1x1xi32> to vector<1x16x1xi32>
    %392 = arith.cmpi eq, %1, %391 : vector<1x16x1xi32>
    %c16_i32_91 = arith.constant 16 : i32
    %393 = vector.broadcast %c16_i32_91 : i32 to vector<1x16x1xi32>
    %394 = arith.select %392, %378, %393 : vector<1x16x1xi1>, vector<1x16x1xi32>
    %cst_92 = arith.constant dense<2147483647> : vector<1x1xi32>
    %395 = vector.multi_reduction <minsi>, %394, %cst_92 [1] : vector<1x16x1xi32> to vector<1x1xi32>
    %396 = vector.shape_cast %395 : vector<1x1xi32> to vector<1x1x1xi32>
    %397 = vector.broadcast %390 : vector<1x1x1xi32> to vector<1x16x1xi32>
    %398 = arith.cmpi eq, %1, %397 : vector<1x16x1xi32>
    %399 = vector.shape_cast %396 : vector<1x1x1xi32> to vector<1x1x1xi32>
    %400 = vector.broadcast %399 : vector<1x1x1xi32> to vector<1x16x1xi32>
    %401 = arith.select %398, %400, %361 : vector<1x16x1xi1>, vector<1x16x1xi32>
    %402 = vector.broadcast %396 : vector<1x1x1xi32> to vector<1x1x16xi32>
    %403 = arith.cmpi eq, %0, %402 : vector<1x1x16xi32>
    %404 = arith.ori %364, %403 : vector<1x1x16xi1>
    %c10_i32 = arith.constant 10 : i32
    %405 = vector.shape_cast %404 : vector<1x1x16xi1> to vector<1x1x16xi1>
    %406 = vector.broadcast %405 : vector<1x1x16xi1> to vector<1x16x16xi1>
    %407 = vector.broadcast %cst : f32 to vector<1x16x16xf32>
    %408 = arith.select %406, %407, %2 : vector<1x16x16xi1>, vector<1x16x16xf32>
    %cst_93 = arith.constant dense<0xFF800000> : vector<1x16xf32>
    %409 = vector.multi_reduction <maximumf>, %408, %cst_93 [2] : vector<1x16x16xf32> to vector<1x16xf32>
    %410 = vector.shape_cast %409 : vector<1x16xf32> to vector<1x16x1xf32>
    %411 = vector.broadcast %410 : vector<1x16x1xf32> to vector<1x16x16xf32>
    %412 = arith.cmpf oeq, %408, %411 : vector<1x16x16xf32>
    %c16_i32_94 = arith.constant 16 : i32
    %413 = vector.shape_cast %0 : vector<1x1x16xi32> to vector<1x1x16xi32>
    %414 = vector.broadcast %413 : vector<1x1x16xi32> to vector<1x16x16xi32>
    %415 = vector.broadcast %c16_i32_94 : i32 to vector<1x16x16xi32>
    %416 = arith.select %412, %414, %415 : vector<1x16x16xi1>, vector<1x16x16xi32>
    %cst_95 = arith.constant dense<2147483647> : vector<1x16xi32>
    %417 = vector.multi_reduction <minsi>, %416, %cst_95 [2] : vector<1x16x16xi32> to vector<1x16xi32>
    %418 = vector.shape_cast %417 : vector<1x16xi32> to vector<1x16x1xi32>
    %c16_i32_96 = arith.constant 16 : i32
    %419 = vector.broadcast %c16_i32_96 : i32 to vector<1x16x1xi32>
    %420 = arith.cmpi slt, %401, %419 : vector<1x16x1xi32>
    %421 = vector.broadcast %cst_2 : f32 to vector<1x16x1xf32>
    %422 = arith.select %420, %421, %410 : vector<1x16x1xi1>, vector<1x16x1xf32>
    %cst_97 = arith.constant dense<0xFF800000> : vector<1x1xf32>
    %423 = vector.multi_reduction <maximumf>, %422, %cst_97 [1] : vector<1x16x1xf32> to vector<1x1xf32>
    %424 = vector.shape_cast %423 : vector<1x1xf32> to vector<1x1x1xf32>
    %425 = vector.broadcast %424 : vector<1x1x1xf32> to vector<1x16x1xf32>
    %426 = arith.cmpf oeq, %422, %425 : vector<1x16x1xf32>
    %c16_i32_98 = arith.constant 16 : i32
    %427 = vector.broadcast %c16_i32_98 : i32 to vector<1x16x1xi32>
    %428 = arith.select %426, %1, %427 : vector<1x16x1xi1>, vector<1x16x1xi32>
    %cst_99 = arith.constant dense<2147483647> : vector<1x1xi32>
    %429 = vector.multi_reduction <minsi>, %428, %cst_99 [1] : vector<1x16x1xi32> to vector<1x1xi32>
    %430 = vector.shape_cast %429 : vector<1x1xi32> to vector<1x1x1xi32>
    %431 = vector.broadcast %430 : vector<1x1x1xi32> to vector<1x16x1xi32>
    %432 = arith.cmpi eq, %1, %431 : vector<1x16x1xi32>
    %c16_i32_100 = arith.constant 16 : i32
    %433 = vector.broadcast %c16_i32_100 : i32 to vector<1x16x1xi32>
    %434 = arith.select %432, %418, %433 : vector<1x16x1xi1>, vector<1x16x1xi32>
    %cst_101 = arith.constant dense<2147483647> : vector<1x1xi32>
    %435 = vector.multi_reduction <minsi>, %434, %cst_101 [1] : vector<1x16x1xi32> to vector<1x1xi32>
    %436 = vector.shape_cast %435 : vector<1x1xi32> to vector<1x1x1xi32>
    %437 = vector.broadcast %430 : vector<1x1x1xi32> to vector<1x16x1xi32>
    %438 = arith.cmpi eq, %1, %437 : vector<1x16x1xi32>
    %439 = vector.shape_cast %436 : vector<1x1x1xi32> to vector<1x1x1xi32>
    %440 = vector.broadcast %439 : vector<1x1x1xi32> to vector<1x16x1xi32>
    %441 = arith.select %438, %440, %401 : vector<1x16x1xi1>, vector<1x16x1xi32>
    %442 = vector.broadcast %436 : vector<1x1x1xi32> to vector<1x1x16xi32>
    %443 = arith.cmpi eq, %0, %442 : vector<1x1x16xi32>
    %444 = arith.ori %404, %443 : vector<1x1x16xi1>
    %c11_i32 = arith.constant 11 : i32
    %445 = vector.shape_cast %444 : vector<1x1x16xi1> to vector<1x1x16xi1>
    %446 = vector.broadcast %445 : vector<1x1x16xi1> to vector<1x16x16xi1>
    %447 = vector.broadcast %cst : f32 to vector<1x16x16xf32>
    %448 = arith.select %446, %447, %2 : vector<1x16x16xi1>, vector<1x16x16xf32>
    %cst_102 = arith.constant dense<0xFF800000> : vector<1x16xf32>
    %449 = vector.multi_reduction <maximumf>, %448, %cst_102 [2] : vector<1x16x16xf32> to vector<1x16xf32>
    %450 = vector.shape_cast %449 : vector<1x16xf32> to vector<1x16x1xf32>
    %451 = vector.broadcast %450 : vector<1x16x1xf32> to vector<1x16x16xf32>
    %452 = arith.cmpf oeq, %448, %451 : vector<1x16x16xf32>
    %c16_i32_103 = arith.constant 16 : i32
    %453 = vector.shape_cast %0 : vector<1x1x16xi32> to vector<1x1x16xi32>
    %454 = vector.broadcast %453 : vector<1x1x16xi32> to vector<1x16x16xi32>
    %455 = vector.broadcast %c16_i32_103 : i32 to vector<1x16x16xi32>
    %456 = arith.select %452, %454, %455 : vector<1x16x16xi1>, vector<1x16x16xi32>
    %cst_104 = arith.constant dense<2147483647> : vector<1x16xi32>
    %457 = vector.multi_reduction <minsi>, %456, %cst_104 [2] : vector<1x16x16xi32> to vector<1x16xi32>
    %458 = vector.shape_cast %457 : vector<1x16xi32> to vector<1x16x1xi32>
    %c16_i32_105 = arith.constant 16 : i32
    %459 = vector.broadcast %c16_i32_105 : i32 to vector<1x16x1xi32>
    %460 = arith.cmpi slt, %441, %459 : vector<1x16x1xi32>
    %461 = vector.broadcast %cst_2 : f32 to vector<1x16x1xf32>
    %462 = arith.select %460, %461, %450 : vector<1x16x1xi1>, vector<1x16x1xf32>
    %cst_106 = arith.constant dense<0xFF800000> : vector<1x1xf32>
    %463 = vector.multi_reduction <maximumf>, %462, %cst_106 [1] : vector<1x16x1xf32> to vector<1x1xf32>
    %464 = vector.shape_cast %463 : vector<1x1xf32> to vector<1x1x1xf32>
    %465 = vector.broadcast %464 : vector<1x1x1xf32> to vector<1x16x1xf32>
    %466 = arith.cmpf oeq, %462, %465 : vector<1x16x1xf32>
    %c16_i32_107 = arith.constant 16 : i32
    %467 = vector.broadcast %c16_i32_107 : i32 to vector<1x16x1xi32>
    %468 = arith.select %466, %1, %467 : vector<1x16x1xi1>, vector<1x16x1xi32>
    %cst_108 = arith.constant dense<2147483647> : vector<1x1xi32>
    %469 = vector.multi_reduction <minsi>, %468, %cst_108 [1] : vector<1x16x1xi32> to vector<1x1xi32>
    %470 = vector.shape_cast %469 : vector<1x1xi32> to vector<1x1x1xi32>
    %471 = vector.broadcast %470 : vector<1x1x1xi32> to vector<1x16x1xi32>
    %472 = arith.cmpi eq, %1, %471 : vector<1x16x1xi32>
    %c16_i32_109 = arith.constant 16 : i32
    %473 = vector.broadcast %c16_i32_109 : i32 to vector<1x16x1xi32>
    %474 = arith.select %472, %458, %473 : vector<1x16x1xi1>, vector<1x16x1xi32>
    %cst_110 = arith.constant dense<2147483647> : vector<1x1xi32>
    %475 = vector.multi_reduction <minsi>, %474, %cst_110 [1] : vector<1x16x1xi32> to vector<1x1xi32>
    %476 = vector.shape_cast %475 : vector<1x1xi32> to vector<1x1x1xi32>
    %477 = vector.broadcast %470 : vector<1x1x1xi32> to vector<1x16x1xi32>
    %478 = arith.cmpi eq, %1, %477 : vector<1x16x1xi32>
    %479 = vector.shape_cast %476 : vector<1x1x1xi32> to vector<1x1x1xi32>
    %480 = vector.broadcast %479 : vector<1x1x1xi32> to vector<1x16x1xi32>
    %481 = arith.select %478, %480, %441 : vector<1x16x1xi1>, vector<1x16x1xi32>
    %482 = vector.broadcast %476 : vector<1x1x1xi32> to vector<1x1x16xi32>
    %483 = arith.cmpi eq, %0, %482 : vector<1x1x16xi32>
    %484 = arith.ori %444, %483 : vector<1x1x16xi1>
    %c12_i32 = arith.constant 12 : i32
    %485 = vector.shape_cast %484 : vector<1x1x16xi1> to vector<1x1x16xi1>
    %486 = vector.broadcast %485 : vector<1x1x16xi1> to vector<1x16x16xi1>
    %487 = vector.broadcast %cst : f32 to vector<1x16x16xf32>
    %488 = arith.select %486, %487, %2 : vector<1x16x16xi1>, vector<1x16x16xf32>
    %cst_111 = arith.constant dense<0xFF800000> : vector<1x16xf32>
    %489 = vector.multi_reduction <maximumf>, %488, %cst_111 [2] : vector<1x16x16xf32> to vector<1x16xf32>
    %490 = vector.shape_cast %489 : vector<1x16xf32> to vector<1x16x1xf32>
    %491 = vector.broadcast %490 : vector<1x16x1xf32> to vector<1x16x16xf32>
    %492 = arith.cmpf oeq, %488, %491 : vector<1x16x16xf32>
    %c16_i32_112 = arith.constant 16 : i32
    %493 = vector.shape_cast %0 : vector<1x1x16xi32> to vector<1x1x16xi32>
    %494 = vector.broadcast %493 : vector<1x1x16xi32> to vector<1x16x16xi32>
    %495 = vector.broadcast %c16_i32_112 : i32 to vector<1x16x16xi32>
    %496 = arith.select %492, %494, %495 : vector<1x16x16xi1>, vector<1x16x16xi32>
    %cst_113 = arith.constant dense<2147483647> : vector<1x16xi32>
    %497 = vector.multi_reduction <minsi>, %496, %cst_113 [2] : vector<1x16x16xi32> to vector<1x16xi32>
    %498 = vector.shape_cast %497 : vector<1x16xi32> to vector<1x16x1xi32>
    %c16_i32_114 = arith.constant 16 : i32
    %499 = vector.broadcast %c16_i32_114 : i32 to vector<1x16x1xi32>
    %500 = arith.cmpi slt, %481, %499 : vector<1x16x1xi32>
    %501 = vector.broadcast %cst_2 : f32 to vector<1x16x1xf32>
    %502 = arith.select %500, %501, %490 : vector<1x16x1xi1>, vector<1x16x1xf32>
    %cst_115 = arith.constant dense<0xFF800000> : vector<1x1xf32>
    %503 = vector.multi_reduction <maximumf>, %502, %cst_115 [1] : vector<1x16x1xf32> to vector<1x1xf32>
    %504 = vector.shape_cast %503 : vector<1x1xf32> to vector<1x1x1xf32>
    %505 = vector.broadcast %504 : vector<1x1x1xf32> to vector<1x16x1xf32>
    %506 = arith.cmpf oeq, %502, %505 : vector<1x16x1xf32>
    %c16_i32_116 = arith.constant 16 : i32
    %507 = vector.broadcast %c16_i32_116 : i32 to vector<1x16x1xi32>
    %508 = arith.select %506, %1, %507 : vector<1x16x1xi1>, vector<1x16x1xi32>
    %cst_117 = arith.constant dense<2147483647> : vector<1x1xi32>
    %509 = vector.multi_reduction <minsi>, %508, %cst_117 [1] : vector<1x16x1xi32> to vector<1x1xi32>
    %510 = vector.shape_cast %509 : vector<1x1xi32> to vector<1x1x1xi32>
    %511 = vector.broadcast %510 : vector<1x1x1xi32> to vector<1x16x1xi32>
    %512 = arith.cmpi eq, %1, %511 : vector<1x16x1xi32>
    %c16_i32_118 = arith.constant 16 : i32
    %513 = vector.broadcast %c16_i32_118 : i32 to vector<1x16x1xi32>
    %514 = arith.select %512, %498, %513 : vector<1x16x1xi1>, vector<1x16x1xi32>
    %cst_119 = arith.constant dense<2147483647> : vector<1x1xi32>
    %515 = vector.multi_reduction <minsi>, %514, %cst_119 [1] : vector<1x16x1xi32> to vector<1x1xi32>
    %516 = vector.shape_cast %515 : vector<1x1xi32> to vector<1x1x1xi32>
    %517 = vector.broadcast %510 : vector<1x1x1xi32> to vector<1x16x1xi32>
    %518 = arith.cmpi eq, %1, %517 : vector<1x16x1xi32>
    %519 = vector.shape_cast %516 : vector<1x1x1xi32> to vector<1x1x1xi32>
    %520 = vector.broadcast %519 : vector<1x1x1xi32> to vector<1x16x1xi32>
    %521 = arith.select %518, %520, %481 : vector<1x16x1xi1>, vector<1x16x1xi32>
    %522 = vector.broadcast %516 : vector<1x1x1xi32> to vector<1x1x16xi32>
    %523 = arith.cmpi eq, %0, %522 : vector<1x1x16xi32>
    %524 = arith.ori %484, %523 : vector<1x1x16xi1>
    %c13_i32 = arith.constant 13 : i32
    %525 = vector.shape_cast %524 : vector<1x1x16xi1> to vector<1x1x16xi1>
    %526 = vector.broadcast %525 : vector<1x1x16xi1> to vector<1x16x16xi1>
    %527 = vector.broadcast %cst : f32 to vector<1x16x16xf32>
    %528 = arith.select %526, %527, %2 : vector<1x16x16xi1>, vector<1x16x16xf32>
    %cst_120 = arith.constant dense<0xFF800000> : vector<1x16xf32>
    %529 = vector.multi_reduction <maximumf>, %528, %cst_120 [2] : vector<1x16x16xf32> to vector<1x16xf32>
    %530 = vector.shape_cast %529 : vector<1x16xf32> to vector<1x16x1xf32>
    %531 = vector.broadcast %530 : vector<1x16x1xf32> to vector<1x16x16xf32>
    %532 = arith.cmpf oeq, %528, %531 : vector<1x16x16xf32>
    %c16_i32_121 = arith.constant 16 : i32
    %533 = vector.shape_cast %0 : vector<1x1x16xi32> to vector<1x1x16xi32>
    %534 = vector.broadcast %533 : vector<1x1x16xi32> to vector<1x16x16xi32>
    %535 = vector.broadcast %c16_i32_121 : i32 to vector<1x16x16xi32>
    %536 = arith.select %532, %534, %535 : vector<1x16x16xi1>, vector<1x16x16xi32>
    %cst_122 = arith.constant dense<2147483647> : vector<1x16xi32>
    %537 = vector.multi_reduction <minsi>, %536, %cst_122 [2] : vector<1x16x16xi32> to vector<1x16xi32>
    %538 = vector.shape_cast %537 : vector<1x16xi32> to vector<1x16x1xi32>
    %c16_i32_123 = arith.constant 16 : i32
    %539 = vector.broadcast %c16_i32_123 : i32 to vector<1x16x1xi32>
    %540 = arith.cmpi slt, %521, %539 : vector<1x16x1xi32>
    %541 = vector.broadcast %cst_2 : f32 to vector<1x16x1xf32>
    %542 = arith.select %540, %541, %530 : vector<1x16x1xi1>, vector<1x16x1xf32>
    %cst_124 = arith.constant dense<0xFF800000> : vector<1x1xf32>
    %543 = vector.multi_reduction <maximumf>, %542, %cst_124 [1] : vector<1x16x1xf32> to vector<1x1xf32>
    %544 = vector.shape_cast %543 : vector<1x1xf32> to vector<1x1x1xf32>
    %545 = vector.broadcast %544 : vector<1x1x1xf32> to vector<1x16x1xf32>
    %546 = arith.cmpf oeq, %542, %545 : vector<1x16x1xf32>
    %c16_i32_125 = arith.constant 16 : i32
    %547 = vector.broadcast %c16_i32_125 : i32 to vector<1x16x1xi32>
    %548 = arith.select %546, %1, %547 : vector<1x16x1xi1>, vector<1x16x1xi32>
    %cst_126 = arith.constant dense<2147483647> : vector<1x1xi32>
    %549 = vector.multi_reduction <minsi>, %548, %cst_126 [1] : vector<1x16x1xi32> to vector<1x1xi32>
    %550 = vector.shape_cast %549 : vector<1x1xi32> to vector<1x1x1xi32>
    %551 = vector.broadcast %550 : vector<1x1x1xi32> to vector<1x16x1xi32>
    %552 = arith.cmpi eq, %1, %551 : vector<1x16x1xi32>
    %c16_i32_127 = arith.constant 16 : i32
    %553 = vector.broadcast %c16_i32_127 : i32 to vector<1x16x1xi32>
    %554 = arith.select %552, %538, %553 : vector<1x16x1xi1>, vector<1x16x1xi32>
    %cst_128 = arith.constant dense<2147483647> : vector<1x1xi32>
    %555 = vector.multi_reduction <minsi>, %554, %cst_128 [1] : vector<1x16x1xi32> to vector<1x1xi32>
    %556 = vector.shape_cast %555 : vector<1x1xi32> to vector<1x1x1xi32>
    %557 = vector.broadcast %550 : vector<1x1x1xi32> to vector<1x16x1xi32>
    %558 = arith.cmpi eq, %1, %557 : vector<1x16x1xi32>
    %559 = vector.shape_cast %556 : vector<1x1x1xi32> to vector<1x1x1xi32>
    %560 = vector.broadcast %559 : vector<1x1x1xi32> to vector<1x16x1xi32>
    %561 = arith.select %558, %560, %521 : vector<1x16x1xi1>, vector<1x16x1xi32>
    %562 = vector.broadcast %556 : vector<1x1x1xi32> to vector<1x1x16xi32>
    %563 = arith.cmpi eq, %0, %562 : vector<1x1x16xi32>
    %564 = arith.ori %524, %563 : vector<1x1x16xi1>
    %c14_i32 = arith.constant 14 : i32
    %565 = vector.shape_cast %564 : vector<1x1x16xi1> to vector<1x1x16xi1>
    %566 = vector.broadcast %565 : vector<1x1x16xi1> to vector<1x16x16xi1>
    %567 = vector.broadcast %cst : f32 to vector<1x16x16xf32>
    %568 = arith.select %566, %567, %2 : vector<1x16x16xi1>, vector<1x16x16xf32>
    %cst_129 = arith.constant dense<0xFF800000> : vector<1x16xf32>
    %569 = vector.multi_reduction <maximumf>, %568, %cst_129 [2] : vector<1x16x16xf32> to vector<1x16xf32>
    %570 = vector.shape_cast %569 : vector<1x16xf32> to vector<1x16x1xf32>
    %571 = vector.broadcast %570 : vector<1x16x1xf32> to vector<1x16x16xf32>
    %572 = arith.cmpf oeq, %568, %571 : vector<1x16x16xf32>
    %c16_i32_130 = arith.constant 16 : i32
    %573 = vector.shape_cast %0 : vector<1x1x16xi32> to vector<1x1x16xi32>
    %574 = vector.broadcast %573 : vector<1x1x16xi32> to vector<1x16x16xi32>
    %575 = vector.broadcast %c16_i32_130 : i32 to vector<1x16x16xi32>
    %576 = arith.select %572, %574, %575 : vector<1x16x16xi1>, vector<1x16x16xi32>
    %cst_131 = arith.constant dense<2147483647> : vector<1x16xi32>
    %577 = vector.multi_reduction <minsi>, %576, %cst_131 [2] : vector<1x16x16xi32> to vector<1x16xi32>
    %578 = vector.shape_cast %577 : vector<1x16xi32> to vector<1x16x1xi32>
    %c16_i32_132 = arith.constant 16 : i32
    %579 = vector.broadcast %c16_i32_132 : i32 to vector<1x16x1xi32>
    %580 = arith.cmpi slt, %561, %579 : vector<1x16x1xi32>
    %581 = vector.broadcast %cst_2 : f32 to vector<1x16x1xf32>
    %582 = arith.select %580, %581, %570 : vector<1x16x1xi1>, vector<1x16x1xf32>
    %cst_133 = arith.constant dense<0xFF800000> : vector<1x1xf32>
    %583 = vector.multi_reduction <maximumf>, %582, %cst_133 [1] : vector<1x16x1xf32> to vector<1x1xf32>
    %584 = vector.shape_cast %583 : vector<1x1xf32> to vector<1x1x1xf32>
    %585 = vector.broadcast %584 : vector<1x1x1xf32> to vector<1x16x1xf32>
    %586 = arith.cmpf oeq, %582, %585 : vector<1x16x1xf32>
    %c16_i32_134 = arith.constant 16 : i32
    %587 = vector.broadcast %c16_i32_134 : i32 to vector<1x16x1xi32>
    %588 = arith.select %586, %1, %587 : vector<1x16x1xi1>, vector<1x16x1xi32>
    %cst_135 = arith.constant dense<2147483647> : vector<1x1xi32>
    %589 = vector.multi_reduction <minsi>, %588, %cst_135 [1] : vector<1x16x1xi32> to vector<1x1xi32>
    %590 = vector.shape_cast %589 : vector<1x1xi32> to vector<1x1x1xi32>
    %591 = vector.broadcast %590 : vector<1x1x1xi32> to vector<1x16x1xi32>
    %592 = arith.cmpi eq, %1, %591 : vector<1x16x1xi32>
    %c16_i32_136 = arith.constant 16 : i32
    %593 = vector.broadcast %c16_i32_136 : i32 to vector<1x16x1xi32>
    %594 = arith.select %592, %578, %593 : vector<1x16x1xi1>, vector<1x16x1xi32>
    %cst_137 = arith.constant dense<2147483647> : vector<1x1xi32>
    %595 = vector.multi_reduction <minsi>, %594, %cst_137 [1] : vector<1x16x1xi32> to vector<1x1xi32>
    %596 = vector.shape_cast %595 : vector<1x1xi32> to vector<1x1x1xi32>
    %597 = vector.broadcast %590 : vector<1x1x1xi32> to vector<1x16x1xi32>
    %598 = arith.cmpi eq, %1, %597 : vector<1x16x1xi32>
    %599 = vector.shape_cast %596 : vector<1x1x1xi32> to vector<1x1x1xi32>
    %600 = vector.broadcast %599 : vector<1x1x1xi32> to vector<1x16x1xi32>
    %601 = arith.select %598, %600, %561 : vector<1x16x1xi1>, vector<1x16x1xi32>
    %602 = vector.broadcast %596 : vector<1x1x1xi32> to vector<1x1x16xi32>
    %603 = arith.cmpi eq, %0, %602 : vector<1x1x16xi32>
    %604 = arith.ori %564, %603 : vector<1x1x16xi1>
    %c15_i32 = arith.constant 15 : i32
    %605 = vector.shape_cast %604 : vector<1x1x16xi1> to vector<1x1x16xi1>
    %606 = vector.broadcast %605 : vector<1x1x16xi1> to vector<1x16x16xi1>
    %607 = vector.broadcast %cst : f32 to vector<1x16x16xf32>
    %608 = arith.select %606, %607, %2 : vector<1x16x16xi1>, vector<1x16x16xf32>
    %cst_138 = arith.constant dense<0xFF800000> : vector<1x16xf32>
    %609 = vector.multi_reduction <maximumf>, %608, %cst_138 [2] : vector<1x16x16xf32> to vector<1x16xf32>
    %610 = vector.shape_cast %609 : vector<1x16xf32> to vector<1x16x1xf32>
    %611 = vector.broadcast %610 : vector<1x16x1xf32> to vector<1x16x16xf32>
    %612 = arith.cmpf oeq, %608, %611 : vector<1x16x16xf32>
    %c16_i32_139 = arith.constant 16 : i32
    %613 = vector.shape_cast %0 : vector<1x1x16xi32> to vector<1x1x16xi32>
    %614 = vector.broadcast %613 : vector<1x1x16xi32> to vector<1x16x16xi32>
    %615 = vector.broadcast %c16_i32_139 : i32 to vector<1x16x16xi32>
    %616 = arith.select %612, %614, %615 : vector<1x16x16xi1>, vector<1x16x16xi32>
    %cst_140 = arith.constant dense<2147483647> : vector<1x16xi32>
    %617 = vector.multi_reduction <minsi>, %616, %cst_140 [2] : vector<1x16x16xi32> to vector<1x16xi32>
    %618 = vector.shape_cast %617 : vector<1x16xi32> to vector<1x16x1xi32>
    %c16_i32_141 = arith.constant 16 : i32
    %619 = vector.broadcast %c16_i32_141 : i32 to vector<1x16x1xi32>
    %620 = arith.cmpi slt, %601, %619 : vector<1x16x1xi32>
    %621 = vector.broadcast %cst_2 : f32 to vector<1x16x1xf32>
    %622 = arith.select %620, %621, %610 : vector<1x16x1xi1>, vector<1x16x1xf32>
    %cst_142 = arith.constant dense<0xFF800000> : vector<1x1xf32>
    %623 = vector.multi_reduction <maximumf>, %622, %cst_142 [1] : vector<1x16x1xf32> to vector<1x1xf32>
    %624 = vector.shape_cast %623 : vector<1x1xf32> to vector<1x1x1xf32>
    %625 = vector.broadcast %624 : vector<1x1x1xf32> to vector<1x16x1xf32>
    %626 = arith.cmpf oeq, %622, %625 : vector<1x16x1xf32>
    %c16_i32_143 = arith.constant 16 : i32
    %627 = vector.broadcast %c16_i32_143 : i32 to vector<1x16x1xi32>
    %628 = arith.select %626, %1, %627 : vector<1x16x1xi1>, vector<1x16x1xi32>
    %cst_144 = arith.constant dense<2147483647> : vector<1x1xi32>
    %629 = vector.multi_reduction <minsi>, %628, %cst_144 [1] : vector<1x16x1xi32> to vector<1x1xi32>
    %630 = vector.shape_cast %629 : vector<1x1xi32> to vector<1x1x1xi32>
    %631 = vector.broadcast %630 : vector<1x1x1xi32> to vector<1x16x1xi32>
    %632 = arith.cmpi eq, %1, %631 : vector<1x16x1xi32>
    %c16_i32_145 = arith.constant 16 : i32
    %633 = vector.broadcast %c16_i32_145 : i32 to vector<1x16x1xi32>
    %634 = arith.select %632, %618, %633 : vector<1x16x1xi1>, vector<1x16x1xi32>
    %cst_146 = arith.constant dense<2147483647> : vector<1x1xi32>
    %635 = vector.multi_reduction <minsi>, %634, %cst_146 [1] : vector<1x16x1xi32> to vector<1x1xi32>
    %636 = vector.shape_cast %635 : vector<1x1xi32> to vector<1x1x1xi32>
    %637 = vector.broadcast %630 : vector<1x1x1xi32> to vector<1x16x1xi32>
    %638 = arith.cmpi eq, %1, %637 : vector<1x16x1xi32>
    %639 = vector.shape_cast %636 : vector<1x1x1xi32> to vector<1x1x1xi32>
    %640 = vector.broadcast %639 : vector<1x1x1xi32> to vector<1x16x1xi32>
    %641 = arith.select %638, %640, %601 : vector<1x16x1xi1>, vector<1x16x1xi32>
    %642 = vector.broadcast %636 : vector<1x1x1xi32> to vector<1x1x16xi32>
    %643 = arith.cmpi eq, %0, %642 : vector<1x1x16xi32>
    %644 = arith.ori %604, %643 : vector<1x1x16xi1>
    %645 = vector.broadcast %0 : vector<1x1x16xi32> to vector<1x16x16xi32>
    %646 = vector.broadcast %641 : vector<1x16x1xi32> to vector<1x16x16xi32>
    %647 = arith.cmpi eq, %645, %646 : vector<1x16x16xi32>
    %648 = arith.extui %647 : vector<1x16x16xi1> to vector<1x16x16xi32>
    %649 = arith.sitofp %648 : vector<1x16x16xi32> to vector<1x16x16xf32>
    %c0_147 = arith.constant 0 : index
    %c0_148 = arith.constant 0 : index
    %c0_149 = arith.constant 0 : index
    %650 = vector.load %arg2[%c0_147, %c0_148, %c0_149] : memref<1x16x16xf32, #tpu.memory_space<vmem>>, vector<1x16x16xf32>
    tpu.vector_store %arg2[%c0_147, %c0_148, %c0_149], %649 {strides = array<i32>} : memref<1x16x16xf32, #tpu.memory_space<vmem>>, vector<1x16x16xf32>,
    return
  }
  func.func @transform_0(%arg0: i32) -> (i32, i32, i32) {
    %c0_i32 = arith.constant 0 : i32
    %c0_i32_0 = arith.constant 0 : i32
    %c0_i32_1 = arith.constant 0 : i32
    return %arg0, %c0_i32, %c0_i32_0 : i32, i32, i32
  }
  func.func @transform_1(%arg0: i32) -> (i32, i32, i32) {
    %c0_i32 = arith.constant 0 : i32
    %c0_i32_0 = arith.constant 0 : i32
    %c0_i32_1 = arith.constant 0 : i32
    return %arg0, %c0_i32, %c0_i32_0 : i32, i32, i32
  }
}

</mosaic_0001>

<bundles_post_ra>
// kernel: tpu_custom_call.1
= control target key start
LH: loop header
LB: loop body
LE: loop exit
PB: predicated region body
PF: predicated region fallthrough
CT: control target
= control target key end

     0   :  { %6 = vsyncpa [#allocation3], 0  ;;  %s2537_s0 = inlined_call_operand.hbm [shape: f32[2,16,16], index: 0, kind: input, shape index: {}]   ;;  %s2538_s1 = inlined_call_operand.hbm [shape: f32[2,16,16], index: 1, kind: output, shape index: {}]  }
   0x1   :  { %8 = vsyncpa [#allocation3 + $0x1], 0 }
   0x2   :  { %9 = vsyncpa [#allocation4], 0 }
   0x3   :  { %11 = vsyncpa [#allocation4 + $0x1], 0  ;;  %s1843_s6 = smov 0   ;;  %s1845_s7 = smov 0  }
   0x4   :  { %s1847_s8 = smov 0   ;;  %s1849_s9 = smov 0  }
   0x5 LB: > { %s1864_s10 = sadd.s32 4294967295, %s1825_s9   ;;  %s1655_s11 = sadd.s32 4294967294, %s1825_s9   ;;  %s1825_s9 = sphi %s1849_s9, %s2574_s9   ;;  %s1821_s8 = sphi %s1847_s8, %s2573_s8   ;;  %s1817_s7 = sphi %s1845_s7, %s2572_s7   ;;  %s1813_s6 = sphi %s1843_s6, %s2571_s6  }
   0x6   : > { %s1868_s12 = sadd.s32 1, %s1825_s9   ;;  %s24_s13 = sadd.s32 1, %s1821_s8 }
   0x7   : > { %s21_s14 = ssub.s32 %s1825_s9, %s1868_s12  ;;  %p31_p0 = scmp.ne.s32.totalorder %s1821_s8, %s1817_s7 }
   0x8   : > { %p22_p1 = scmp.eq.s32.totalorder %s21_s14, 0  ;;  %p32_p2 = scmp.eq.s32.totalorder %s1825_s9, 0 }
   0x9   : > { %p37_p3 = scmp.ne.s32.totalorder %s1817_s7, %s1813_s6  ;;  %p38_p4 = scmp.eq.s32.totalorder %s1864_s10, 0 }
   0xa   : > { %s1880_s15 = scalar_select %p22_p1, %s1821_s8, %s24_s13  }
   0xb   : > { %p1882_p5 = por %p32_p2, %p31_p0  ;;  %p1886_p6 = por %p38_p4, %p37_p3 }
   0xc   : > { %p61_p7 = scmp.eq.s32.totalorder %s1864_s10, 1  ;;  %p67_p8 = scmp.eq.s32.totalorder %s1655_s11, 1 }
   0xd   : > { %p1685_p10 = scmp.lt.s32.totalorder %s1825_s9, 2  ;;  %s87_s20 = sand.u32 1, %s1821_s8  }
   0xe   : > { %p1893_p11 = por %p61_p7, %p31_p0  ;;  %p1897_p12 = por %p67_p8, %p37_p3 }
   0xf   : > { %s1671_s21 = sshll.u32 %s1825_s9, 4  ;;  %s1658_s22 = sshll.u32 %s87_s20, 4 }
  0x10   : > { %s96_s25 = scalar_lea.hbm %s2537_s0, %s1671_s21  ;;  %s91_s27 = scalar_lea.vmem [#allocation2], %s1658_s22 }
  0x11   : > { %s97_s26 = sshll.u32 %s96_s25, 4  ;;  %s99_s28 = sshll.u32 %s91_s27, 4  ;;  %s98_s26 = int_to_ptr.hbm [resolvable:$true] %s97_s26  ;;  %s100_s28 = int_to_ptr.vmem [resolvable:$true] %s99_s28 }
  0x12   : > { %p1908_p13 = pnand %p1685_p10, %p1882_p5  ;;  %p1661_p0 = scmp.ge.s32.totalorder %s1825_s9, 1 }
  0x13   : > { %p107_p1 = scmp.lt.s32.totalorder %s1825_s9, 3  ;;  %s88_s30 = scalar_lea.sflag [#allocation3], %s87_s20 }
  0x14   : > { %s1729_s2 = sshra.s32 %s98_s26, 4  ;;  %p1733_p3 = pneg %p1908_p13  ;;  %s1730_s2 = int_to_ptr.hbm [resolvable:$true] %s1729_s2 }
  0x15   : > { %s1731_s3 = scalar_lea.hbm %s1730_s2, 16  ;;  %s1736_s11 = scalar_lea.hbm %s2537_s0, 32 }
  0x16   : > { %p1732_p2 = scmp.ne.s32.totalorder %s1730_s2, %s1731_s3  ;;  %p1737_p5 = scmp.lt.s32.totalorder %s1730_s2, %s2537_s0 }
  0x17   : > { %p1738_p8 = scmp.lt.s32.totalorder %s1736_s11, %s1731_s3 }
  0x18   : > { %p1734_p4 = pnand %p1733_p3, %p1732_p2 }
  0x19   : > { %p1739_p10 = por %p1738_p8, %p1737_p5 }
  0x1a   : > { %p1735_p7 = pneg %p1734_p4 }
  0x1c   : > { %p1740_p9 = pnand %p1739_p10, %p1735_p7 }
  0x1e   : > { %1743 = shalt.err (!%p1740_p9)
}
  0x1f   : > { %s1827_s16 = smov 128   ;;  %s1828_s20 = smov 8  }
  0x20   : > { %1680 = dma.hbm_to_vmem [thread:$0]  (!%p1908_p13), %s98_s26, 256, %s100_s28, %s88_s30, %s1827_s16, %s1827_s16, %s1828_s20  }
  0x21   : > { %p108_p2 = pnand %p1661_p0, %p107_p1 }
  0x22   : > { %s1929_s21 = sand.u32 (!%p108_p2), 1, %s1817_s7  }
  0x23   : > { %111 = sbr.rel (%p108_p2) target bundleno = 6156 (0x180c), region = 24  ;;  %s1662_s22 = sshll.u32 (!%p108_p2), %s1929_s21, 4 }
  0x24   : > { %s114_s23 = scalar_lea.sflag (!%p108_p2), [#allocation3], %s1929_s21  ;;  %s1935_s24 = scalar_lea.vmem (!%p108_p2), [#allocation2], %s1662_s22 }
  0x28   : > { %1804 = dma.done.wait (%p1886_p6), %s114_s23, 256  }
  0x29   : > { %1806 = vsyncadd (%p1886_p6), %s114_s23, 4294967040  ;;  %vm144_vm0 = vcmask 130048   ;;  %v1942_v0 = vld [vmem:[%s1935_s24] sm:$0xff]  ;;  %v1947_v2 = vld [vmem:[%s1935_s24 + $0x8] sm:$0xff]  ;;  %v137_v4 = vlaneseq  ;;  %s1672_s17 = sshll.u32 %s1864_s10, 4  ;;  %s136_s28 = scalar_lea.vmem [#allocation5], %s1662_s22 }
  0x2a   : > { %v145_v1 = vsel %vm144_vm0, %v1942_v0, -inf  ;;  %v148_v3 = vsel %vm144_vm0, %v1947_v2, -inf  ;;  %s1578_s27 = scalar_lea.hbm %s2538_s1, %s1672_s17  ;;  %s1579_s29 = sshll.u32 %s136_s28, 4  ;;  %s1580_s29 = int_to_ptr.vmem [resolvable:$true] %s1579_s29 }
  0x2b   : > { %146 = vmax.xlane.f32.xlu0 %v145_v1  ;;  %v1951_v5 = vand.u32 127, %v137_v4  ;;  %v1959_v30 = vshrl.u32 %v137_v4, 7  ;;  %s1581_s30 = sshll.u32 %s1578_s27, 4  ;;  %s1567_s10 = scalar_lea.sflag [#allocation4], %s1929_s21  ;;  %s1582_s30 = int_to_ptr.hbm [resolvable:$true] %s1581_s30 }
  0x2c   : > { %s1773_s2 = sshra.s32 %s1582_s30, 4  ;;  %s1779_s11 = scalar_lea.hbm %s2538_s1, 32  ;;  %s1774_s2 = int_to_ptr.hbm [resolvable:$true] %s1773_s2 }
  0x2d   : > { %v1962_v32 = vadd.s32 8, %v1959_v30  ;;  %s1775_s3 = scalar_lea.hbm %s1774_s2, 16  ;;  %p1780_p0 = scmp.lt.s32.totalorder %s1774_s2, %s2538_s1 }
  0x2e   : > { %p1776_p6 = scmp.ne.s32.totalorder %s1774_s2, %s1775_s3  ;;  %p1781_p1 = scmp.lt.s32.totalorder %s1779_s11, %s1775_s3 }
  0x30   : > { %p1777_p9 = pnand %p1776_p6, %p1893_p11  ;;  %p1782_p3 = por %p1781_p1, %p1780_p0 }
  0x32   : > { %p1778_p13 = pneg %p1777_p9 }
  0x33   : > { %149 = vmax.xlane.f32.xlu0 %v148_v3 }
  0x34   : > { %p1783_p4 = pnand %p1782_p3, %p1778_p13 }
  0x9e   : > { %v147_v6 = vpop.xlane.xlu0 %146 }
  0x9f   : > { %vm151_vm1 = vcmp.eq.f32.partialorder %v1942_v0, %v147_v6 }
  0xa0   : > { %v153_v7 = vsel %vm151_vm1, %v1951_v5, 16 }
  0xa1   : > { %v155_v8 = vsel %vm144_vm0, %v153_v7, 2147483647 }
  0xa2   : > { %v157_v9 = vshra.s32 %v155_v8, 16  ;;  %v156_v16 = vand.u32 65535, %v155_v8 }
  0xa4   : > { %v159_v10 = vcvt.s32.f32 %v157_v9  ;;  %v158_v18 = vcvt.s32.f32 %v156_v16 }
  0xa6   : > { %160 = vmin.xlane.f32.xlu1 %v159_v10  ;;  %v150_v11 = vpop.xlane.xlu0 %149 }
  0xa7   : > { %vm152_vm2 = vcmp.eq.f32.partialorder %v1947_v2, %v150_v11  ;;  %v185_v24 = vmax.f32 %v147_v6, %v150_v11 }
  0xa8   : > { %v154_v12 = vsel %vm152_vm2, %v1951_v5, 16 }
  0xa9   : > { %v170_v13 = vsel %vm144_vm0, %v154_v12, 2147483647  ;;  %v186_v25 = vrot.slane %v185_v24, 4 }
  0xaa   : > { %v172_v14 = vshra.s32 %v170_v13, 16  ;;  %v171_v20 = vand.u32 65535, %v170_v13 }
  0xab   : > { %v187_v26 = vmax.f32 %v185_v24, %v186_v25 }
  0xac   : > { %v174_v15 = vcvt.s32.f32 %v172_v14  ;;  %v173_v22 = vcvt.s32.f32 %v171_v20 }
  0xad   : > { %v188_v27 = vrot.slane %v187_v26, 2 }
  0xae   : > { %175 = vmin.xlane.f32.xlu1 %v174_v15 }
  0xaf   : > { %v189_v28 = vmax.f32 %v187_v26, %v188_v27 }
  0xb1   : > { %v190_v29 = vrot.slane %v189_v28, 1 }
  0xb3   : > { %v191_v31 = vmax.f32 %v189_v28, %v190_v29 }
  0xb5   : > { %vm192_vm5 = vcmp.eq.f32.partialorder %v147_v6, %v191_v31  ;;  %vm193_vm6 = vcmp.eq.f32.partialorder %v150_v11, %v191_v31 }
  0xb6   : > { %v194_v33 = vsel %vm192_vm5, %v1959_v30, 16  ;;  %v195_v34 = vsel %vm193_vm6, %v1962_v32, 16 }
  0xb7   : > { %vm196_vm7 = vcmp.lt.s32.totalorder %v194_v33, %v195_v34 }
  0xb8   : > { %v197_v35 = vsel %vm196_vm7, %v194_v33, %v195_v34 }
  0xb9   : > { %v198_v36 = vrot.slane %v197_v35, 4 }
  0xbb   : > { %vm199_vm8 = vcmp.lt.s32.totalorder %v197_v35, %v198_v36 }
  0xbc   : > { %v200_v37 = vsel %vm199_vm8, %v197_v35, %v198_v36 }
  0xbd   : > { %v201_v38 = vrot.slane %v200_v37, 2 }
  0xbf   : > { %vm202_vm9 = vcmp.lt.s32.totalorder %v200_v37, %v201_v38 }
  0xc0   : > { %v203_v39 = vsel %vm202_vm9, %v200_v37, %v201_v38 }
  0xc1   : > { %v204_v40 = vrot.slane %v203_v39, 1 }
  0xc3   : > { %vm205_vm10 = vcmp.lt.s32.totalorder %v203_v39, %v204_v40 }
  0xc4   : > { %v206_v45 = vsel %vm205_vm10, %v203_v39, %v204_v40 }
  0xc5   : > { %vm207_vm11 = vcmp.eq.s32.totalorder %v1959_v30, %v206_v45  ;;  %vm208_vm12 = vcmp.eq.s32.totalorder %v1962_v32, %v206_v45 }
 0x119   : > { %v161_v17 = vpop.xlane.xlu1 %160 }
 0x11a   : > { %vm162_vm3 = vcmp.eq.f32.partialorder %v159_v10, %v161_v17  ;;  %v167_v41 = vcvt.f32.s32 %v161_v17 }
 0x11b   : > { %v163_v19 = vsel %vm162_vm3, %v158_v18, inf }
 0x11c   : > { %164 = vmin.xlane.f32.xlu2 %v163_v19  ;;  %v168_v43 = vshll.u32 %v167_v41, 16 }
 0x121   : > { %v176_v21 = vpop.xlane.xlu1 %175 }
 0x122   : > { %vm177_vm4 = vcmp.eq.f32.partialorder %v174_v15, %v176_v21  ;;  %v182_v47 = vcvt.f32.s32 %v176_v21 }
 0x123   : > { %v178_v23 = vsel %vm177_vm4, %v173_v22, inf }
 0x124   : > { %179 = vmin.xlane.f32.xlu2 %v178_v23  ;;  %v183_v50 = vshll.u32 %v182_v47, 16 }
 0x18f   : > { %v165_v42 = vpop.xlane.xlu2 %164 }
 0x190   : > { %v166_v44 = vcvt.f32.s32 %v165_v42 }
 0x192   : > { %v169_v46 = vadd.s32 %v168_v43, %v166_v44 }
 0x194   : > { %v209_v48 = vsel %vm207_vm11, %v169_v46, 16 }
 0x197   : > { %v180_v49 = vpop.xlane.xlu2 %179 }
 0x198   : > { %v181_v51 = vcvt.f32.s32 %v180_v49 }
 0x19a   : > { %v184_v52 = vadd.s32 %v183_v50, %v181_v51 }
 0x19c   : > { %v210_v53 = vsel %vm208_vm12, %v184_v52, 16 }
 0x19d   : > { %vm211_vm13 = vcmp.lt.s32.totalorder %v209_v48, %v210_v53 }
 0x19e   : > { %v212_v54 = vsel %vm211_vm13, %v209_v48, %v210_v53 }
 0x19f   : > { %v213_v55 = vrot.slane %v212_v54, 4 }
 0x1a1   : > { %vm214_vm14 = vcmp.lt.s32.totalorder %v212_v54, %v213_v55 }
 0x1a2   : > { %v215_v56 = vsel %vm214_vm14, %v212_v54, %v213_v55 }
 0x1a3   : > { %v216_v57 = vrot.slane %v215_v56, 2 }
 0x1a5   : > { %vm217_vm15 = vcmp.lt.s32.totalorder %v215_v56, %v216_v57 }
 0x1a6   : > { %v218_v58 = vsel %vm217_vm15, %v215_v56, %v216_v57 }
 0x1a7   : > { %v219_v59 = vrot.slane %v218_v58, 1 }
 0x1a9   : > { %vm220_vm1 = vcmp.lt.s32.totalorder %v218_v58, %v219_v59 }
 0x1aa   : > { %v1970_v60 = vsel %vm220_vm1, %v218_v58, %v219_v59 }
 0x1ab   : > { %vm224_vm2 = vcmp.eq.s32.totalorder %v1951_v5, %v1970_v60  ;;  %v1975_v61 = vsel %vm208_vm12, %v1970_v60, 16  ;;  %v1980_v62 = vsel %vm207_vm11, %v1970_v60, 16 }
 0x1ac   : > { %v228_v63 = vsel %vm224_vm2, -1.0, %v1947_v2  ;;  %v227_v1 = vsel %vm224_vm2, -1.0, %v1942_v0  ;;  %vm270_vm7 = vcmp.lt.s32.totalorder %v1975_v61, 16  ;;  %vm269_vm8 = vcmp.lt.s32.totalorder %v1980_v62, 16 }
 0x1ad   : > { %v232_v3 = vsel %vm144_vm0, %v228_v63, -inf  ;;  %v229_v4 = vsel %vm144_vm0, %v227_v1, -inf }
 0x1ae   : > { %233 = vmax.xlane.f32.xlu1 %v232_v3  ;;  %230 = vmax.xlane.f32.xlu0 %v229_v4 }
 0x221   : > { %v234_v6 = vpop.xlane.xlu1 %233  ;;  %v231_v7 = vpop.xlane.xlu0 %230 }
 0x222   : > { %vm236_vm3 = vcmp.eq.f32.partialorder %v228_v63, %v234_v6  ;;  %vm235_vm4 = vcmp.eq.f32.partialorder %v227_v1, %v231_v7  ;;  %v272_v24 = vsel %vm270_vm7, -inf, %v234_v6  ;;  %v271_v25 = vsel %vm269_vm8, -inf, %v231_v7 }
 0x223   : > { %v238_v8 = vsel %vm236_vm3, %v1951_v5, 16  ;;  %v237_v9 = vsel %vm235_vm4, %v1951_v5, 16  ;;  %v273_v26 = vmax.f32 %v271_v25, %v272_v24 }
 0x224   : > { %v254_v10 = vsel %vm144_vm0, %v238_v8, 2147483647  ;;  %v239_v11 = vsel %vm144_vm0, %v237_v9, 2147483647 }
 0x225   : > { %v256_v12 = vshra.s32 %v254_v10, 16  ;;  %v241_v13 = vshra.s32 %v239_v11, 16  ;;  %v240_v16 = vand.u32 65535, %v239_v11  ;;  %v255_v17 = vand.u32 65535, %v254_v10 }
 0x226   : > { %v274_v27 = vrot.slane %v273_v26, 4 }
 0x227   : > { %v258_v14 = vcvt.s32.f32 %v256_v12  ;;  %v243_v15 = vcvt.s32.f32 %v241_v13  ;;  %v242_v20 = vcvt.s32.f32 %v240_v16  ;;  %v257_v21 = vcvt.s32.f32 %v255_v17 }
 0x228   : > { %v275_v28 = vmax.f32 %v273_v26, %v274_v27 }
 0x229   : > { %259 = vmin.xlane.f32.xlu0 %v258_v14  ;;  %244 = vmin.xlane.f32.xlu2 %v243_v15 }
 0x22a   : > { %v276_v29 = vrot.slane %v275_v28, 2 }
 0x22c   : > { %v277_v31 = vmax.f32 %v275_v28, %v276_v29 }
 0x22e   : > { %v278_v33 = vrot.slane %v277_v31, 1 }
 0x230   : > { %v279_v34 = vmax.f32 %v277_v31, %v278_v33 }
 0x232   : > { %vm280_vm9 = vcmp.eq.f32.partialorder %v271_v25, %v279_v34  ;;  %vm281_vm10 = vcmp.eq.f32.partialorder %v272_v24, %v279_v34 }
 0x233   : > { %v282_v35 = vsel %vm280_vm9, %v1959_v30, 16  ;;  %v283_v36 = vsel %vm281_vm10, %v1962_v32, 16 }
 0x234   : > { %vm284_vm11 = vcmp.lt.s32.totalorder %v282_v35, %v283_v36 }
 0x235   : > { %v285_v37 = vsel %vm284_vm11, %v282_v35, %v283_v36 }
 0x236   : > { %v286_v38 = vrot.slane %v285_v37, 4 }
 0x238   : > { %vm287_vm12 = vcmp.lt.s32.totalorder %v285_v37, %v286_v38 }
 0x239   : > { %v288_v39 = vsel %vm287_vm12, %v285_v37, %v286_v38 }
 0x23a   : > { %v289_v40 = vrot.slane %v288_v39, 2 }
 0x23c   : > { %vm290_vm13 = vcmp.lt.s32.totalorder %v288_v39, %v289_v40 }
 0x23d   : > { %v291_v41 = vsel %vm290_vm13, %v288_v39, %v289_v40 }
 0x23e   : > { %v292_v42 = vrot.slane %v291_v41, 1 }
 0x240   : > { %vm293_vm14 = vcmp.lt.s32.totalorder %v291_v41, %v292_v42 }
 0x241   : > { %v294_v46 = vsel %vm293_vm14, %v291_v41, %v292_v42 }
 0x242   : > { %vm295_vm15 = vcmp.eq.s32.totalorder %v1959_v30, %v294_v46  ;;  %vm296_vm1 = vcmp.eq.s32.totalorder %v1962_v32, %v294_v46 }
 0x29c   : > { %v245_v18 = vpop.xlane.xlu2 %244  ;;  %v260_v19 = vpop.xlane.xlu0 %259 }
 0x29d   : > { %vm246_vm5 = vcmp.eq.f32.partialorder %v243_v15, %v245_v18  ;;  %vm261_vm6 = vcmp.eq.f32.partialorder %v258_v14, %v260_v19  ;;  %v251_v43 = vcvt.f32.s32 %v245_v18  ;;  %v266_v44 = vcvt.f32.s32 %v260_v19 }
 0x29e   : > { %v247_v22 = vsel %vm246_vm5, %v242_v20, inf  ;;  %v262_v23 = vsel %vm261_vm6, %v257_v21, inf }
 0x29f   : > { %248 = vmin.xlane.f32.xlu1 %v247_v22  ;;  %263 = vmin.xlane.f32.xlu2 %v262_v23  ;;  %v252_v48 = vshll.u32 %v251_v43, 16  ;;  %v267_v49 = vshll.u32 %v266_v44, 16 }
 0x312   : > { %v249_v45 = vpop.xlane.xlu1 %248  ;;  %v264_v47 = vpop.xlane.xlu2 %263 }
 0x313   : > { %v250_v50 = vcvt.f32.s32 %v249_v45  ;;  %v265_v51 = vcvt.f32.s32 %v264_v47 }
 0x315   : > { %v253_v52 = vadd.s32 %v252_v48, %v250_v50  ;;  %v268_v53 = vadd.s32 %v267_v49, %v265_v51 }
 0x317   : > { %v297_v54 = vsel %vm295_vm15, %v253_v52, 16  ;;  %v298_v55 = vsel %vm296_vm1, %v268_v53, 16 }
 0x318   : > { %vm299_vm3 = vcmp.lt.s32.totalorder %v297_v54, %v298_v55 }
 0x319   : > { %v300_v56 = vsel %vm299_vm3, %v297_v54, %v298_v55 }
 0x31a   : > { %v301_v57 = vrot.slane %v300_v56, 4 }
 0x31c   : > { %vm302_vm4 = vcmp.lt.s32.totalorder %v300_v56, %v301_v57 }
 0x31d   : > { %v303_v58 = vsel %vm302_vm4, %v300_v56, %v301_v57 }
 0x31e   : > { %v304_v59 = vrot.slane %v303_v58, 2 }
 0x320   : > { %vm305_vm5 = vcmp.lt.s32.totalorder %v303_v58, %v304_v59 }
 0x321   : > { %v306_v63 = vsel %vm305_vm5, %v303_v58, %v304_v59 }
 0x322   : > { %v307_v1 = vrot.slane %v306_v63, 1 }
 0x324   : > { %vm308_vm6 = vcmp.lt.s32.totalorder %v306_v63, %v307_v1 }
 0x325   : > { %v309_v3 = vsel %vm308_vm6, %v306_v63, %v307_v1 }
 0x326   : > { %vm312_vm7 = vcmp.eq.s32.totalorder %v1951_v5, %v309_v3  ;;  %v2006_v4 = vsel %vm296_vm1, %v309_v3, %v1975_v61  ;;  %v2011_v6 = vsel %vm295_vm15, %v309_v3, %v1980_v62 }
 0x327   : > { %vm2016_vm8 = vmor %vm224_vm2, %vm312_vm7  ;;  %vm359_vm12 = vcmp.lt.s32.totalorder %v2006_v4, 16  ;;  %vm358_vm13 = vcmp.lt.s32.totalorder %v2011_v6, 16 }
 0x328   : > { %v317_v8 = vsel %vm2016_vm8, -1.0, %v1947_v2  ;;  %v316_v61 = vsel %vm2016_vm8, -1.0, %v1942_v0 }
 0x329   : > { %v321_v9 = vsel %vm144_vm0, %v317_v8, -inf  ;;  %v318_v62 = vsel %vm144_vm0, %v316_v61, -inf }
 0x32a   : > { %322 = vmax.xlane.f32.xlu1 %v321_v9  ;;  %319 = vmax.xlane.f32.xlu0 %v318_v62 }
 0x39d   : > { %v323_v10 = vpop.xlane.xlu1 %322  ;;  %v320_v60 = vpop.xlane.xlu0 %319 }
 0x39e   : > { %vm325_vm2 = vcmp.eq.f32.partialorder %v317_v8, %v323_v10  ;;  %vm324_vm9 = vcmp.eq.f32.partialorder %v316_v61, %v320_v60  ;;  %v361_v27 = vsel %vm359_vm12, -inf, %v323_v10  ;;  %v360_v28 = vsel %vm358_vm13, -inf, %v320_v60 }
 0x39f   : > { %v327_v11 = vsel %vm325_vm2, %v1951_v5, 16  ;;  %v326_v12 = vsel %vm324_vm9, %v1951_v5, 16  ;;  %v362_v29 = vmax.f32 %v360_v28, %v361_v27 }
 0x3a0   : > { %v343_v13 = vsel %vm144_vm0, %v327_v11, 2147483647  ;;  %v328_v14 = vsel %vm144_vm0, %v326_v12, 2147483647 }
 0x3a1   : > { %v345_v15 = vshra.s32 %v343_v13, 16  ;;  %v330_v16 = vshra.s32 %v328_v14, 16  ;;  %v329_v19 = vand.u32 65535, %v328_v14  ;;  %v344_v20 = vand.u32 65535, %v343_v13 }
 0x3a2   : > { %v363_v31 = vrot.slane %v362_v29, 4 }
 0x3a3   : > { %v347_v17 = vcvt.s32.f32 %v345_v15  ;;  %v332_v18 = vcvt.s32.f32 %v330_v16  ;;  %v331_v23 = vcvt.s32.f32 %v329_v19  ;;  %v346_v24 = vcvt.s32.f32 %v344_v20 }
 0x3a4   : > { %v364_v33 = vmax.f32 %v362_v29, %v363_v31 }
 0x3a5   : > { %348 = vmin.xlane.f32.xlu0 %v347_v17  ;;  %333 = vmin.xlane.f32.xlu2 %v332_v18 }
 0x3a6   : > { %v365_v34 = vrot.slane %v364_v33, 2 }
 0x3a8   : > { %v366_v35 = vmax.f32 %v364_v33, %v365_v34 }
 0x3aa   : > { %v367_v36 = vrot.slane %v366_v35, 1 }
 0x3ac   : > { %v368_v37 = vmax.f32 %v366_v35, %v367_v36 }
 0x3ae   : > { %vm369_vm14 = vcmp.eq.f32.partialorder %v360_v28, %v368_v37  ;;  %vm370_vm15 = vcmp.eq.f32.partialorder %v361_v27, %v368_v37 }
 0x3af   : > { %v371_v38 = vsel %vm369_vm14, %v1959_v30, 16  ;;  %v372_v39 = vsel %vm370_vm15, %v1962_v32, 16 }
 0x3b0   : > { %vm373_vm1 = vcmp.lt.s32.totalorder %v371_v38, %v372_v39 }
 0x3b1   : > { %v374_v40 = vsel %vm373_vm1, %v371_v38, %v372_v39 }
 0x3b2   : > { %v375_v41 = vrot.slane %v374_v40, 4 }
 0x3b4   : > { %vm376_vm3 = vcmp.lt.s32.totalorder %v374_v40, %v375_v41 }
 0x3b5   : > { %v377_v42 = vsel %vm376_vm3, %v374_v40, %v375_v41 }
 0x3b6   : > { %v378_v43 = vrot.slane %v377_v42, 2 }
 0x3b8   : > { %vm379_vm4 = vcmp.lt.s32.totalorder %v377_v42, %v378_v43 }
 0x3b9   : > { %v380_v44 = vsel %vm379_vm4, %v377_v42, %v378_v43 }
 0x3ba   : > { %v381_v45 = vrot.slane %v380_v44, 1 }
 0x3bc   : > { %vm382_vm5 = vcmp.lt.s32.totalorder %v380_v44, %v381_v45 }
 0x3bd   : > { %v383_v49 = vsel %vm382_vm5, %v380_v44, %v381_v45 }
 0x3be   : > { %vm384_vm6 = vcmp.eq.s32.totalorder %v1959_v30, %v383_v49  ;;  %vm385_vm7 = vcmp.eq.s32.totalorder %v1962_v32, %v383_v49 }
 0x418   : > { %v334_v21 = vpop.xlane.xlu2 %333  ;;  %v349_v22 = vpop.xlane.xlu0 %348 }
 0x419   : > { %vm335_vm10 = vcmp.eq.f32.partialorder %v332_v18, %v334_v21  ;;  %vm350_vm11 = vcmp.eq.f32.partialorder %v347_v17, %v349_v22  ;;  %v340_v46 = vcvt.f32.s32 %v334_v21  ;;  %v355_v47 = vcvt.f32.s32 %v349_v22 }
 0x41a   : > { %v336_v25 = vsel %vm335_vm10, %v331_v23, inf  ;;  %v351_v26 = vsel %vm350_vm11, %v346_v24, inf }
 0x41b   : > { %337 = vmin.xlane.f32.xlu1 %v336_v25  ;;  %352 = vmin.xlane.f32.xlu2 %v351_v26  ;;  %v341_v51 = vshll.u32 %v340_v46, 16  ;;  %v356_v52 = vshll.u32 %v355_v47, 16 }
 0x48e   : > { %v338_v48 = vpop.xlane.xlu1 %337  ;;  %v353_v50 = vpop.xlane.xlu2 %352 }
 0x48f   : > { %v339_v53 = vcvt.f32.s32 %v338_v48  ;;  %v354_v54 = vcvt.f32.s32 %v353_v50 }
 0x491   : > { %v342_v55 = vadd.s32 %v341_v51, %v339_v53  ;;  %v357_v56 = vadd.s32 %v356_v52, %v354_v54 }
 0x493   : > { %v386_v57 = vsel %vm384_vm6, %v342_v55, 16  ;;  %v387_v58 = vsel %vm385_vm7, %v357_v56, 16 }
 0x494   : > { %vm388_vm2 = vcmp.lt.s32.totalorder %v386_v57, %v387_v58 }
 0x495   : > { %v389_v59 = vsel %vm388_vm2, %v386_v57, %v387_v58 }
 0x496   : > { %v390_v63 = vrot.slane %v389_v59, 4 }
 0x498   : > { %vm391_vm9 = vcmp.lt.s32.totalorder %v389_v59, %v390_v63 }
 0x499   : > { %v392_v1 = vsel %vm391_vm9, %v389_v59, %v390_v63 }
 0x49a   : > { %v393_v3 = vrot.slane %v392_v1, 2 }
 0x49c   : > { %vm394_vm10 = vcmp.lt.s32.totalorder %v392_v1, %v393_v3 }
 0x49d   : > { %v395_v8 = vsel %vm394_vm10, %v392_v1, %v393_v3 }
 0x49e   : > { %v396_v61 = vrot.slane %v395_v8, 1 }
 0x4a0   : > { %vm397_vm11 = vcmp.lt.s32.totalorder %v395_v8, %v396_v61 }
 0x4a1   : > { %v398_v9 = vsel %vm397_vm11, %v395_v8, %v396_v61 }
 0x4a2   : > { %vm401_vm12 = vcmp.eq.s32.totalorder %v1951_v5, %v398_v9  ;;  %v2042_v62 = vsel %vm385_vm7, %v398_v9, %v2006_v4  ;;  %v2047_v10 = vsel %vm384_vm6, %v398_v9, %v2011_v6 }
 0x4a3   : > { %vm2051_vm13 = vmor %vm2016_vm8, %vm401_vm12  ;;  %vm448_vm3 = vcmp.lt.s32.totalorder %v2042_v62, 16  ;;  %vm447_vm4 = vcmp.lt.s32.totalorder %v2047_v10, 16 }
 0x4a4   : > { %v406_v11 = vsel %vm2051_vm13, -1.0, %v1947_v2  ;;  %v405_v4 = vsel %vm2051_vm13, -1.0, %v1942_v0 }
 0x4a5   : > { %v410_v12 = vsel %vm144_vm0, %v406_v11, -inf  ;;  %v407_v13 = vsel %vm144_vm0, %v405_v4, -inf }
 0x4a6   : > { %411 = vmax.xlane.f32.xlu1 %v410_v12  ;;  %408 = vmax.xlane.f32.xlu0 %v407_v13 }
 0x519   : > { %v412_v6 = vpop.xlane.xlu1 %411  ;;  %v409_v7 = vpop.xlane.xlu0 %408 }
 0x51a   : > { %vm414_vm8 = vcmp.eq.f32.partialorder %v406_v11, %v412_v6  ;;  %vm413_vm14 = vcmp.eq.f32.partialorder %v405_v4, %v409_v7  ;;  %v450_v31 = vsel %vm448_vm3, -inf, %v412_v6  ;;  %v449_v33 = vsel %vm447_vm4, -inf, %v409_v7 }
 0x51b   : > { %v416_v14 = vsel %vm414_vm8, %v1951_v5, 16  ;;  %v415_v15 = vsel %vm413_vm14, %v1951_v5, 16  ;;  %v451_v34 = vmax.f32 %v449_v33, %v450_v31 }
 0x51c   : > { %v432_v16 = vsel %vm144_vm0, %v416_v14, 2147483647  ;;  %v417_v17 = vsel %vm144_vm0, %v415_v15, 2147483647 }
 0x51d   : > { %v434_v18 = vshra.s32 %v432_v16, 16  ;;  %v419_v19 = vshra.s32 %v417_v17, 16  ;;  %v418_v22 = vand.u32 65535, %v417_v17  ;;  %v433_v23 = vand.u32 65535, %v432_v16 }
 0x51e   : > { %v452_v35 = vrot.slane %v451_v34, 4 }
 0x51f   : > { %v436_v20 = vcvt.s32.f32 %v434_v18  ;;  %v421_v21 = vcvt.s32.f32 %v419_v19  ;;  %v420_v26 = vcvt.s32.f32 %v418_v22  ;;  %v435_v27 = vcvt.s32.f32 %v433_v23 }
 0x520   : > { %v453_v36 = vmax.f32 %v451_v34, %v452_v35 }
 0x521   : > { %437 = vmin.xlane.f32.xlu0 %v436_v20  ;;  %422 = vmin.xlane.f32.xlu2 %v421_v21 }
 0x522   : > { %v454_v37 = vrot.slane %v453_v36, 2 }
 0x524   : > { %v455_v38 = vmax.f32 %v453_v36, %v454_v37 }
 0x526   : > { %v456_v39 = vrot.slane %v455_v38, 1 }
 0x528   : > { %v457_v40 = vmax.f32 %v455_v38, %v456_v39 }
 0x52a   : > { %vm458_vm5 = vcmp.eq.f32.partialorder %v449_v33, %v457_v40  ;;  %vm459_vm6 = vcmp.eq.f32.partialorder %v450_v31, %v457_v40 }
 0x52b   : > { %v460_v41 = vsel %vm458_vm5, %v1959_v30, 16  ;;  %v461_v42 = vsel %vm459_vm6, %v1962_v32, 16 }
 0x52c   : > { %vm462_vm7 = vcmp.lt.s32.totalorder %v460_v41, %v461_v42 }
 0x52d   : > { %v463_v43 = vsel %vm462_vm7, %v460_v41, %v461_v42 }
 0x52e   : > { %v464_v44 = vrot.slane %v463_v43, 4 }
 0x530   : > { %vm465_vm2 = vcmp.lt.s32.totalorder %v463_v43, %v464_v44 }
 0x531   : > { %v466_v45 = vsel %vm465_vm2, %v463_v43, %v464_v44 }
 0x532   : > { %v467_v46 = vrot.slane %v466_v45, 2 }
 0x534   : > { %vm468_vm9 = vcmp.lt.s32.totalorder %v466_v45, %v467_v46 }
 0x535   : > { %v469_v47 = vsel %vm468_vm9, %v466_v45, %v467_v46 }
 0x536   : > { %v470_v48 = vrot.slane %v469_v47, 1 }
 0x538   : > { %vm471_vm10 = vcmp.lt.s32.totalorder %v469_v47, %v470_v48 }
 0x539   : > { %v472_v52 = vsel %vm471_vm10, %v469_v47, %v470_v48 }
 0x53a   : > { %vm473_vm11 = vcmp.eq.s32.totalorder %v1959_v30, %v472_v52  ;;  %vm474_vm12 = vcmp.eq.s32.totalorder %v1962_v32, %v472_v52 }
 0x594   : > { %v423_v24 = vpop.xlane.xlu2 %422  ;;  %v438_v25 = vpop.xlane.xlu0 %437 }
 0x595   : > { %vm424_vm15 = vcmp.eq.f32.partialorder %v421_v21, %v423_v24  ;;  %vm439_vm1 = vcmp.eq.f32.partialorder %v436_v20, %v438_v25  ;;  %v429_v49 = vcvt.f32.s32 %v423_v24  ;;  %v444_v50 = vcvt.f32.s32 %v438_v25 }
 0x596   : > { %v425_v28 = vsel %vm424_vm15, %v420_v26, inf  ;;  %v440_v29 = vsel %vm439_vm1, %v435_v27, inf }
 0x597   : > { %426 = vmin.xlane.f32.xlu1 %v425_v28  ;;  %441 = vmin.xlane.f32.xlu2 %v440_v29  ;;  %v430_v54 = vshll.u32 %v429_v49, 16  ;;  %v445_v55 = vshll.u32 %v444_v50, 16 }
 0x60a   : > { %v427_v51 = vpop.xlane.xlu1 %426  ;;  %v442_v53 = vpop.xlane.xlu2 %441 }
 0x60b   : > { %v428_v56 = vcvt.f32.s32 %v427_v51  ;;  %v443_v57 = vcvt.f32.s32 %v442_v53 }
 0x60d   : > { %v431_v58 = vadd.s32 %v430_v54, %v428_v56  ;;  %v446_v59 = vadd.s32 %v445_v55, %v443_v57 }
 0x60f   : > { %v475_v63 = vsel %vm473_vm11, %v431_v58, 16  ;;  %v476_v1 = vsel %vm474_vm12, %v446_v59, 16 }
 0x610   : > { %vm477_vm8 = vcmp.lt.s32.totalorder %v475_v63, %v476_v1 }
 0x611   : > { %v478_v3 = vsel %vm477_vm8, %v475_v63, %v476_v1 }
 0x612   : > { %v479_v8 = vrot.slane %v478_v3, 4 }
 0x614   : > { %vm480_vm14 = vcmp.lt.s32.totalorder %v478_v3, %v479_v8 }
 0x615   : > { %v481_v61 = vsel %vm480_vm14, %v478_v3, %v479_v8 }
 0x616   : > { %v482_v9 = vrot.slane %v481_v61, 2 }
 0x618   : > { %vm483_vm15 = vcmp.lt.s32.totalorder %v481_v61, %v482_v9 }
 0x619   : > { %v484_v11 = vsel %vm483_vm15, %v481_v61, %v482_v9 }
 0x61a   : > { %v485_v4 = vrot.slane %v484_v11, 1 }
 0x61c   : > { %vm486_vm1 = vcmp.lt.s32.totalorder %v484_v11, %v485_v4 }
 0x61d   : > { %v487_v12 = vsel %vm486_vm1, %v484_v11, %v485_v4 }
 0x61e   : > { %vm490_vm3 = vcmp.eq.s32.totalorder %v1951_v5, %v487_v12  ;;  %v2077_v13 = vsel %vm474_vm12, %v487_v12, %v2042_v62  ;;  %v2082_v6 = vsel %vm473_vm11, %v487_v12, %v2047_v10 }
 0x61f   : > { %vm2086_vm4 = vmor %vm2051_vm13, %vm490_vm3  ;;  %vm537_vm2 = vcmp.lt.s32.totalorder %v2077_v13, 16  ;;  %vm536_vm9 = vcmp.lt.s32.totalorder %v2082_v6, 16 }
 0x620   : > { %v495_v14 = vsel %vm2086_vm4, -1.0, %v1947_v2  ;;  %v494_v62 = vsel %vm2086_vm4, -1.0, %v1942_v0 }
 0x621   : > { %v499_v15 = vsel %vm144_vm0, %v495_v14, -inf  ;;  %v496_v16 = vsel %vm144_vm0, %v494_v62, -inf }
 0x622   : > { %500 = vmax.xlane.f32.xlu1 %v499_v15  ;;  %497 = vmax.xlane.f32.xlu0 %v496_v16 }
 0x695   : > { %v501_v10 = vpop.xlane.xlu1 %500  ;;  %v498_v60 = vpop.xlane.xlu0 %497 }
 0x696   : > { %vm503_vm13 = vcmp.eq.f32.partialorder %v495_v14, %v501_v10  ;;  %vm502_vm5 = vcmp.eq.f32.partialorder %v494_v62, %v498_v60  ;;  %v539_v35 = vsel %vm537_vm2, -inf, %v501_v10  ;;  %v538_v36 = vsel %vm536_vm9, -inf, %v498_v60 }
 0x697   : > { %v505_v17 = vsel %vm503_vm13, %v1951_v5, 16  ;;  %v504_v18 = vsel %vm502_vm5, %v1951_v5, 16  ;;  %v540_v37 = vmax.f32 %v538_v36, %v539_v35 }
 0x698   : > { %v521_v19 = vsel %vm144_vm0, %v505_v17, 2147483647  ;;  %v506_v20 = vsel %vm144_vm0, %v504_v18, 2147483647  ;;  %v1829_v17 = vmov 0  }
 0x699   : > { %v523_v21 = vshra.s32 %v521_v19, 16  ;;  %v508_v22 = vshra.s32 %v506_v20, 16  ;;  %v507_v25 = vand.u32 65535, %v506_v20  ;;  %v522_v26 = vand.u32 65535, %v521_v19 }
 0x69a   : > { %v541_v38 = vrot.slane %v540_v37, 4 }
 0x69b   : > { %v525_v23 = vcvt.s32.f32 %v523_v21  ;;  %v510_v24 = vcvt.s32.f32 %v508_v22  ;;  %v509_v29 = vcvt.s32.f32 %v507_v25  ;;  %v524_v31 = vcvt.s32.f32 %v522_v26 }
 0x69c   : > { %v542_v39 = vmax.f32 %v540_v37, %v541_v38 }
 0x69d   : > { %526 = vmin.xlane.f32.xlu0 %v525_v23  ;;  %511 = vmin.xlane.f32.xlu2 %v510_v24 }
 0x69e   : > { %v543_v40 = vrot.slane %v542_v39, 2 }
 0x6a0   : > { %v544_v41 = vmax.f32 %v542_v39, %v543_v40 }
 0x6a2   : > { %v545_v42 = vrot.slane %v544_v41, 1 }
 0x6a4   : > { %v546_v43 = vmax.f32 %v544_v41, %v545_v42 }
 0x6a6   : > { %vm547_vm10 = vcmp.eq.f32.partialorder %v538_v36, %v546_v43  ;;  %vm548_vm11 = vcmp.eq.f32.partialorder %v539_v35, %v546_v43 }
 0x6a7   : > { %v549_v44 = vsel %vm547_vm10, %v1959_v30, 16  ;;  %v550_v45 = vsel %vm548_vm11, %v1962_v32, 16 }
 0x6a8   : > { %vm551_vm12 = vcmp.lt.s32.totalorder %v549_v44, %v550_v45 }
 0x6a9   : > { %v552_v46 = vsel %vm551_vm12, %v549_v44, %v550_v45 }
 0x6aa   : > { %v553_v47 = vrot.slane %v552_v46, 4 }
 0x6ac   : > { %vm554_vm8 = vcmp.lt.s32.totalorder %v552_v46, %v553_v47 }
 0x6ad   : > { %v555_v48 = vsel %vm554_vm8, %v552_v46, %v553_v47 }
 0x6ae   : > { %v556_v49 = vrot.slane %v555_v48, 2 }
 0x6b0   : > { %vm557_vm14 = vcmp.lt.s32.totalorder %v555_v48, %v556_v49 }
 0x6b1   : > { %v558_v50 = vsel %vm557_vm14, %v555_v48, %v556_v49 }
 0x6b2   : > { %v559_v51 = vrot.slane %v558_v50, 1 }
 0x6b4   : > { %vm560_vm15 = vcmp.lt.s32.totalorder %v558_v50, %v559_v51 }
 0x6b5   : > { %v561_v55 = vsel %vm560_vm15, %v558_v50, %v559_v51 }
 0x6b6   : > { %vm562_vm1 = vcmp.eq.s32.totalorder %v1959_v30, %v561_v55  ;;  %vm563_vm3 = vcmp.eq.s32.totalorder %v1962_v32, %v561_v55 }
 0x710   : > { %v512_v27 = vpop.xlane.xlu2 %511  ;;  %v527_v28 = vpop.xlane.xlu0 %526 }
 0x711   : > { %vm513_vm6 = vcmp.eq.f32.partialorder %v510_v24, %v512_v27  ;;  %vm528_vm7 = vcmp.eq.f32.partialorder %v525_v23, %v527_v28  ;;  %v518_v52 = vcvt.f32.s32 %v512_v27  ;;  %v533_v53 = vcvt.f32.s32 %v527_v28 }
 0x712   : > { %v514_v33 = vsel %vm513_vm6, %v509_v29, inf  ;;  %v529_v34 = vsel %vm528_vm7, %v524_v31, inf }
 0x713   : > { %515 = vmin.xlane.f32.xlu1 %v514_v33  ;;  %530 = vmin.xlane.f32.xlu2 %v529_v34  ;;  %v519_v57 = vshll.u32 %v518_v52, 16  ;;  %v534_v58 = vshll.u32 %v533_v53, 16 }
 0x786   : > { %v516_v54 = vpop.xlane.xlu1 %515  ;;  %v531_v56 = vpop.xlane.xlu2 %530 }
 0x787   : > { %v517_v59 = vcvt.f32.s32 %v516_v54  ;;  %v532_v63 = vcvt.f32.s32 %v531_v56 }
 0x789   : > { %v520_v1 = vadd.s32 %v519_v57, %v517_v59  ;;  %v535_v3 = vadd.s32 %v534_v58, %v532_v63 }
 0x78b   : > { %v564_v8 = vsel %vm562_vm1, %v520_v1, 16  ;;  %v565_v61 = vsel %vm563_vm3, %v535_v3, 16 }
 0x78c   : > { %vm566_vm13 = vcmp.lt.s32.totalorder %v564_v8, %v565_v61 }
 0x78d   : > { %v567_v9 = vsel %vm566_vm13, %v564_v8, %v565_v61 }
 0x78e   : > { %v568_v11 = vrot.slane %v567_v9, 4 }
 0x790   : > { %vm569_vm5 = vcmp.lt.s32.totalorder %v567_v9, %v568_v11 }
 0x791   : > { %v570_v4 = vsel %vm569_vm5, %v567_v9, %v568_v11 }
 0x792   : > { %v571_v12 = vrot.slane %v570_v4, 2 }
 0x794   : > { %vm572_vm6 = vcmp.lt.s32.totalorder %v570_v4, %v571_v12 }
 0x795   : > { %v573_v14 = vsel %vm572_vm6, %v570_v4, %v571_v12 }
 0x796   : > { %v574_v62 = vrot.slane %v573_v14, 1 }
 0x798   : > { %vm575_vm7 = vcmp.lt.s32.totalorder %v573_v14, %v574_v62 }
 0x799   : > { %v576_v15 = vsel %vm575_vm7, %v573_v14, %v574_v62 }
 0x79a   : > { %vm579_vm2 = vcmp.eq.s32.totalorder %v1951_v5, %v576_v15  ;;  %v2112_v16 = vsel %vm563_vm3, %v576_v15, %v2077_v13  ;;  %v2117_v10 = vsel %vm562_vm1, %v576_v15, %v2082_v6 }
 0x79b   : > { %vm2121_vm9 = vmor %vm2086_vm4, %vm579_vm2  ;;  %vm626_vm14 = vcmp.lt.s32.totalorder %v2112_v16, 16  ;;  %vm625_vm15 = vcmp.lt.s32.totalorder %v2117_v10, 16 }
 0x79c   : > { %v581_v18 = vsel %vm2121_vm9, 1, %v1829_v17 }
 0x79d   : > { %vm582_vm10 = vcmp.eq.s32.totalorder %v581_v18, 1 }
 0x79e   : > { %v584_v13 = vsel %vm582_vm10, -1.0, %v1947_v2  ;;  %v583_v19 = vsel %vm582_vm10, -1.0, %v1942_v0 }
 0x79f   : > { %v588_v20 = vsel %vm144_vm0, %v584_v13, -inf  ;;  %v585_v6 = vsel %vm144_vm0, %v583_v19, -inf }
 0x7a0   : > { %589 = vmax.xlane.f32.xlu1 %v588_v20  ;;  %586 = vmax.xlane.f32.xlu0 %v585_v6 }
 0x813   : > { %v590_v7 = vpop.xlane.xlu1 %589  ;;  %v587_v21 = vpop.xlane.xlu0 %586 }
 0x814   : > { %vm592_vm4 = vcmp.eq.f32.partialorder %v584_v13, %v590_v7  ;;  %vm591_vm11 = vcmp.eq.f32.partialorder %v583_v19, %v587_v21  ;;  %v628_v38 = vsel %vm626_vm14, -inf, %v590_v7  ;;  %v627_v39 = vsel %vm625_vm15, -inf, %v587_v21 }
 0x815   : > { %v594_v22 = vsel %vm592_vm4, %v1951_v5, 16  ;;  %v593_v23 = vsel %vm591_vm11, %v1951_v5, 16  ;;  %v629_v40 = vmax.f32 %v627_v39, %v628_v38 }
 0x816   : > { %v610_v24 = vsel %vm144_vm0, %v594_v22, 2147483647  ;;  %v595_v2 = vsel %vm144_vm0, %v593_v23, 2147483647  ;;  %v2163_v22 = vld [vmem:[%s1935_s24 + $0x8] sm:$0xff]  ;;  %v2167_v23 = vld [vmem:[%s1935_s24] sm:$0xff] }
 0x817   : > { %v612_v25 = vshra.s32 %v610_v24, 16  ;;  %v597_v0 = vshra.s32 %v595_v2, 16  ;;  %v596_v28 = vand.u32 65535, %v595_v2  ;;  %v611_v29 = vand.u32 65535, %v610_v24 }
 0x818   : > { %v630_v41 = vrot.slane %v629_v40, 4 }
 0x819   : > { %v614_v26 = vcvt.s32.f32 %v612_v25  ;;  %v599_v27 = vcvt.s32.f32 %v597_v0  ;;  %v598_v34 = vcvt.s32.f32 %v596_v28  ;;  %v613_v35 = vcvt.s32.f32 %v611_v29 }
 0x81a   : > { %v631_v42 = vmax.f32 %v629_v40, %v630_v41 }
 0x81b   : > { %615 = vmin.xlane.f32.xlu0 %v614_v26  ;;  %600 = vmin.xlane.f32.xlu2 %v599_v27 }
 0x81c   : > { %v632_v43 = vrot.slane %v631_v42, 2 }
 0x81e   : > { %v633_v44 = vmax.f32 %v631_v42, %v632_v43 }
 0x820   : > { %v634_v45 = vrot.slane %v633_v44, 1 }
 0x822   : > { %v635_v46 = vmax.f32 %v633_v44, %v634_v45 }
 0x824   : > { %vm636_vm1 = vcmp.eq.f32.partialorder %v627_v39, %v635_v46  ;;  %vm637_vm3 = vcmp.eq.f32.partialorder %v628_v38, %v635_v46 }
 0x825   : > { %v638_v47 = vsel %vm636_vm1, %v1959_v30, 16  ;;  %v639_v48 = vsel %vm637_vm3, %v1962_v32, 16 }
 0x826   : > { %vm640_vm13 = vcmp.lt.s32.totalorder %v638_v47, %v639_v48 }
 0x827   : > { %v641_v49 = vsel %vm640_vm13, %v638_v47, %v639_v48 }
 0x828   : > { %v642_v50 = vrot.slane %v641_v49, 4 }
 0x82a   : > { %vm643_vm5 = vcmp.lt.s32.totalorder %v641_v49, %v642_v50 }
 0x82b   : > { %v644_v51 = vsel %vm643_vm5, %v641_v49, %v642_v50 }
 0x82c   : > { %v645_v52 = vrot.slane %v644_v51, 2 }
 0x82e   : > { %vm646_vm6 = vcmp.lt.s32.totalorder %v644_v51, %v645_v52 }
 0x82f   : > { %v647_v53 = vsel %vm646_vm6, %v644_v51, %v645_v52 }
 0x830   : > { %v648_v54 = vrot.slane %v647_v53, 1 }
 0x832   : > { %vm649_vm7 = vcmp.lt.s32.totalorder %v647_v53, %v648_v54 }
 0x833   : > { %v650_v58 = vsel %vm649_vm7, %v647_v53, %v648_v54 }
 0x834   : > { %vm651_vm2 = vcmp.eq.s32.totalorder %v1959_v30, %v650_v58  ;;  %vm652_vm10 = vcmp.eq.s32.totalorder %v1962_v32, %v650_v58 }
 0x88e   : > { %v601_v31 = vpop.xlane.xlu2 %600  ;;  %v616_v33 = vpop.xlane.xlu0 %615 }
 0x88f   : > { %vm602_vm12 = vcmp.eq.f32.partialorder %v599_v27, %v601_v31  ;;  %vm617_vm8 = vcmp.eq.f32.partialorder %v614_v26, %v616_v33  ;;  %v607_v55 = vcvt.f32.s32 %v601_v31  ;;  %v622_v56 = vcvt.f32.s32 %v616_v33 }
 0x890   : > { %v603_v36 = vsel %vm602_vm12, %v598_v34, inf  ;;  %v618_v37 = vsel %vm617_vm8, %v613_v35, inf }
 0x891   : > { %604 = vmin.xlane.f32.xlu1 %v603_v36  ;;  %619 = vmin.xlane.f32.xlu2 %v618_v37  ;;  %v608_v63 = vshll.u32 %v607_v55, 16  ;;  %v623_v1 = vshll.u32 %v622_v56, 16 }
 0x904   : > { %v605_v57 = vpop.xlane.xlu1 %604  ;;  %v620_v59 = vpop.xlane.xlu2 %619 }
 0x905   : > { %v606_v3 = vcvt.f32.s32 %v605_v57  ;;  %v621_v8 = vcvt.f32.s32 %v620_v59 }
 0x907   : > { %v609_v61 = vadd.s32 %v608_v63, %v606_v3  ;;  %v624_v9 = vadd.s32 %v623_v1, %v621_v8 }
 0x909   : > { %v653_v11 = vsel %vm651_vm2, %v609_v61, 16  ;;  %v654_v4 = vsel %vm652_vm10, %v624_v9, 16 }
 0x90a   : > { %vm655_vm4 = vcmp.lt.s32.totalorder %v653_v11, %v654_v4 }
 0x90b   : > { %v656_v12 = vsel %vm655_vm4, %v653_v11, %v654_v4 }
 0x90c   : > { %v657_v14 = vrot.slane %v656_v12, 4 }
 0x90e   : > { %vm658_vm11 = vcmp.lt.s32.totalorder %v656_v12, %v657_v14 }
 0x90f   : > { %v659_v62 = vsel %vm658_vm11, %v656_v12, %v657_v14 }
 0x910   : > { %v660_v15 = vrot.slane %v659_v62, 2 }
 0x912   : > { %vm661_vm12 = vcmp.lt.s32.totalorder %v659_v62, %v660_v15 }
 0x913   : > { %v662_v18 = vsel %vm661_vm12, %v659_v62, %v660_v15 }
 0x914   : > { %v663_v13 = vrot.slane %v662_v18, 1 }
 0x916   : > { %vm664_vm8 = vcmp.lt.s32.totalorder %v662_v18, %v663_v13 }
 0x917   : > { %v665_v19 = vsel %vm664_vm8, %v662_v18, %v663_v13 }
 0x918   : > { %vm668_vm14 = vcmp.eq.s32.totalorder %v1951_v5, %v665_v19  ;;  %v2146_v20 = vsel %vm652_vm10, %v665_v19, %v2112_v16  ;;  %v2151_v6 = vsel %vm651_vm2, %v665_v19, %v2117_v10 }
 0x919   : > { %vm2155_vm15 = vmor %vm2121_vm9, %vm668_vm14  ;;  %vm715_vm6 = vcmp.lt.s32.totalorder %v2146_v20, 16  ;;  %vm714_vm7 = vcmp.lt.s32.totalorder %v2151_v6, 16 }
 0x91a   : > { %v670_v21 = vsel %vm2155_vm15, 1, %v1829_v17 }
 0x91b   : > { %vm671_vm1 = vcmp.eq.s32.totalorder %v670_v21, 1 }
 0x91c   : > { %v673_v16 = vsel %vm671_vm1, -1.0, %v2163_v22  ;;  %v672_v10 = vsel %vm671_vm1, -1.0, %v2167_v23 }
 0x91d   : > { %v677_v24 = vsel %vm144_vm0, %v673_v16, -inf  ;;  %v674_v60 = vsel %vm144_vm0, %v672_v10, -inf }
 0x91e   : > { %678 = vmax.xlane.f32.xlu1 %v677_v24  ;;  %675 = vmax.xlane.f32.xlu0 %v674_v60 }
 0x991   : > { %v679_v2 = vpop.xlane.xlu1 %678  ;;  %v676_v25 = vpop.xlane.xlu0 %675 }
 0x992   : > { %vm681_vm9 = vcmp.eq.f32.partialorder %v673_v16, %v679_v2  ;;  %vm680_vm3 = vcmp.eq.f32.partialorder %v672_v10, %v676_v25  ;;  %v717_v43 = vsel %vm715_vm6, -inf, %v679_v2  ;;  %v716_v44 = vsel %vm714_vm7, -inf, %v676_v25 }
 0x993   : > { %v683_v0 = vsel %vm681_vm9, %v1951_v5, 16  ;;  %v682_v26 = vsel %vm680_vm3, %v1951_v5, 16  ;;  %v718_v45 = vmax.f32 %v716_v44, %v717_v43 }
 0x994   : > { %v699_v27 = vsel %vm144_vm0, %v683_v0, 2147483647  ;;  %v684_v28 = vsel %vm144_vm0, %v682_v26, 2147483647 }
 0x995   : > { %v701_v29 = vshra.s32 %v699_v27, 16  ;;  %v686_v31 = vshra.s32 %v684_v28, 16  ;;  %v685_v35 = vand.u32 65535, %v684_v28  ;;  %v700_v36 = vand.u32 65535, %v699_v27 }
 0x996   : > { %v719_v46 = vrot.slane %v718_v45, 4 }
 0x997   : > { %v703_v33 = vcvt.s32.f32 %v701_v29  ;;  %v688_v34 = vcvt.s32.f32 %v686_v31  ;;  %v687_v39 = vcvt.s32.f32 %v685_v35  ;;  %v702_v40 = vcvt.s32.f32 %v700_v36 }
 0x998   : > { %v720_v47 = vmax.f32 %v718_v45, %v719_v46 }
 0x999   : > { %704 = vmin.xlane.f32.xlu0 %v703_v33  ;;  %689 = vmin.xlane.f32.xlu2 %v688_v34 }
 0x99a   : > { %v721_v48 = vrot.slane %v720_v47, 2 }
 0x99c   : > { %v722_v49 = vmax.f32 %v720_v47, %v721_v48 }
 0x99e   : > { %v723_v50 = vrot.slane %v722_v49, 1 }
 0x9a0   : > { %v724_v51 = vmax.f32 %v722_v49, %v723_v50 }
 0x9a2   : > { %vm725_vm2 = vcmp.eq.f32.partialorder %v716_v44, %v724_v51  ;;  %vm726_vm10 = vcmp.eq.f32.partialorder %v717_v43, %v724_v51 }
 0x9a3   : > { %v727_v52 = vsel %vm725_vm2, %v1959_v30, 16  ;;  %v728_v53 = vsel %vm726_vm10, %v1962_v32, 16 }
 0x9a4   : > { %vm729_vm4 = vcmp.lt.s32.totalorder %v727_v52, %v728_v53 }
 0x9a5   : > { %v730_v54 = vsel %vm729_vm4, %v727_v52, %v728_v53 }
 0x9a6   : > { %v731_v55 = vrot.slane %v730_v54, 4 }
 0x9a8   : > { %vm732_vm11 = vcmp.lt.s32.totalorder %v730_v54, %v731_v55 }
 0x9a9   : > { %v733_v56 = vsel %vm732_vm11, %v730_v54, %v731_v55 }
 0x9aa   : > { %v734_v57 = vrot.slane %v733_v56, 2 }
 0x9ac   : > { %vm735_vm12 = vcmp.lt.s32.totalorder %v733_v56, %v734_v57 }
 0x9ad   : > { %v736_v58 = vsel %vm735_vm12, %v733_v56, %v734_v57 }
 0x9ae   : > { %v737_v59 = vrot.slane %v736_v58, 1 }
 0x9b0   : > { %vm738_vm8 = vcmp.lt.s32.totalorder %v736_v58, %v737_v59 }
 0x9b1   : > { %v739_v8 = vsel %vm738_vm8, %v736_v58, %v737_v59 }
 0x9b2   : > { %vm740_vm14 = vcmp.eq.s32.totalorder %v1959_v30, %v739_v8  ;;  %vm741_vm1 = vcmp.eq.s32.totalorder %v1962_v32, %v739_v8 }
 0xa0c   : > { %v690_v37 = vpop.xlane.xlu2 %689  ;;  %v705_v38 = vpop.xlane.xlu0 %704 }
 0xa0d   : > { %vm691_vm13 = vcmp.eq.f32.partialorder %v688_v34, %v690_v37  ;;  %vm706_vm5 = vcmp.eq.f32.partialorder %v703_v33, %v705_v38  ;;  %v696_v63 = vcvt.f32.s32 %v690_v37  ;;  %v711_v1 = vcvt.f32.s32 %v705_v38 }
 0xa0e   : > { %v692_v41 = vsel %vm691_vm13, %v687_v39, inf  ;;  %v707_v42 = vsel %vm706_vm5, %v702_v40, inf }
 0xa0f   : > { %693 = vmin.xlane.f32.xlu1 %v692_v41  ;;  %708 = vmin.xlane.f32.xlu2 %v707_v42  ;;  %v697_v9 = vshll.u32 %v696_v63, 16  ;;  %v712_v11 = vshll.u32 %v711_v1, 16 }
 0xa82   : > { %v694_v3 = vpop.xlane.xlu1 %693  ;;  %v709_v61 = vpop.xlane.xlu2 %708 }
 0xa83   : > { %v695_v4 = vcvt.f32.s32 %v694_v3  ;;  %v710_v12 = vcvt.f32.s32 %v709_v61 }
 0xa85   : > { %v698_v14 = vadd.s32 %v697_v9, %v695_v4  ;;  %v713_v62 = vadd.s32 %v712_v11, %v710_v12 }
 0xa87   : > { %v742_v15 = vsel %vm740_vm14, %v698_v14, 16  ;;  %v743_v18 = vsel %vm741_vm1, %v713_v62, 16 }
 0xa88   : > { %vm744_vm9 = vcmp.lt.s32.totalorder %v742_v15, %v743_v18 }
 0xa89   : > { %v745_v13 = vsel %vm744_vm9, %v742_v15, %v743_v18 }
 0xa8a   : > { %v746_v19 = vrot.slane %v745_v13, 4 }
 0xa8c   : > { %vm747_vm3 = vcmp.lt.s32.totalorder %v745_v13, %v746_v19 }
 0xa8d   : > { %v748_v21 = vsel %vm747_vm3, %v745_v13, %v746_v19 }
 0xa8e   : > { %v749_v16 = vrot.slane %v748_v21, 2 }
 0xa90   : > { %vm750_vm13 = vcmp.lt.s32.totalorder %v748_v21, %v749_v16 }
 0xa91   : > { %v751_v10 = vsel %vm750_vm13, %v748_v21, %v749_v16 }
 0xa92   : > { %v752_v24 = vrot.slane %v751_v10, 1 }
 0xa94   : > { %vm753_vm5 = vcmp.lt.s32.totalorder %v751_v10, %v752_v24 }
 0xa95   : > { %v754_v60 = vsel %vm753_vm5, %v751_v10, %v752_v24 }
 0xa96   : > { %vm757_vm6 = vcmp.eq.s32.totalorder %v1951_v5, %v754_v60  ;;  %v2186_v2 = vsel %vm741_vm1, %v754_v60, %v2146_v20  ;;  %v2191_v25 = vsel %vm740_vm14, %v754_v60, %v2151_v6 }
 0xa97   : > { %vm2195_vm7 = vmor %vm2155_vm15, %vm757_vm6  ;;  %vm804_vm12 = vcmp.lt.s32.totalorder %v2186_v2, 16  ;;  %vm803_vm8 = vcmp.lt.s32.totalorder %v2191_v25, 16 }
 0xa98   : > { %v759_v26 = vsel %vm2195_vm7, 1, %v1829_v17 }
 0xa99   : > { %vm760_vm2 = vcmp.eq.s32.totalorder %v759_v26, 1 }
 0xa9a   : > { %v762_v27 = vsel %vm760_vm2, -1.0, %v2163_v22  ;;  %v761_v20 = vsel %vm760_vm2, -1.0, %v2167_v23 }
 0xa9b   : > { %v766_v28 = vsel %vm144_vm0, %v762_v27, -inf  ;;  %v763_v6 = vsel %vm144_vm0, %v761_v20, -inf }
 0xa9c   : > { %767 = vmax.xlane.f32.xlu1 %v766_v28  ;;  %764 = vmax.xlane.f32.xlu0 %v763_v6 }
 0xb0f   : > { %v768_v7 = vpop.xlane.xlu1 %767  ;;  %v765_v29 = vpop.xlane.xlu0 %764 }
 0xb10   : > { %vm770_vm15 = vcmp.eq.f32.partialorder %v762_v27, %v768_v7  ;;  %vm769_vm10 = vcmp.eq.f32.partialorder %v761_v20, %v765_v29  ;;  %v806_v48 = vsel %vm804_vm12, -inf, %v768_v7  ;;  %v805_v49 = vsel %vm803_vm8, -inf, %v765_v29 }
 0xb11   : > { %v772_v31 = vsel %vm770_vm15, %v1951_v5, 16  ;;  %v771_v33 = vsel %vm769_vm10, %v1951_v5, 16  ;;  %v807_v50 = vmax.f32 %v805_v49, %v806_v48 }
 0xb12   : > { %v788_v34 = vsel %vm144_vm0, %v772_v31, 2147483647  ;;  %v773_v35 = vsel %vm144_vm0, %v771_v33, 2147483647 }
 0xb13   : > { %v790_v36 = vshra.s32 %v788_v34, 16  ;;  %v775_v37 = vshra.s32 %v773_v35, 16  ;;  %v774_v40 = vand.u32 65535, %v773_v35  ;;  %v789_v41 = vand.u32 65535, %v788_v34 }
 0xb14   : > { %v808_v51 = vrot.slane %v807_v50, 4 }
 0xb15   : > { %v792_v38 = vcvt.s32.f32 %v790_v36  ;;  %v777_v39 = vcvt.s32.f32 %v775_v37  ;;  %v776_v44 = vcvt.s32.f32 %v774_v40  ;;  %v791_v45 = vcvt.s32.f32 %v789_v41 }
 0xb16   : > { %v809_v52 = vmax.f32 %v807_v50, %v808_v51 }
 0xb17   : > { %793 = vmin.xlane.f32.xlu0 %v792_v38  ;;  %778 = vmin.xlane.f32.xlu2 %v777_v39 }
 0xb18   : > { %v810_v53 = vrot.slane %v809_v52, 2 }
 0xb1a   : > { %v811_v54 = vmax.f32 %v809_v52, %v810_v53 }
 0xb1c   : > { %v812_v55 = vrot.slane %v811_v54, 1 }
 0xb1e   : > { %v813_v56 = vmax.f32 %v811_v54, %v812_v55 }
 0xb20   : > { %vm814_vm14 = vcmp.eq.f32.partialorder %v805_v49, %v813_v56  ;;  %vm815_vm1 = vcmp.eq.f32.partialorder %v806_v48, %v813_v56 }
 0xb21   : > { %v816_v57 = vsel %vm814_vm14, %v1959_v30, 16  ;;  %v817_v58 = vsel %vm815_vm1, %v1962_v32, 16 }
 0xb22   : > { %vm818_vm9 = vcmp.lt.s32.totalorder %v816_v57, %v817_v58 }
 0xb23   : > { %v819_v59 = vsel %vm818_vm9, %v816_v57, %v817_v58 }
 0xb24   : > { %v820_v63 = vrot.slane %v819_v59, 4 }
 0xb26   : > { %vm821_vm3 = vcmp.lt.s32.totalorder %v819_v59, %v820_v63 }
 0xb27   : > { %v822_v1 = vsel %vm821_vm3, %v819_v59, %v820_v63 }
 0xb28   : > { %v823_v3 = vrot.slane %v822_v1, 2 }
 0xb2a   : > { %vm824_vm13 = vcmp.lt.s32.totalorder %v822_v1, %v823_v3 }
 0xb2b   : > { %v825_v8 = vsel %vm824_vm13, %v822_v1, %v823_v3 }
 0xb2c   : > { %v826_v61 = vrot.slane %v825_v8, 1 }
 0xb2e   : > { %vm827_vm5 = vcmp.lt.s32.totalorder %v825_v8, %v826_v61 }
 0xb2f   : > { %v828_v12 = vsel %vm827_vm5, %v825_v8, %v826_v61 }
 0xb30   : > { %vm829_vm6 = vcmp.eq.s32.totalorder %v1959_v30, %v828_v12  ;;  %vm830_vm2 = vcmp.eq.s32.totalorder %v1962_v32, %v828_v12 }
 0xb8a   : > { %v779_v42 = vpop.xlane.xlu2 %778  ;;  %v794_v43 = vpop.xlane.xlu0 %793 }
 0xb8b   : > { %vm780_vm4 = vcmp.eq.f32.partialorder %v777_v39, %v779_v42  ;;  %vm795_vm11 = vcmp.eq.f32.partialorder %v792_v38, %v794_v43  ;;  %v785_v9 = vcvt.f32.s32 %v779_v42  ;;  %v800_v11 = vcvt.f32.s32 %v794_v43 }
 0xb8c   : > { %v781_v46 = vsel %vm780_vm4, %v776_v44, inf  ;;  %v796_v47 = vsel %vm795_vm11, %v791_v45, inf }
 0xb8d   : > { %782 = vmin.xlane.f32.xlu1 %v781_v46  ;;  %797 = vmin.xlane.f32.xlu2 %v796_v47  ;;  %v786_v62 = vshll.u32 %v785_v9, 16  ;;  %v801_v15 = vshll.u32 %v800_v11, 16 }
 0xc00   : > { %v783_v4 = vpop.xlane.xlu1 %782  ;;  %v798_v14 = vpop.xlane.xlu2 %797 }
 0xc01   : > { %v784_v18 = vcvt.f32.s32 %v783_v4  ;;  %v799_v13 = vcvt.f32.s32 %v798_v14 }
 0xc03   : > { %v787_v19 = vadd.s32 %v786_v62, %v784_v18  ;;  %v802_v21 = vadd.s32 %v801_v15, %v799_v13 }
 0xc05   : > { %v831_v16 = vsel %vm829_vm6, %v787_v19, 16  ;;  %v832_v10 = vsel %vm830_vm2, %v802_v21, 16 }
 0xc06   : > { %vm833_vm15 = vcmp.lt.s32.totalorder %v831_v16, %v832_v10 }
 0xc07   : > { %v834_v24 = vsel %vm833_vm15, %v831_v16, %v832_v10 }
 0xc08   : > { %v835_v60 = vrot.slane %v834_v24, 4 }
 0xc0a   : > { %vm836_vm10 = vcmp.lt.s32.totalorder %v834_v24, %v835_v60 }
 0xc0b   : > { %v837_v26 = vsel %vm836_vm10, %v834_v24, %v835_v60 }
 0xc0c   : > { %v838_v27 = vrot.slane %v837_v26, 2 }
 0xc0e   : > { %vm839_vm4 = vcmp.lt.s32.totalorder %v837_v26, %v838_v27 }
 0xc0f   : > { %v840_v20 = vsel %vm839_vm4, %v837_v26, %v838_v27 }
 0xc10   : > { %v841_v28 = vrot.slane %v840_v20, 1 }
 0xc12   : > { %vm842_vm11 = vcmp.lt.s32.totalorder %v840_v20, %v841_v28 }
 0xc13   : > { %v843_v6 = vsel %vm842_vm11, %v840_v20, %v841_v28 }
 0xc14   : > { %vm846_vm12 = vcmp.eq.s32.totalorder %v1951_v5, %v843_v6  ;;  %v2220_v7 = vsel %vm830_vm2, %v843_v6, %v2186_v2  ;;  %v2225_v29 = vsel %vm829_vm6, %v843_v6, %v2191_v25 }
 0xc15   : > { %vm2229_vm8 = vmor %vm2195_vm7, %vm846_vm12  ;;  %vm893_vm13 = vcmp.lt.s32.totalorder %v2220_v7, 16  ;;  %vm892_vm5 = vcmp.lt.s32.totalorder %v2225_v29, 16 }
 0xc16   : > { %v848_v33 = vsel %vm2229_vm8, 1, %v1829_v17 }
 0xc17   : > { %vm849_vm14 = vcmp.eq.s32.totalorder %v848_v33, 1 }
 0xc18   : > { %v851_v34 = vsel %vm849_vm14, -1.0, %v2163_v22  ;;  %v850_v2 = vsel %vm849_vm14, -1.0, %v2167_v23 }
 0xc19   : > { %v855_v35 = vsel %vm144_vm0, %v851_v34, -inf  ;;  %v852_v25 = vsel %vm144_vm0, %v850_v2, -inf }
 0xc1a   : > { %856 = vmax.xlane.f32.xlu1 %v855_v35  ;;  %853 = vmax.xlane.f32.xlu0 %v852_v25 }
 0xc8d   : > { %v857_v0 = vpop.xlane.xlu1 %856  ;;  %v854_v36 = vpop.xlane.xlu0 %853 }
 0xc8e   : > { %vm859_vm7 = vcmp.eq.f32.partialorder %v851_v34, %v857_v0  ;;  %vm858_vm1 = vcmp.eq.f32.partialorder %v850_v2, %v854_v36  ;;  %v895_v53 = vsel %vm893_vm13, -inf, %v857_v0  ;;  %v894_v54 = vsel %vm892_vm5, -inf, %v854_v36 }
 0xc8f   : > { %v861_v37 = vsel %vm859_vm7, %v1951_v5, 16  ;;  %v860_v38 = vsel %vm858_vm1, %v1951_v5, 16  ;;  %v896_v55 = vmax.f32 %v894_v54, %v895_v53 }
 0xc90   : > { %v877_v39 = vsel %vm144_vm0, %v861_v37, 2147483647  ;;  %v862_v40 = vsel %vm144_vm0, %v860_v38, 2147483647 }
 0xc91   : > { %v879_v41 = vshra.s32 %v877_v39, 16  ;;  %v864_v42 = vshra.s32 %v862_v40, 16  ;;  %v863_v45 = vand.u32 65535, %v862_v40  ;;  %v878_v46 = vand.u32 65535, %v877_v39 }
 0xc92   : > { %v897_v56 = vrot.slane %v896_v55, 4 }
 0xc93   : > { %v881_v43 = vcvt.s32.f32 %v879_v41  ;;  %v866_v44 = vcvt.s32.f32 %v864_v42  ;;  %v865_v49 = vcvt.s32.f32 %v863_v45  ;;  %v880_v50 = vcvt.s32.f32 %v878_v46 }
 0xc94   : > { %v898_v57 = vmax.f32 %v896_v55, %v897_v56 }
 0xc95   : > { %882 = vmin.xlane.f32.xlu0 %v881_v43  ;;  %867 = vmin.xlane.f32.xlu2 %v866_v44 }
 0xc96   : > { %v899_v58 = vrot.slane %v898_v57, 2 }
 0xc98   : > { %v900_v59 = vmax.f32 %v898_v57, %v899_v58 }
 0xc9a   : > { %v901_v63 = vrot.slane %v900_v59, 1 }
 0xc9c   : > { %v902_v1 = vmax.f32 %v900_v59, %v901_v63 }
 0xc9e   : > { %vm903_vm6 = vcmp.eq.f32.partialorder %v894_v54, %v902_v1  ;;  %vm904_vm2 = vcmp.eq.f32.partialorder %v895_v53, %v902_v1 }
 0xc9f   : > { %v905_v3 = vsel %vm903_vm6, %v1959_v30, 16  ;;  %v906_v8 = vsel %vm904_vm2, %v1962_v32, 16 }
 0xca0   : > { %vm907_vm15 = vcmp.lt.s32.totalorder %v905_v3, %v906_v8 }
 0xca1   : > { %v908_v61 = vsel %vm907_vm15, %v905_v3, %v906_v8 }
 0xca2   : > { %v909_v9 = vrot.slane %v908_v61, 4 }
 0xca4   : > { %vm910_vm10 = vcmp.lt.s32.totalorder %v908_v61, %v909_v9 }
 0xca5   : > { %v911_v11 = vsel %vm910_vm10, %v908_v61, %v909_v9 }
 0xca6   : > { %v912_v4 = vrot.slane %v911_v11, 2 }
 0xca8   : > { %vm913_vm4 = vcmp.lt.s32.totalorder %v911_v11, %v912_v4 }
 0xca9   : > { %v914_v12 = vsel %vm913_vm4, %v911_v11, %v912_v4 }
 0xcaa   : > { %v915_v14 = vrot.slane %v914_v12, 1 }
 0xcac   : > { %vm916_vm11 = vcmp.lt.s32.totalorder %v914_v12, %v915_v14 }
 0xcad   : > { %v917_v13 = vsel %vm916_vm11, %v914_v12, %v915_v14 }
 0xcae   : > { %vm918_vm12 = vcmp.eq.s32.totalorder %v1959_v30, %v917_v13  ;;  %vm919_vm14 = vcmp.eq.s32.totalorder %v1962_v32, %v917_v13 }
 0xd08   : > { %v868_v47 = vpop.xlane.xlu2 %867  ;;  %v883_v48 = vpop.xlane.xlu0 %882 }
 0xd09   : > { %vm869_vm9 = vcmp.eq.f32.partialorder %v866_v44, %v868_v47  ;;  %vm884_vm3 = vcmp.eq.f32.partialorder %v881_v43, %v883_v48  ;;  %v874_v62 = vcvt.f32.s32 %v868_v47  ;;  %v889_v15 = vcvt.f32.s32 %v883_v48 }
 0xd0a   : > { %v870_v51 = vsel %vm869_vm9, %v865_v49, inf  ;;  %v885_v52 = vsel %vm884_vm3, %v880_v50, inf }
 0xd0b   : > { %871 = vmin.xlane.f32.xlu1 %v870_v51  ;;  %886 = vmin.xlane.f32.xlu2 %v885_v52  ;;  %v875_v21 = vshll.u32 %v874_v62, 16  ;;  %v890_v16 = vshll.u32 %v889_v15, 16 }
 0xd7e   : > { %v872_v18 = vpop.xlane.xlu1 %871  ;;  %v887_v19 = vpop.xlane.xlu2 %886 }
 0xd7f   : > { %v873_v10 = vcvt.f32.s32 %v872_v18  ;;  %v888_v24 = vcvt.f32.s32 %v887_v19 }
 0xd81   : > { %v876_v60 = vadd.s32 %v875_v21, %v873_v10  ;;  %v891_v26 = vadd.s32 %v890_v16, %v888_v24 }
 0xd83   : > { %v920_v27 = vsel %vm918_vm12, %v876_v60, 16  ;;  %v921_v20 = vsel %vm919_vm14, %v891_v26, 16 }
 0xd84   : > { %vm922_vm7 = vcmp.lt.s32.totalorder %v920_v27, %v921_v20 }
 0xd85   : > { %v923_v28 = vsel %vm922_vm7, %v920_v27, %v921_v20 }
 0xd86   : > { %v924_v6 = vrot.slane %v923_v28, 4 }
 0xd88   : > { %vm925_vm1 = vcmp.lt.s32.totalorder %v923_v28, %v924_v6 }
 0xd89   : > { %v926_v33 = vsel %vm925_vm1, %v923_v28, %v924_v6 }
 0xd8a   : > { %v927_v34 = vrot.slane %v926_v33, 2 }
 0xd8c   : > { %vm928_vm9 = vcmp.lt.s32.totalorder %v926_v33, %v927_v34 }
 0xd8d   : > { %v929_v2 = vsel %vm928_vm9, %v926_v33, %v927_v34 }
 0xd8e   : > { %v930_v35 = vrot.slane %v929_v2, 1 }
 0xd90   : > { %vm931_vm3 = vcmp.lt.s32.totalorder %v929_v2, %v930_v35 }
 0xd91   : > { %v932_v25 = vsel %vm931_vm3, %v929_v2, %v930_v35 }
 0xd92   : > { %vm935_vm13 = vcmp.eq.s32.totalorder %v1951_v5, %v932_v25  ;;  %v2254_v0 = vsel %vm919_vm14, %v932_v25, %v2220_v7  ;;  %v2259_v36 = vsel %vm918_vm12, %v932_v25, %v2225_v29 }
 0xd93   : > { %vm2263_vm5 = vmor %vm2229_vm8, %vm935_vm13  ;;  %vm982_vm4 = vcmp.lt.s32.totalorder %v2254_v0, 16  ;;  %vm981_vm11 = vcmp.lt.s32.totalorder %v2259_v36, 16 }
 0xd94   : > { %v937_v38 = vsel %vm2263_vm5, 1, %v1829_v17 }
 0xd95   : > { %vm938_vm6 = vcmp.eq.s32.totalorder %v937_v38, 1 }
 0xd96   : > { %v940_v39 = vsel %vm938_vm6, -1.0, %v2163_v22  ;;  %v939_v7 = vsel %vm938_vm6, -1.0, %v2167_v23 }
 0xd97   : > { %v944_v40 = vsel %vm144_vm0, %v940_v39, -inf  ;;  %v941_v29 = vsel %vm144_vm0, %v939_v7, -inf }
 0xd98   : > { %945 = vmax.xlane.f32.xlu1 %v944_v40  ;;  %942 = vmax.xlane.f32.xlu0 %v941_v29 }
 0xe0b   : > { %v946_v31 = vpop.xlane.xlu1 %945  ;;  %v943_v41 = vpop.xlane.xlu0 %942 }
 0xe0c   : > { %vm948_vm8 = vcmp.eq.f32.partialorder %v940_v39, %v946_v31  ;;  %vm947_vm2 = vcmp.eq.f32.partialorder %v939_v7, %v943_v41  ;;  %v984_v58 = vsel %vm982_vm4, -inf, %v946_v31  ;;  %v983_v59 = vsel %vm981_vm11, -inf, %v943_v41 }
 0xe0d   : > { %v950_v42 = vsel %vm948_vm8, %v1951_v5, 16  ;;  %v949_v43 = vsel %vm947_vm2, %v1951_v5, 16  ;;  %v985_v63 = vmax.f32 %v983_v59, %v984_v58 }
 0xe0e   : > { %v966_v44 = vsel %vm144_vm0, %v950_v42, 2147483647  ;;  %v951_v45 = vsel %vm144_vm0, %v949_v43, 2147483647 }
 0xe0f   : > { %v968_v46 = vshra.s32 %v966_v44, 16  ;;  %v953_v47 = vshra.s32 %v951_v45, 16  ;;  %v952_v50 = vand.u32 65535, %v951_v45  ;;  %v967_v51 = vand.u32 65535, %v966_v44 }
 0xe10   : > { %v986_v1 = vrot.slane %v985_v63, 4 }
 0xe11   : > { %v970_v48 = vcvt.s32.f32 %v968_v46  ;;  %v955_v49 = vcvt.s32.f32 %v953_v47  ;;  %v954_v54 = vcvt.s32.f32 %v952_v50  ;;  %v969_v55 = vcvt.s32.f32 %v967_v51 }
 0xe12   : > { %v987_v3 = vmax.f32 %v985_v63, %v986_v1 }
 0xe13   : > { %971 = vmin.xlane.f32.xlu0 %v970_v48  ;;  %956 = vmin.xlane.f32.xlu2 %v955_v49 }
 0xe14   : > { %v988_v8 = vrot.slane %v987_v3, 2 }
 0xe16   : > { %v989_v61 = vmax.f32 %v987_v3, %v988_v8 }
 0xe18   : > { %v990_v9 = vrot.slane %v989_v61, 1 }
 0xe1a   : > { %v991_v11 = vmax.f32 %v989_v61, %v990_v9 }
 0xe1c   : > { %vm992_vm12 = vcmp.eq.f32.partialorder %v983_v59, %v991_v11  ;;  %vm993_vm14 = vcmp.eq.f32.partialorder %v984_v58, %v991_v11 }
 0xe1d   : > { %v994_v4 = vsel %vm992_vm12, %v1959_v30, 16  ;;  %v995_v12 = vsel %vm993_vm14, %v1962_v32, 16 }
 0xe1e   : > { %vm996_vm7 = vcmp.lt.s32.totalorder %v994_v4, %v995_v12 }
 0xe1f   : > { %v997_v14 = vsel %vm996_vm7, %v994_v4, %v995_v12 }
 0xe20   : > { %v998_v62 = vrot.slane %v997_v14, 4 }
 0xe22   : > { %vm999_vm1 = vcmp.lt.s32.totalorder %v997_v14, %v998_v62 }
 0xe23   : > { %v1000_v15 = vsel %vm999_vm1, %v997_v14, %v998_v62 }
 0xe24   : > { %v1001_v18 = vrot.slane %v1000_v15, 2 }
 0xe26   : > { %vm1002_vm9 = vcmp.lt.s32.totalorder %v1000_v15, %v1001_v18 }
 0xe27   : > { %v1003_v13 = vsel %vm1002_vm9, %v1000_v15, %v1001_v18 }
 0xe28   : > { %v1004_v19 = vrot.slane %v1003_v13, 1 }
 0xe2a   : > { %vm1005_vm3 = vcmp.lt.s32.totalorder %v1003_v13, %v1004_v19 }
 0xe2b   : > { %v1006_v24 = vsel %vm1005_vm3, %v1003_v13, %v1004_v19 }
 0xe2c   : > { %vm1007_vm13 = vcmp.eq.s32.totalorder %v1959_v30, %v1006_v24  ;;  %vm1008_vm6 = vcmp.eq.s32.totalorder %v1962_v32, %v1006_v24 }
 0xe86   : > { %v957_v52 = vpop.xlane.xlu2 %956  ;;  %v972_v53 = vpop.xlane.xlu0 %971 }
 0xe87   : > { %vm958_vm15 = vcmp.eq.f32.partialorder %v955_v49, %v957_v52  ;;  %vm973_vm10 = vcmp.eq.f32.partialorder %v970_v48, %v972_v53  ;;  %v963_v21 = vcvt.f32.s32 %v957_v52  ;;  %v978_v16 = vcvt.f32.s32 %v972_v53 }
 0xe88   : > { %v959_v56 = vsel %vm958_vm15, %v954_v54, inf  ;;  %v974_v57 = vsel %vm973_vm10, %v969_v55, inf }
 0xe89   : > { %960 = vmin.xlane.f32.xlu1 %v959_v56  ;;  %975 = vmin.xlane.f32.xlu2 %v974_v57  ;;  %v964_v26 = vshll.u32 %v963_v21, 16  ;;  %v979_v27 = vshll.u32 %v978_v16, 16 }
 0xefc   : > { %v961_v10 = vpop.xlane.xlu1 %960  ;;  %v976_v60 = vpop.xlane.xlu2 %975 }
 0xefd   : > { %v962_v20 = vcvt.f32.s32 %v961_v10  ;;  %v977_v28 = vcvt.f32.s32 %v976_v60 }
 0xeff   : > { %v965_v6 = vadd.s32 %v964_v26, %v962_v20  ;;  %v980_v33 = vadd.s32 %v979_v27, %v977_v28 }
 0xf01   : > { %v1009_v34 = vsel %vm1007_vm13, %v965_v6, 16  ;;  %v1010_v2 = vsel %vm1008_vm6, %v980_v33, 16 }
 0xf02   : > { %vm1011_vm8 = vcmp.lt.s32.totalorder %v1009_v34, %v1010_v2 }
 0xf03   : > { %v1012_v35 = vsel %vm1011_vm8, %v1009_v34, %v1010_v2 }
 0xf04   : > { %v1013_v25 = vrot.slane %v1012_v35, 4 }
 0xf06   : > { %vm1014_vm2 = vcmp.lt.s32.totalorder %v1012_v35, %v1013_v25 }
 0xf07   : > { %v1015_v38 = vsel %vm1014_vm2, %v1012_v35, %v1013_v25 }
 0xf08   : > { %v1016_v39 = vrot.slane %v1015_v38, 2 }
 0xf0a   : > { %vm1017_vm15 = vcmp.lt.s32.totalorder %v1015_v38, %v1016_v39 }
 0xf0b   : > { %v1018_v7 = vsel %vm1017_vm15, %v1015_v38, %v1016_v39 }
 0xf0c   : > { %v1019_v40 = vrot.slane %v1018_v7, 1 }
 0xf0e   : > { %vm1020_vm10 = vcmp.lt.s32.totalorder %v1018_v7, %v1019_v40 }
 0xf0f   : > { %v1021_v29 = vsel %vm1020_vm10, %v1018_v7, %v1019_v40 }
 0xf10   : > { %vm1024_vm4 = vcmp.eq.s32.totalorder %v1951_v5, %v1021_v29  ;;  %v2288_v31 = vsel %vm1008_vm6, %v1021_v29, %v2254_v0  ;;  %v2293_v41 = vsel %vm1007_vm13, %v1021_v29, %v2259_v36 }
 0xf11   : > { %vm2297_vm11 = vmor %vm2263_vm5, %vm1024_vm4  ;;  %vm1071_vm9 = vcmp.lt.s32.totalorder %v2288_v31, 16  ;;  %vm1070_vm3 = vcmp.lt.s32.totalorder %v2293_v41, 16 }
 0xf12   : > { %v1026_v43 = vsel %vm2297_vm11, 1, %v1829_v17 }
 0xf13   : > { %vm1027_vm12 = vcmp.eq.s32.totalorder %v1026_v43, 1 }
 0xf14   : > { %v1029_v44 = vsel %vm1027_vm12, -1.0, %v2163_v22  ;;  %v1028_v0 = vsel %vm1027_vm12, -1.0, %v2167_v23 }
 0xf15   : > { %v1033_v45 = vsel %vm144_vm0, %v1029_v44, -inf  ;;  %v1030_v36 = vsel %vm144_vm0, %v1028_v0, -inf }
 0xf16   : > { %1034 = vmax.xlane.f32.xlu1 %v1033_v45  ;;  %1031 = vmax.xlane.f32.xlu0 %v1030_v36 }
 0xf89   : > { %v1035_v37 = vpop.xlane.xlu1 %1034  ;;  %v1032_v46 = vpop.xlane.xlu0 %1031 }
 0xf8a   : > { %vm1037_vm5 = vcmp.eq.f32.partialorder %v1029_v44, %v1035_v37  ;;  %vm1036_vm14 = vcmp.eq.f32.partialorder %v1028_v0, %v1032_v46  ;;  %v1073_v8 = vsel %vm1071_vm9, -inf, %v1035_v37  ;;  %v1072_v61 = vsel %vm1070_vm3, -inf, %v1032_v46 }
 0xf8b   : > { %v1039_v47 = vsel %vm1037_vm5, %v1951_v5, 16  ;;  %v1038_v48 = vsel %vm1036_vm14, %v1951_v5, 16  ;;  %v1074_v9 = vmax.f32 %v1072_v61, %v1073_v8 }
 0xf8c   : > { %v1055_v49 = vsel %vm144_vm0, %v1039_v47, 2147483647  ;;  %v1040_v50 = vsel %vm144_vm0, %v1038_v48, 2147483647 }
 0xf8d   : > { %v1057_v51 = vshra.s32 %v1055_v49, 16  ;;  %v1042_v52 = vshra.s32 %v1040_v50, 16  ;;  %v1041_v55 = vand.u32 65535, %v1040_v50  ;;  %v1056_v56 = vand.u32 65535, %v1055_v49 }
 0xf8e   : > { %v1075_v11 = vrot.slane %v1074_v9, 4 }
 0xf8f   : > { %v1059_v53 = vcvt.s32.f32 %v1057_v51  ;;  %v1044_v54 = vcvt.s32.f32 %v1042_v52  ;;  %v1043_v59 = vcvt.s32.f32 %v1041_v55  ;;  %v1058_v63 = vcvt.s32.f32 %v1056_v56 }
 0xf90   : > { %v1076_v4 = vmax.f32 %v1074_v9, %v1075_v11 }
 0xf91   : > { %1060 = vmin.xlane.f32.xlu0 %v1059_v53  ;;  %1045 = vmin.xlane.f32.xlu2 %v1044_v54 }
 0xf92   : > { %v1077_v12 = vrot.slane %v1076_v4, 2 }
 0xf94   : > { %v1078_v14 = vmax.f32 %v1076_v4, %v1077_v12 }
 0xf96   : > { %v1079_v62 = vrot.slane %v1078_v14, 1 }
 0xf98   : > { %v1080_v15 = vmax.f32 %v1078_v14, %v1079_v62 }
 0xf9a   : > { %vm1081_vm13 = vcmp.eq.f32.partialorder %v1072_v61, %v1080_v15  ;;  %vm1082_vm6 = vcmp.eq.f32.partialorder %v1073_v8, %v1080_v15 }
 0xf9b   : > { %v1083_v18 = vsel %vm1081_vm13, %v1959_v30, 16  ;;  %v1084_v13 = vsel %vm1082_vm6, %v1962_v32, 16 }
 0xf9c   : > { %vm1085_vm8 = vcmp.lt.s32.totalorder %v1083_v18, %v1084_v13 }
 0xf9d   : > { %v1086_v19 = vsel %vm1085_vm8, %v1083_v18, %v1084_v13 }
 0xf9e   : > { %v1087_v21 = vrot.slane %v1086_v19, 4 }
 0xfa0   : > { %vm1088_vm2 = vcmp.lt.s32.totalorder %v1086_v19, %v1087_v21 }
 0xfa1   : > { %v1089_v16 = vsel %vm1088_vm2, %v1086_v19, %v1087_v21 }
 0xfa2   : > { %v1090_v10 = vrot.slane %v1089_v16, 2 }
 0xfa4   : > { %vm1091_vm15 = vcmp.lt.s32.totalorder %v1089_v16, %v1090_v10 }
 0xfa5   : > { %v1092_v24 = vsel %vm1091_vm15, %v1089_v16, %v1090_v10 }
 0xfa6   : > { %v1093_v60 = vrot.slane %v1092_v24, 1 }
 0xfa8   : > { %vm1094_vm10 = vcmp.lt.s32.totalorder %v1092_v24, %v1093_v60 }
 0xfa9   : > { %v1095_v28 = vsel %vm1094_vm10, %v1092_v24, %v1093_v60 }
 0xfaa   : > { %vm1096_vm4 = vcmp.eq.s32.totalorder %v1959_v30, %v1095_v28  ;;  %vm1097_vm12 = vcmp.eq.s32.totalorder %v1962_v32, %v1095_v28 }
0x1004   : > { %v1046_v57 = vpop.xlane.xlu2 %1045  ;;  %v1061_v58 = vpop.xlane.xlu0 %1060 }
0x1005   : > { %vm1047_vm7 = vcmp.eq.f32.partialorder %v1044_v54, %v1046_v57  ;;  %vm1062_vm1 = vcmp.eq.f32.partialorder %v1059_v53, %v1061_v58  ;;  %v1052_v26 = vcvt.f32.s32 %v1046_v57  ;;  %v1067_v27 = vcvt.f32.s32 %v1061_v58 }
0x1006   : > { %v1048_v1 = vsel %vm1047_vm7, %v1043_v59, inf  ;;  %v1063_v3 = vsel %vm1062_vm1, %v1058_v63, inf }
0x1007   : > { %1049 = vmin.xlane.f32.xlu1 %v1048_v1  ;;  %1064 = vmin.xlane.f32.xlu2 %v1063_v3  ;;  %v1053_v33 = vshll.u32 %v1052_v26, 16  ;;  %v1068_v34 = vshll.u32 %v1067_v27, 16 }
0x107a   : > { %v1050_v20 = vpop.xlane.xlu1 %1049  ;;  %v1065_v6 = vpop.xlane.xlu2 %1064 }
0x107b   : > { %v1051_v2 = vcvt.f32.s32 %v1050_v20  ;;  %v1066_v35 = vcvt.f32.s32 %v1065_v6 }
0x107d   : > { %v1054_v25 = vadd.s32 %v1053_v33, %v1051_v2  ;;  %v1069_v38 = vadd.s32 %v1068_v34, %v1066_v35 }
0x107f   : > { %v1098_v39 = vsel %vm1096_vm4, %v1054_v25, 16  ;;  %v1099_v7 = vsel %vm1097_vm12, %v1069_v38, 16 }
0x1080   : > { %vm1100_vm5 = vcmp.lt.s32.totalorder %v1098_v39, %v1099_v7 }
0x1081   : > { %v1101_v40 = vsel %vm1100_vm5, %v1098_v39, %v1099_v7 }
0x1082   : > { %v1102_v29 = vrot.slane %v1101_v40, 4 }
0x1084   : > { %vm1103_vm14 = vcmp.lt.s32.totalorder %v1101_v40, %v1102_v29 }
0x1085   : > { %v1104_v43 = vsel %vm1103_vm14, %v1101_v40, %v1102_v29 }
0x1086   : > { %v1105_v44 = vrot.slane %v1104_v43, 2 }
0x1088   : > { %vm1106_vm7 = vcmp.lt.s32.totalorder %v1104_v43, %v1105_v44 }
0x1089   : > { %v1107_v0 = vsel %vm1106_vm7, %v1104_v43, %v1105_v44 }
0x108a   : > { %v1108_v45 = vrot.slane %v1107_v0, 1 }
0x108c   : > { %vm1109_vm1 = vcmp.lt.s32.totalorder %v1107_v0, %v1108_v45 }
0x108d   : > { %v1110_v36 = vsel %vm1109_vm1, %v1107_v0, %v1108_v45 }
0x108e   : > { %vm1113_vm9 = vcmp.eq.s32.totalorder %v1951_v5, %v1110_v36  ;;  %v2322_v37 = vsel %vm1097_vm12, %v1110_v36, %v2288_v31  ;;  %v2327_v46 = vsel %vm1096_vm4, %v1110_v36, %v2293_v41 }
0x108f   : > { %vm2331_vm3 = vmor %vm2297_vm11, %vm1113_vm9  ;;  %vm1160_vm15 = vcmp.lt.s32.totalorder %v2322_v37, 16  ;;  %vm1159_vm10 = vcmp.lt.s32.totalorder %v2327_v46, 16 }
0x1090   : > { %v1115_v48 = vsel %vm2331_vm3, 1, %v1829_v17 }
0x1091   : > { %vm1116_vm13 = vcmp.eq.s32.totalorder %v1115_v48, 1 }
0x1092   : > { %v1118_v49 = vsel %vm1116_vm13, -1.0, %v2163_v22  ;;  %v1117_v31 = vsel %vm1116_vm13, -1.0, %v2167_v23 }
0x1093   : > { %v1122_v50 = vsel %vm144_vm0, %v1118_v49, -inf  ;;  %v1119_v41 = vsel %vm144_vm0, %v1117_v31, -inf }
0x1094   : > { %1123 = vmax.xlane.f32.xlu1 %v1122_v50  ;;  %1120 = vmax.xlane.f32.xlu0 %v1119_v41 }
0x1107   : > { %v1124_v42 = vpop.xlane.xlu1 %1123  ;;  %v1121_v51 = vpop.xlane.xlu0 %1120 }
0x1108   : > { %vm1126_vm11 = vcmp.eq.f32.partialorder %v1118_v49, %v1124_v42  ;;  %vm1125_vm6 = vcmp.eq.f32.partialorder %v1117_v31, %v1121_v51  ;;  %v1162_v11 = vsel %vm1160_vm15, -inf, %v1124_v42  ;;  %v1161_v4 = vsel %vm1159_vm10, -inf, %v1121_v51 }
0x1109   : > { %v1128_v52 = vsel %vm1126_vm11, %v1951_v5, 16  ;;  %v1127_v53 = vsel %vm1125_vm6, %v1951_v5, 16  ;;  %v1163_v12 = vmax.f32 %v1161_v4, %v1162_v11 }
0x110a   : > { %v1144_v54 = vsel %vm144_vm0, %v1128_v52, 2147483647  ;;  %v1129_v22 = vsel %vm144_vm0, %v1127_v53, 2147483647  ;;  %v2373_v52 = vld [vmem:[%s1935_s24 + $0x8] sm:$0xff]  ;;  %v2377_v53 = vld [vmem:[%s1935_s24] sm:$0xff] }
0x110b   : > { %v1146_v55 = vshra.s32 %v1144_v54, 16  ;;  %v1131_v23 = vshra.s32 %v1129_v22, 16  ;;  %v1130_v58 = vand.u32 65535, %v1129_v22  ;;  %v1145_v59 = vand.u32 65535, %v1144_v54 }
0x110c   : > { %v1164_v14 = vrot.slane %v1163_v12, 4 }
0x110d   : > { %v1148_v56 = vcvt.s32.f32 %v1146_v55  ;;  %v1133_v57 = vcvt.s32.f32 %v1131_v23  ;;  %v1132_v3 = vcvt.s32.f32 %v1130_v58  ;;  %v1147_v8 = vcvt.s32.f32 %v1145_v59 }
0x110e   : > { %v1165_v62 = vmax.f32 %v1163_v12, %v1164_v14 }
0x110f   : > { %1149 = vmin.xlane.f32.xlu0 %v1148_v56  ;;  %1134 = vmin.xlane.f32.xlu2 %v1133_v57 }
0x1110   : > { %v1166_v15 = vrot.slane %v1165_v62, 2 }
0x1112   : > { %v1167_v18 = vmax.f32 %v1165_v62, %v1166_v15 }
0x1114   : > { %v1168_v13 = vrot.slane %v1167_v18, 1 }
0x1116   : > { %v1169_v19 = vmax.f32 %v1167_v18, %v1168_v13 }
0x1118   : > { %vm1170_vm4 = vcmp.eq.f32.partialorder %v1161_v4, %v1169_v19  ;;  %vm1171_vm12 = vcmp.eq.f32.partialorder %v1162_v11, %v1169_v19 }
0x1119   : > { %v1172_v21 = vsel %vm1170_vm4, %v1959_v30, 16  ;;  %v1173_v16 = vsel %vm1171_vm12, %v1962_v32, 16 }
0x111a   : > { %vm1174_vm5 = vcmp.lt.s32.totalorder %v1172_v21, %v1173_v16 }
0x111b   : > { %v1175_v10 = vsel %vm1174_vm5, %v1172_v21, %v1173_v16 }
0x111c   : > { %v1176_v24 = vrot.slane %v1175_v10, 4 }
0x111e   : > { %vm1177_vm14 = vcmp.lt.s32.totalorder %v1175_v10, %v1176_v24 }
0x111f   : > { %v1178_v60 = vsel %vm1177_vm14, %v1175_v10, %v1176_v24 }
0x1120   : > { %v1179_v26 = vrot.slane %v1178_v60, 2 }
0x1122   : > { %vm1180_vm7 = vcmp.lt.s32.totalorder %v1178_v60, %v1179_v26 }
0x1123   : > { %v1181_v27 = vsel %vm1180_vm7, %v1178_v60, %v1179_v26 }
0x1124   : > { %v1182_v20 = vrot.slane %v1181_v27, 1 }
0x1126   : > { %vm1183_vm1 = vcmp.lt.s32.totalorder %v1181_v27, %v1182_v20 }
0x1127   : > { %v1184_v34 = vsel %vm1183_vm1, %v1181_v27, %v1182_v20 }
0x1128   : > { %vm1185_vm9 = vcmp.eq.s32.totalorder %v1959_v30, %v1184_v34  ;;  %vm1186_vm13 = vcmp.eq.s32.totalorder %v1962_v32, %v1184_v34 }
0x1182   : > { %v1135_v63 = vpop.xlane.xlu2 %1134  ;;  %v1150_v1 = vpop.xlane.xlu0 %1149 }
0x1183   : > { %vm1136_vm8 = vcmp.eq.f32.partialorder %v1133_v57, %v1135_v63  ;;  %vm1151_vm2 = vcmp.eq.f32.partialorder %v1148_v56, %v1150_v1  ;;  %v1141_v28 = vcvt.f32.s32 %v1135_v63  ;;  %v1156_v6 = vcvt.f32.s32 %v1150_v1 }
0x1184   : > { %v1137_v61 = vsel %vm1136_vm8, %v1132_v3, inf  ;;  %v1152_v9 = vsel %vm1151_vm2, %v1147_v8, inf }
0x1185   : > { %1138 = vmin.xlane.f32.xlu1 %v1137_v61  ;;  %1153 = vmin.xlane.f32.xlu2 %v1152_v9  ;;  %v1142_v35 = vshll.u32 %v1141_v28, 16  ;;  %v1157_v25 = vshll.u32 %v1156_v6, 16 }
0x11f8   : > { %v1139_v33 = vpop.xlane.xlu1 %1138  ;;  %v1154_v2 = vpop.xlane.xlu2 %1153 }
0x11f9   : > { %v1140_v38 = vcvt.f32.s32 %v1139_v33  ;;  %v1155_v39 = vcvt.f32.s32 %v1154_v2 }
0x11fb   : > { %v1143_v7 = vadd.s32 %v1142_v35, %v1140_v38  ;;  %v1158_v40 = vadd.s32 %v1157_v25, %v1155_v39 }
0x11fd   : > { %v1187_v29 = vsel %vm1185_vm9, %v1143_v7, 16  ;;  %v1188_v43 = vsel %vm1186_vm13, %v1158_v40, 16 }
0x11fe   : > { %vm1189_vm11 = vcmp.lt.s32.totalorder %v1187_v29, %v1188_v43 }
0x11ff   : > { %v1190_v44 = vsel %vm1189_vm11, %v1187_v29, %v1188_v43 }
0x1200   : > { %v1191_v0 = vrot.slane %v1190_v44, 4 }
0x1202   : > { %vm1192_vm6 = vcmp.lt.s32.totalorder %v1190_v44, %v1191_v0 }
0x1203   : > { %v1193_v45 = vsel %vm1192_vm6, %v1190_v44, %v1191_v0 }
0x1204   : > { %v1194_v36 = vrot.slane %v1193_v45, 2 }
0x1206   : > { %vm1195_vm8 = vcmp.lt.s32.totalorder %v1193_v45, %v1194_v36 }
0x1207   : > { %v1196_v48 = vsel %vm1195_vm8, %v1193_v45, %v1194_v36 }
0x1208   : > { %v1197_v49 = vrot.slane %v1196_v48, 1 }
0x120a   : > { %vm1198_vm2 = vcmp.lt.s32.totalorder %v1196_v48, %v1197_v49 }
0x120b   : > { %v1199_v31 = vsel %vm1198_vm2, %v1196_v48, %v1197_v49 }
0x120c   : > { %vm1202_vm15 = vcmp.eq.s32.totalorder %v1951_v5, %v1199_v31  ;;  %v2356_v50 = vsel %vm1186_vm13, %v1199_v31, %v2322_v37  ;;  %v2361_v41 = vsel %vm1185_vm9, %v1199_v31, %v2327_v46 }
0x120d   : > { %vm2365_vm10 = vmor %vm2331_vm3, %vm1202_vm15  ;;  %vm1249_vm7 = vcmp.lt.s32.totalorder %v2356_v50, 16  ;;  %vm1248_vm1 = vcmp.lt.s32.totalorder %v2361_v41, 16 }
0x120e   : > { %v1204_v51 = vsel %vm2365_vm10, 1, %v1829_v17 }
0x120f   : > { %vm1205_vm4 = vcmp.eq.s32.totalorder %v1204_v51, 1 }
0x1210   : > { %v1207_v37 = vsel %vm1205_vm4, -1.0, %v2373_v52  ;;  %v1206_v46 = vsel %vm1205_vm4, -1.0, %v2377_v53 }
0x1211   : > { %v1211_v54 = vsel %vm144_vm0, %v1207_v37, -inf  ;;  %v1208_v47 = vsel %vm144_vm0, %v1206_v46, -inf }
0x1212   : > { %1212 = vmax.xlane.f32.xlu1 %v1211_v54  ;;  %1209 = vmax.xlane.f32.xlu0 %v1208_v47 }
0x1285   : > { %v1213_v22 = vpop.xlane.xlu1 %1212  ;;  %v1210_v55 = vpop.xlane.xlu0 %1209 }
0x1286   : > { %vm1215_vm3 = vcmp.eq.f32.partialorder %v1207_v37, %v1213_v22  ;;  %vm1214_vm12 = vcmp.eq.f32.partialorder %v1206_v46, %v1210_v55  ;;  %v1251_v15 = vsel %vm1249_vm7, -inf, %v1213_v22  ;;  %v1250_v18 = vsel %vm1248_vm1, -inf, %v1210_v55 }
0x1287   : > { %v1217_v23 = vsel %vm1215_vm3, %v1951_v5, 16  ;;  %v1216_v56 = vsel %vm1214_vm12, %v1951_v5, 16  ;;  %v1252_v13 = vmax.f32 %v1250_v18, %v1251_v15 }
0x1288   : > { %v1233_v57 = vsel %vm144_vm0, %v1217_v23, 2147483647  ;;  %v1218_v58 = vsel %vm144_vm0, %v1216_v56, 2147483647 }
0x1289   : > { %v1235_v59 = vshra.s32 %v1233_v57, 16  ;;  %v1220_v63 = vshra.s32 %v1218_v58, 16  ;;  %v1219_v8 = vand.u32 65535, %v1218_v58  ;;  %v1234_v61 = vand.u32 65535, %v1233_v57 }
0x128a   : > { %v1253_v19 = vrot.slane %v1252_v13, 4 }
0x128b   : > { %v1237_v1 = vcvt.s32.f32 %v1235_v59  ;;  %v1222_v3 = vcvt.s32.f32 %v1220_v63  ;;  %v1221_v4 = vcvt.s32.f32 %v1219_v8  ;;  %v1236_v12 = vcvt.s32.f32 %v1234_v61 }
0x128c   : > { %v1254_v21 = vmax.f32 %v1252_v13, %v1253_v19 }
0x128d   : > { %1238 = vmin.xlane.f32.xlu0 %v1237_v1  ;;  %1223 = vmin.xlane.f32.xlu2 %v1222_v3 }
0x128e   : > { %v1255_v16 = vrot.slane %v1254_v21, 2 }
0x1290   : > { %v1256_v10 = vmax.f32 %v1254_v21, %v1255_v16 }
0x1292   : > { %v1257_v24 = vrot.slane %v1256_v10, 1 }
0x1294   : > { %v1258_v60 = vmax.f32 %v1256_v10, %v1257_v24 }
0x1296   : > { %vm1259_vm9 = vcmp.eq.f32.partialorder %v1250_v18, %v1258_v60  ;;  %vm1260_vm13 = vcmp.eq.f32.partialorder %v1251_v15, %v1258_v60 }
0x1297   : > { %v1261_v26 = vsel %vm1259_vm9, %v1959_v30, 16  ;;  %v1262_v27 = vsel %vm1260_vm13, %v1962_v32, 16 }
0x1298   : > { %vm1263_vm11 = vcmp.lt.s32.totalorder %v1261_v26, %v1262_v27 }
0x1299   : > { %v1264_v20 = vsel %vm1263_vm11, %v1261_v26, %v1262_v27 }
0x129a   : > { %v1265_v28 = vrot.slane %v1264_v20, 4 }
0x129c   : > { %vm1266_vm6 = vcmp.lt.s32.totalorder %v1264_v20, %v1265_v28 }
0x129d   : > { %v1267_v6 = vsel %vm1266_vm6, %v1264_v20, %v1265_v28 }
0x129e   : > { %v1268_v33 = vrot.slane %v1267_v6, 2 }
0x12a0   : > { %vm1269_vm8 = vcmp.lt.s32.totalorder %v1267_v6, %v1268_v33 }
0x12a1   : > { %v1270_v34 = vsel %vm1269_vm8, %v1267_v6, %v1268_v33 }
0x12a2   : > { %v1271_v2 = vrot.slane %v1270_v34, 1 }
0x12a4   : > { %vm1272_vm2 = vcmp.lt.s32.totalorder %v1270_v34, %v1271_v2 }
0x12a5   : > { %v1273_v39 = vsel %vm1272_vm2, %v1270_v34, %v1271_v2 }
0x12a6   : > { %vm1274_vm15 = vcmp.eq.s32.totalorder %v1959_v30, %v1273_v39  ;;  %vm1275_vm4 = vcmp.eq.s32.totalorder %v1962_v32, %v1273_v39 }
0x1300   : > { %v1224_v9 = vpop.xlane.xlu2 %1223  ;;  %v1239_v11 = vpop.xlane.xlu0 %1238 }
0x1301   : > { %vm1225_vm5 = vcmp.eq.f32.partialorder %v1222_v3, %v1224_v9  ;;  %vm1240_vm14 = vcmp.eq.f32.partialorder %v1237_v1, %v1239_v11  ;;  %v1230_v35 = vcvt.f32.s32 %v1224_v9  ;;  %v1245_v25 = vcvt.f32.s32 %v1239_v11 }
0x1302   : > { %v1226_v14 = vsel %vm1225_vm5, %v1221_v4, inf  ;;  %v1241_v62 = vsel %vm1240_vm14, %v1236_v12, inf }
0x1303   : > { %1227 = vmin.xlane.f32.xlu1 %v1226_v14  ;;  %1242 = vmin.xlane.f32.xlu2 %v1241_v62  ;;  %v1231_v40 = vshll.u32 %v1230_v35, 16  ;;  %v1246_v29 = vshll.u32 %v1245_v25, 16 }
0x1376   : > { %v1228_v38 = vpop.xlane.xlu1 %1227  ;;  %v1243_v7 = vpop.xlane.xlu2 %1242 }
0x1377   : > { %v1229_v43 = vcvt.f32.s32 %v1228_v38  ;;  %v1244_v44 = vcvt.f32.s32 %v1243_v7 }
0x1379   : > { %v1232_v0 = vadd.s32 %v1231_v40, %v1229_v43  ;;  %v1247_v45 = vadd.s32 %v1246_v29, %v1244_v44 }
0x137b   : > { %v1276_v36 = vsel %vm1274_vm15, %v1232_v0, 16  ;;  %v1277_v48 = vsel %vm1275_vm4, %v1247_v45, 16 }
0x137c   : > { %vm1278_vm3 = vcmp.lt.s32.totalorder %v1276_v36, %v1277_v48 }
0x137d   : > { %v1279_v49 = vsel %vm1278_vm3, %v1276_v36, %v1277_v48 }
0x137e   : > { %v1280_v31 = vrot.slane %v1279_v49, 4 }
0x1380   : > { %vm1281_vm12 = vcmp.lt.s32.totalorder %v1279_v49, %v1280_v31 }
0x1381   : > { %v1282_v51 = vsel %vm1281_vm12, %v1279_v49, %v1280_v31 }
0x1382   : > { %v1283_v37 = vrot.slane %v1282_v51, 2 }
0x1384   : > { %vm1284_vm5 = vcmp.lt.s32.totalorder %v1282_v51, %v1283_v37 }
0x1385   : > { %v1285_v46 = vsel %vm1284_vm5, %v1282_v51, %v1283_v37 }
0x1386   : > { %v1286_v54 = vrot.slane %v1285_v46, 1 }
0x1388   : > { %vm1287_vm14 = vcmp.lt.s32.totalorder %v1285_v46, %v1286_v54 }
0x1389   : > { %v1288_v47 = vsel %vm1287_vm14, %v1285_v46, %v1286_v54 }
0x138a   : > { %vm1291_vm7 = vcmp.eq.s32.totalorder %v1951_v5, %v1288_v47  ;;  %v2396_v22 = vsel %vm1275_vm4, %v1288_v47, %v2356_v50  ;;  %v2401_v55 = vsel %vm1274_vm15, %v1288_v47, %v2361_v41 }
0x138b   : > { %vm2405_vm1 = vmor %vm2365_vm10, %vm1291_vm7  ;;  %vm1338_vm8 = vcmp.lt.s32.totalorder %v2396_v22, 16  ;;  %vm1337_vm2 = vcmp.lt.s32.totalorder %v2401_v55, 16 }
0x138c   : > { %v1293_v56 = vsel %vm2405_vm1, 1, %v1829_v17 }
0x138d   : > { %vm1294_vm9 = vcmp.eq.s32.totalorder %v1293_v56, 1 }
0x138e   : > { %v1296_v57 = vsel %vm1294_vm9, -1.0, %v2373_v52  ;;  %v1295_v50 = vsel %vm1294_vm9, -1.0, %v2377_v53 }
0x138f   : > { %v1300_v58 = vsel %vm144_vm0, %v1296_v57, -inf  ;;  %v1297_v41 = vsel %vm144_vm0, %v1295_v50, -inf }
0x1390   : > { %1301 = vmax.xlane.f32.xlu1 %v1300_v58  ;;  %1298 = vmax.xlane.f32.xlu0 %v1297_v41 }
0x1403   : > { %v1302_v42 = vpop.xlane.xlu1 %1301  ;;  %v1299_v59 = vpop.xlane.xlu0 %1298 }
0x1404   : > { %vm1304_vm10 = vcmp.eq.f32.partialorder %v1296_v57, %v1302_v42  ;;  %vm1303_vm13 = vcmp.eq.f32.partialorder %v1295_v50, %v1299_v59  ;;  %v1340_v16 = vsel %vm1338_vm8, -inf, %v1302_v42  ;;  %v1339_v10 = vsel %vm1337_vm2, -inf, %v1299_v59 }
0x1405   : > { %v1306_v63 = vsel %vm1304_vm10, %v1951_v5, 16  ;;  %v1305_v1 = vsel %vm1303_vm13, %v1951_v5, 16  ;;  %v1341_v24 = vmax.f32 %v1339_v10, %v1340_v16 }
0x1406   : > { %v1322_v3 = vsel %vm144_vm0, %v1306_v63, 2147483647  ;;  %v1307_v8 = vsel %vm144_vm0, %v1305_v1, 2147483647 }
0x1407   : > { %v1324_v61 = vshra.s32 %v1322_v3, 16  ;;  %v1309_v9 = vshra.s32 %v1307_v8, 16  ;;  %v1308_v12 = vand.u32 65535, %v1307_v8  ;;  %v1323_v14 = vand.u32 65535, %v1322_v3 }
0x1408   : > { %v1342_v60 = vrot.slane %v1341_v24, 4 }
0x1409   : > { %v1326_v11 = vcvt.s32.f32 %v1324_v61  ;;  %v1311_v4 = vcvt.s32.f32 %v1309_v9  ;;  %v1310_v18 = vcvt.s32.f32 %v1308_v12  ;;  %v1325_v13 = vcvt.s32.f32 %v1323_v14 }
0x140a   : > { %v1343_v26 = vmax.f32 %v1341_v24, %v1342_v60 }
0x140b   : > { %1327 = vmin.xlane.f32.xlu0 %v1326_v11  ;;  %1312 = vmin.xlane.f32.xlu2 %v1311_v4 }
0x140c   : > { %v1344_v27 = vrot.slane %v1343_v26, 2 }
0x140e   : > { %v1345_v20 = vmax.f32 %v1343_v26, %v1344_v27 }
0x1410   : > { %v1346_v28 = vrot.slane %v1345_v20, 1 }
0x1412   : > { %v1347_v6 = vmax.f32 %v1345_v20, %v1346_v28 }
0x1414   : > { %vm1348_vm15 = vcmp.eq.f32.partialorder %v1339_v10, %v1347_v6  ;;  %vm1349_vm4 = vcmp.eq.f32.partialorder %v1340_v16, %v1347_v6 }
0x1415   : > { %v1350_v33 = vsel %vm1348_vm15, %v1959_v30, 16  ;;  %v1351_v34 = vsel %vm1349_vm4, %v1962_v32, 16 }
0x1416   : > { %vm1352_vm3 = vcmp.lt.s32.totalorder %v1350_v33, %v1351_v34 }
0x1417   : > { %v1353_v2 = vsel %vm1352_vm3, %v1350_v33, %v1351_v34 }
0x1418   : > { %v1354_v35 = vrot.slane %v1353_v2, 4 }
0x141a   : > { %vm1355_vm12 = vcmp.lt.s32.totalorder %v1353_v2, %v1354_v35 }
0x141b   : > { %v1356_v25 = vsel %vm1355_vm12, %v1353_v2, %v1354_v35 }
0x141c   : > { %v1357_v38 = vrot.slane %v1356_v25, 2 }
0x141e   : > { %vm1358_vm5 = vcmp.lt.s32.totalorder %v1356_v25, %v1357_v38 }
0x141f   : > { %v1359_v39 = vsel %vm1358_vm5, %v1356_v25, %v1357_v38 }
0x1420   : > { %v1360_v7 = vrot.slane %v1359_v39, 1 }
0x1422   : > { %vm1361_vm14 = vcmp.lt.s32.totalorder %v1359_v39, %v1360_v7 }
0x1423   : > { %v1362_v44 = vsel %vm1361_vm14, %v1359_v39, %v1360_v7 }
0x1424   : > { %vm1363_vm7 = vcmp.eq.s32.totalorder %v1959_v30, %v1362_v44  ;;  %vm1364_vm9 = vcmp.eq.s32.totalorder %v1962_v32, %v1362_v44 }
0x147e   : > { %v1313_v62 = vpop.xlane.xlu2 %1312  ;;  %v1328_v15 = vpop.xlane.xlu0 %1327 }
0x147f   : > { %vm1314_vm11 = vcmp.eq.f32.partialorder %v1311_v4, %v1313_v62  ;;  %vm1329_vm6 = vcmp.eq.f32.partialorder %v1326_v11, %v1328_v15  ;;  %v1319_v40 = vcvt.f32.s32 %v1313_v62  ;;  %v1334_v29 = vcvt.f32.s32 %v1328_v15 }
0x1480   : > { %v1315_v19 = vsel %vm1314_vm11, %v1310_v18, inf  ;;  %v1330_v21 = vsel %vm1329_vm6, %v1325_v13, inf }
0x1481   : > { %1316 = vmin.xlane.f32.xlu1 %v1315_v19  ;;  %1331 = vmin.xlane.f32.xlu2 %v1330_v21  ;;  %v1320_v45 = vshll.u32 %v1319_v40, 16  ;;  %v1335_v36 = vshll.u32 %v1334_v29, 16 }
0x14f4   : > { %v1317_v43 = vpop.xlane.xlu1 %1316  ;;  %v1332_v0 = vpop.xlane.xlu2 %1331 }
0x14f5   : > { %v1318_v48 = vcvt.f32.s32 %v1317_v43  ;;  %v1333_v49 = vcvt.f32.s32 %v1332_v0 }
0x14f7   : > { %v1321_v31 = vadd.s32 %v1320_v45, %v1318_v48  ;;  %v1336_v51 = vadd.s32 %v1335_v36, %v1333_v49 }
0x14f9   : > { %v1365_v37 = vsel %vm1363_vm7, %v1321_v31, 16  ;;  %v1366_v46 = vsel %vm1364_vm9, %v1336_v51, 16 }
0x14fa   : > { %vm1367_vm10 = vcmp.lt.s32.totalorder %v1365_v37, %v1366_v46 }
0x14fb   : > { %v1368_v54 = vsel %vm1367_vm10, %v1365_v37, %v1366_v46 }
0x14fc   : > { %v1369_v47 = vrot.slane %v1368_v54, 4 }
0x14fe   : > { %vm1370_vm13 = vcmp.lt.s32.totalorder %v1368_v54, %v1369_v47 }
0x14ff   : > { %v1371_v56 = vsel %vm1370_vm13, %v1368_v54, %v1369_v47 }
0x1500   : > { %v1372_v57 = vrot.slane %v1371_v56, 2 }
0x1502   : > { %vm1373_vm11 = vcmp.lt.s32.totalorder %v1371_v56, %v1372_v57 }
0x1503   : > { %v1374_v50 = vsel %vm1373_vm11, %v1371_v56, %v1372_v57 }
0x1504   : > { %v1375_v58 = vrot.slane %v1374_v50, 1 }
0x1506   : > { %vm1376_vm6 = vcmp.lt.s32.totalorder %v1374_v50, %v1375_v58 }
0x1507   : > { %v1377_v41 = vsel %vm1376_vm6, %v1374_v50, %v1375_v58 }
0x1508   : > { %vm1380_vm8 = vcmp.eq.s32.totalorder %v1951_v5, %v1377_v41  ;;  %v2430_v42 = vsel %vm1364_vm9, %v1377_v41, %v2396_v22  ;;  %v2435_v59 = vsel %vm1363_vm7, %v1377_v41, %v2401_v55 }
0x1509   : > { %vm2439_vm2 = vmor %vm2405_vm1, %vm1380_vm8  ;;  %vm1427_vm5 = vcmp.lt.s32.totalorder %v2430_v42, 16  ;;  %vm1426_vm14 = vcmp.lt.s32.totalorder %v2435_v59, 16 }
0x150a   : > { %v1382_v1 = vsel %vm2439_vm2, 1, %v1829_v17 }
0x150b   : > { %vm1383_vm15 = vcmp.eq.s32.totalorder %v1382_v1, 1 }
0x150c   : > { %v1385_v3 = vsel %vm1383_vm15, -1.0, %v2373_v52  ;;  %v1384_v22 = vsel %vm1383_vm15, -1.0, %v2377_v53 }
0x150d   : > { %v1389_v8 = vsel %vm144_vm0, %v1385_v3, -inf  ;;  %v1386_v55 = vsel %vm144_vm0, %v1384_v22, -inf }
0x150e   : > { %1390 = vmax.xlane.f32.xlu1 %v1389_v8  ;;  %1387 = vmax.xlane.f32.xlu0 %v1386_v55 }
0x1581   : > { %v1391_v23 = vpop.xlane.xlu1 %1390  ;;  %v1388_v61 = vpop.xlane.xlu0 %1387 }
0x1582   : > { %vm1393_vm1 = vcmp.eq.f32.partialorder %v1385_v3, %v1391_v23  ;;  %vm1392_vm4 = vcmp.eq.f32.partialorder %v1384_v22, %v1388_v61  ;;  %v1429_v27 = vsel %vm1427_vm5, -inf, %v1391_v23  ;;  %v1428_v20 = vsel %vm1426_vm14, -inf, %v1388_v61 }
0x1583   : > { %v1395_v9 = vsel %vm1393_vm1, %v1951_v5, 16  ;;  %v1394_v11 = vsel %vm1392_vm4, %v1951_v5, 16  ;;  %v1430_v28 = vmax.f32 %v1428_v20, %v1429_v27 }
0x1584   : > { %v1411_v4 = vsel %vm144_vm0, %v1395_v9, 2147483647  ;;  %v1396_v12 = vsel %vm144_vm0, %v1394_v11, 2147483647 }
0x1585   : > { %v1413_v14 = vshra.s32 %v1411_v4, 16  ;;  %v1398_v62 = vshra.s32 %v1396_v12, 16  ;;  %v1397_v13 = vand.u32 65535, %v1396_v12  ;;  %v1412_v19 = vand.u32 65535, %v1411_v4 }
0x1586   : > { %v1431_v6 = vrot.slane %v1430_v28, 4 }
0x1587   : > { %v1415_v15 = vcvt.s32.f32 %v1413_v14  ;;  %v1400_v18 = vcvt.s32.f32 %v1398_v62  ;;  %v1399_v10 = vcvt.s32.f32 %v1397_v13  ;;  %v1414_v24 = vcvt.s32.f32 %v1412_v19 }
0x1588   : > { %v1432_v33 = vmax.f32 %v1430_v28, %v1431_v6 }
0x1589   : > { %1416 = vmin.xlane.f32.xlu0 %v1415_v15  ;;  %1401 = vmin.xlane.f32.xlu2 %v1400_v18 }
0x158a   : > { %v1433_v34 = vrot.slane %v1432_v33, 2 }
0x158c   : > { %v1434_v2 = vmax.f32 %v1432_v33, %v1433_v34 }
0x158e   : > { %v1435_v35 = vrot.slane %v1434_v2, 1 }
0x1590   : > { %v1436_v25 = vmax.f32 %v1434_v2, %v1435_v35 }
0x1592   : > { %vm1437_vm7 = vcmp.eq.f32.partialorder %v1428_v20, %v1436_v25  ;;  %vm1438_vm9 = vcmp.eq.f32.partialorder %v1429_v27, %v1436_v25 }
0x1593   : > { %v1439_v38 = vsel %vm1437_vm7, %v1959_v30, 16  ;;  %v1440_v39 = vsel %vm1438_vm9, %v1962_v32, 16 }
0x1594   : > { %vm1441_vm10 = vcmp.lt.s32.totalorder %v1439_v38, %v1440_v39 }
0x1595   : > { %v1442_v7 = vsel %vm1441_vm10, %v1439_v38, %v1440_v39 }
0x1596   : > { %v1443_v40 = vrot.slane %v1442_v7, 4 }
0x1598   : > { %vm1444_vm13 = vcmp.lt.s32.totalorder %v1442_v7, %v1443_v40 }
0x1599   : > { %v1445_v29 = vsel %vm1444_vm13, %v1442_v7, %v1443_v40 }
0x159a   : > { %v1446_v43 = vrot.slane %v1445_v29, 2 }
0x159c   : > { %vm1447_vm11 = vcmp.lt.s32.totalorder %v1445_v29, %v1446_v43 }
0x159d   : > { %v1448_v44 = vsel %vm1447_vm11, %v1445_v29, %v1446_v43 }
0x159e   : > { %v1449_v0 = vrot.slane %v1448_v44, 1 }
0x15a0   : > { %vm1450_vm6 = vcmp.lt.s32.totalorder %v1448_v44, %v1449_v0 }
0x15a1   : > { %v1451_v49 = vsel %vm1450_vm6, %v1448_v44, %v1449_v0 }
0x15a2   : > { %vm1452_vm8 = vcmp.eq.s32.totalorder %v1959_v30, %v1451_v49  ;;  %vm1453_vm15 = vcmp.eq.s32.totalorder %v1962_v32, %v1451_v49 }
0x15fc   : > { %v1402_v21 = vpop.xlane.xlu2 %1401  ;;  %v1417_v16 = vpop.xlane.xlu0 %1416 }
0x15fd   : > { %vm1403_vm3 = vcmp.eq.f32.partialorder %v1400_v18, %v1402_v21  ;;  %vm1418_vm12 = vcmp.eq.f32.partialorder %v1415_v15, %v1417_v16  ;;  %v1408_v45 = vcvt.f32.s32 %v1402_v21  ;;  %v1423_v36 = vcvt.f32.s32 %v1417_v16 }
0x15fe   : > { %v1404_v60 = vsel %vm1403_vm3, %v1399_v10, inf  ;;  %v1419_v26 = vsel %vm1418_vm12, %v1414_v24, inf }
0x15ff   : > { %1405 = vmin.xlane.f32.xlu1 %v1404_v60  ;;  %1420 = vmin.xlane.f32.xlu2 %v1419_v26  ;;  %v1409_v51 = vshll.u32 %v1408_v45, 16  ;;  %v1424_v37 = vshll.u32 %v1423_v36, 16 }
0x1672   : > { %v1406_v48 = vpop.xlane.xlu1 %1405  ;;  %v1421_v31 = vpop.xlane.xlu2 %1420 }
0x1673   : > { %v1407_v46 = vcvt.f32.s32 %v1406_v48  ;;  %v1422_v54 = vcvt.f32.s32 %v1421_v31 }
0x1675   : > { %v1410_v47 = vadd.s32 %v1409_v51, %v1407_v46  ;;  %v1425_v56 = vadd.s32 %v1424_v37, %v1422_v54 }
0x1677   : > { %v1454_v57 = vsel %vm1452_vm8, %v1410_v47, 16  ;;  %v1455_v50 = vsel %vm1453_vm15, %v1425_v56, 16 }
0x1678   : > { %vm1456_vm1 = vcmp.lt.s32.totalorder %v1454_v57, %v1455_v50 }
0x1679   : > { %v1457_v58 = vsel %vm1456_vm1, %v1454_v57, %v1455_v50 }
0x167a   : > { %v1458_v41 = vrot.slane %v1457_v58, 4 }
0x167c   : > { %vm1459_vm4 = vcmp.lt.s32.totalorder %v1457_v58, %v1458_v41 }
0x167d   : > { %v1460_v1 = vsel %vm1459_vm4, %v1457_v58, %v1458_v41 }
0x167e   : > { %v1461_v3 = vrot.slane %v1460_v1, 2 }
0x1680   : > { %vm1462_vm3 = vcmp.lt.s32.totalorder %v1460_v1, %v1461_v3 }
0x1681   : > { %v1463_v22 = vsel %vm1462_vm3, %v1460_v1, %v1461_v3 }
0x1682   : > { %v1464_v8 = vrot.slane %v1463_v22, 1 }
0x1684   : > { %vm1465_vm12 = vcmp.lt.s32.totalorder %v1463_v22, %v1464_v8 }
0x1685   : > { %v1466_v55 = vsel %vm1465_vm12, %v1463_v22, %v1464_v8 }
0x1686   : > { %vm1469_vm5 = vcmp.eq.s32.totalorder %v1951_v5, %v1466_v55  ;;  %v2464_v23 = vsel %vm1453_vm15, %v1466_v55, %v2430_v42  ;;  %v2469_v61 = vsel %vm1452_vm8, %v1466_v55, %v2435_v59 }
0x1687   : > { %vm1470_vm14 = vmor %vm2439_vm2, %vm1469_vm5  ;;  %vm1516_vm9 = vcmp.lt.s32.totalorder %v2464_v23, 16  ;;  %vm1515_vm10 = vcmp.lt.s32.totalorder %v2469_v61, 16 }
0x1688   : > { %v1471_v9 = vsel %vm1470_vm14, 1, %v1829_v17 }
0x1689   : > { %vm1472_vm7 = vcmp.eq.s32.totalorder %v1471_v9, 1 }
0x168a   : > { %v1474_v11 = vsel %vm1472_vm7, -1.0, %v2373_v52  ;;  %v1473_v4 = vsel %vm1472_vm7, -1.0, %v2377_v53 }
0x168b   : > { %v1478_v12 = vsel %vm144_vm0, %v1474_v11, -inf  ;;  %v1475_v42 = vsel %vm144_vm0, %v1473_v4, -inf }
0x168c   : > { %1479 = vmax.xlane.f32.xlu1 %v1478_v12  ;;  %1476 = vmax.xlane.f32.xlu0 %v1475_v42  ;;  %v1830_v12 = vmov 0.0  }
0x16ff   : > { %v1480_v14 = vpop.xlane.xlu1 %1479  ;;  %v1477_v59 = vpop.xlane.xlu0 %1476 }
0x1700   : > { %vm1482_vm2 = vcmp.eq.f32.partialorder %v1474_v11, %v1480_v14  ;;  %v1518_v63 = vsel %vm1516_vm9, -inf, %v1480_v14  ;;  %vm1481_vm13 = vcmp.eq.f32.partialorder %v1473_v4, %v1477_v59  ;;  %v1517_v17 = vsel %vm1515_vm10, -inf, %v1477_v59 }
0x1701   : > { %v1484_v52 = vsel %vm1482_vm2, %v1951_v5, 16  ;;  %v1483_v53 = vsel %vm1481_vm13, %v1951_v5, 16  ;;  %v1519_v62 = vmax.f32 %v1517_v17, %v1518_v63 }
0x1702   : > { %v1500_v15 = vsel %vm144_vm0, %v1484_v52, 2147483647  ;;  %v1485_v18 = vsel %vm144_vm0, %v1483_v53, 2147483647 }
0x1703   : > { %v1520_v13 = vrot.slane %v1519_v62, 4  ;;  %v1502_v19 = vshra.s32 %v1500_v15, 16  ;;  %v1487_v21 = vshra.s32 %v1485_v18, 16  ;;  %v1486_v34 = vand.u32 65535, %v1485_v18 }
0x1704   : > { %v1501_v2 = vand.u32 65535, %v1500_v15 }
0x1705   : > { %v1521_v16 = vmax.f32 %v1519_v62, %v1520_v13  ;;  %v1504_v10 = vcvt.s32.f32 %v1502_v19  ;;  %v1489_v24 = vcvt.s32.f32 %v1487_v21  ;;  %v1488_v38 = vcvt.s32.f32 %v1486_v34 }
0x1706   : > { %v1503_v39 = vcvt.s32.f32 %v1501_v2 }
0x1707   : > { %v1522_v60 = vrot.slane %v1521_v16, 2  ;;  %1505 = vmin.xlane.f32.xlu0 %v1504_v10  ;;  %1490 = vmin.xlane.f32.xlu2 %v1489_v24 }
0x1709   : > { %v1523_v26 = vmax.f32 %v1521_v16, %v1522_v60 }
0x170b   : > { %v1524_v27 = vrot.slane %v1523_v26, 1 }
0x170d   : > { %v1525_v20 = vmax.f32 %v1523_v26, %v1524_v27 }
0x170f   : > { %vm1526_vm11 = vcmp.eq.f32.partialorder %v1517_v17, %v1525_v20  ;;  %vm1527_vm6 = vcmp.eq.f32.partialorder %v1518_v63, %v1525_v20 }
0x1710   : > { %v1528_v28 = vsel %vm1526_vm11, %v1959_v30, 16  ;;  %v1529_v6 = vsel %vm1527_vm6, %v1962_v32, 16 }
0x1711   : > { %vm1530_vm8 = vcmp.lt.s32.totalorder %v1528_v28, %v1529_v6 }
0x1712   : > { %v1531_v33 = vsel %vm1530_vm8, %v1528_v28, %v1529_v6 }
0x1713   : > { %v1532_v29 = vrot.slane %v1531_v33, 4 }
0x1715   : > { %vm1533_vm4 = vcmp.lt.s32.totalorder %v1531_v33, %v1532_v29 }
0x1716   : > { %v1534_v43 = vsel %vm1533_vm4, %v1531_v33, %v1532_v29 }
0x1717   : > { %v1535_v44 = vrot.slane %v1534_v43, 2 }
0x1719   : > { %vm1536_vm3 = vcmp.lt.s32.totalorder %v1534_v43, %v1535_v44 }
0x171a   : > { %v1537_v0 = vsel %vm1536_vm3, %v1534_v43, %v1535_v44 }
0x171b   : > { %v1538_v45 = vrot.slane %v1537_v0, 1 }
0x171d   : > { %vm1539_vm12 = vcmp.lt.s32.totalorder %v1537_v0, %v1538_v45 }
0x171e   : > { %v1540_v31 = vsel %vm1539_vm12, %v1537_v0, %v1538_v45 }
0x171f   : > { %vm1541_vm5 = vcmp.eq.s32.totalorder %v1959_v30, %v1540_v31  ;;  %vm1542_vm14 = vcmp.eq.s32.totalorder %v1962_v32, %v1540_v31 }
0x177a   : > { %v1491_v35 = vpop.xlane.xlu2 %1490  ;;  %v1506_v25 = vpop.xlane.xlu0 %1505 }
0x177b   : > { %vm1507_vm15 = vcmp.eq.f32.partialorder %v1504_v10, %v1506_v25  ;;  %vm1492_vm1 = vcmp.eq.f32.partialorder %v1489_v24, %v1491_v35  ;;  %v1497_v36 = vcvt.f32.s32 %v1491_v35  ;;  %v1512_v48 = vcvt.f32.s32 %v1506_v25 }
0x177c   : > { %v1493_v7 = vsel %vm1492_vm1, %v1488_v38, inf  ;;  %v1508_v40 = vsel %vm1507_vm15, %v1503_v39, inf }
0x177d   : > { %1494 = vmin.xlane.f32.xlu1 %v1493_v7  ;;  %1509 = vmin.xlane.f32.xlu2 %v1508_v40  ;;  %v1498_v37 = vshll.u32 %v1497_v36, 16  ;;  %v1513_v46 = vshll.u32 %v1512_v48, 16 }
0x17f0   : > { %v1495_v49 = vpop.xlane.xlu1 %1494  ;;  %v1510_v51 = vpop.xlane.xlu2 %1509 }
0x17f1   : > { %v1496_v54 = vcvt.f32.s32 %v1495_v49  ;;  %v1511_v47 = vcvt.f32.s32 %v1510_v51 }
0x17f3   : > { %v1499_v56 = vadd.s32 %v1498_v37, %v1496_v54  ;;  %v1514_v57 = vadd.s32 %v1513_v46, %v1511_v47 }
0x17f5   : > { %v1543_v50 = vsel %vm1541_vm5, %v1499_v56, 16  ;;  %v1544_v58 = vsel %vm1542_vm14, %v1514_v57, 16 }
0x17f6   : > { %vm1545_vm7 = vcmp.lt.s32.totalorder %v1543_v50, %v1544_v58 }
0x17f7   : > { %v1546_v41 = vsel %vm1545_vm7, %v1543_v50, %v1544_v58 }
0x17f8   : > { %v1547_v1 = vrot.slane %v1546_v41, 4 }
0x17fa   : > { %vm1548_vm9 = vcmp.lt.s32.totalorder %v1546_v41, %v1547_v1 }
0x17fb   : > { %v1549_v3 = vsel %vm1548_vm9, %v1546_v41, %v1547_v1 }
0x17fc   : > { %v1550_v22 = vrot.slane %v1549_v3, 2 }
0x17fe   : > { %vm1551_vm10 = vcmp.lt.s32.totalorder %v1549_v3, %v1550_v22 }
0x17ff   : > { %v1552_v8 = vsel %vm1551_vm10, %v1549_v3, %v1550_v22 }
0x1800   : > { %v1553_v55 = vrot.slane %v1552_v8, 1 }
0x1802   : > { %vm1554_vm2 = vcmp.lt.s32.totalorder %v1552_v8, %v1553_v55 }
0x1803   : > { %v1555_v9 = vsel %vm1554_vm2, %v1552_v8, %v1553_v55 }
0x1804   : > { %v1556_v11 = vsel %vm1541_vm5, %v1555_v9, %v2469_v61  ;;  %v1557_v4 = vsel %vm1542_vm14, %v1555_v9, %v2464_v23 }
0x1805   : > { %vm1558_vm13 = vcmp.eq.s32.totalorder %v1951_v5, %v1556_v11  ;;  %vm1559_vm11 = vcmp.eq.s32.totalorder %v1951_v5, %v1557_v4 }
0x1806   : > { %v1664_v42 = vsel %vm1558_vm13, 1.0, %v1830_v12  ;;  %v1665_v14 = vsel %vm1559_vm11, 1.0, %v1830_v12 }
0x1807   : > { %1564 = vst.msk [vmem:[%s136_s28] sm:$0xff] %vm144_vm0, %v1664_v42 }
0x1808   : > { %1565 = vst.msk [vmem:[%s136_s28 + $0x8] sm:$0xff] %vm144_vm0, %v1665_v14 }
0x1809   : > { %1786 = shalt.err (!%p1783_p4)
}
0x180a   : > { %s1831_s16 = smov 128   ;;  %s1832_s20 = smov 8  }
0x180b   : > { %1675 = dma.vmem_to_hbm [thread:$0]  (%p1893_p11), %s1580_s29, 256, %s1582_s30, %s1567_s10, %s1831_s16, %s1831_s16, %s1832_s20  }
0x180c PF: > { %s1596_s21 = sand.u32 1, %s1813_s6   ;;  %p2570_p7 = scmp.ge.s32.totalorder %s1825_s9, 2 }
0x180d   : > { %s1597_s22 = scalar_lea.sflag [#allocation4], %s1596_s21 }
0x180e   : > { %p1682_p5 = pnand %p2570_p7, %p1897_p12 }
0x1810   : > { %p1683_p8 = pneg %p1682_p5 }
0x1812   : > { %1808 = dma.done.wait (%p1683_p8), %s1597_s22, 256  }
0x1813   : > { %1810 = vsyncadd (%p1683_p8), %s1597_s22, 4294967040  ;;  %p14_p10 = scmp.ge.s32.totalorder %s1868_s12, 4   ;;  %s2571_s6 = smov %s1817_s7 }
0x1814   : > { %s2572_s7 = smov %s1821_s8  ;;  %s2573_s8 = smov %s1880_s15 }
0x1815   : > { %s2574_s9 = smov %s1868_s12  ;;  %16 = sbr.rel (!%p14_p10) target bundleno = 5 (0x5), region = 69 }
0x181a   :  { %1603 = vsyncpa [#allocation3], 1 }
0x181b   :  { %1605 = vsyncpa [#allocation3 + $0x1], 1 }
0x181c   :  { %1606 = vsyncpa [#allocation4], 1 }
0x181d   :  { %1608 = vsyncpa [#allocation4 + $0x1], 1 }

</bundles_post_ra>
